<compile_context>
chip_gen: v6e
topology: v6e:2x2x1
jax: 0.10.0
libtpu: 0.0.40
codegen_flags: <defaults>
</compile_context>

<pallas_src>
import functools
import math

import jax
import jax.numpy as jnp
from jax import lax
from jax.experimental import pallas as pl
from jax.experimental.pallas import tpu as pltpu

LN_EPS = 1e-5            # torch.nn.LayerNorm default
_APPROX_SOFTMAX = True   # EUP reciprocal (~1e-3 rel err); set False for strict validation


def _round_up(x, m):
    return (x + m - 1) // m * m


# ----------------------------- in-kernel helpers -----------------------------

def _layer_norm(x, g, b):
    mu = jnp.mean(x, axis=-1, keepdims=True)
    var = jnp.mean(jnp.square(x - mu), axis=-1, keepdims=True)
    return (x - mu) * lax.rsqrt(var + LN_EPS) * g + b


def _softmax_lastdim(s):
    s = s - jnp.max(s, axis=-1, keepdims=True)
    p = jnp.exp(s)
    denom = jnp.sum(p, axis=-1, keepdims=True)
    return p * pl.reciprocal(denom, approx=_APPROX_SOFTMAX)


def _mha(xq, xkv, in_wT, in_b, out_w, out_b, *, nhead, dh, key_mask, same_qkv):
    """torch.nn.MultiheadAttention forward (unbatched, dropout=0).

    in_wT : (3d, d)  torch in_proj layout (rows = [Wq; Wk; Wv])
    in_b  : (3d, 1)  column bias
    out_w : (d, d)   math layout (in, out)  (== torch out_proj.weight.T)
    out_b : (1, d)

    Activations are produced transposed ((3d, n) = W @ x^T) so every per-head
    split is a sublane slice and K is lane-dense along n_kv.  Head outputs are
    accumulated through W_o (no lane-axis concatenation).
    """
    d = nhead * dh
    scale = 1.0 / math.sqrt(dh)
    if same_qkv:
        qkvT = lax.dot_general(in_wT, xq, (((1,), (1,)), ((), ())),
                               preferred_element_type=jnp.float32) + in_b
        qT, kT, vT = qkvT[:d], qkvT[d:2 * d], qkvT[2 * d:]
    else:
        qT = lax.dot_general(in_wT[:d], xq, (((1,), (1,)), ((), ())),
                             preferred_element_type=jnp.float32) + in_b[:d]
        kvT = lax.dot_general(in_wT[d:], xkv, (((1,), (1,)), ((), ())),
                              preferred_element_type=jnp.float32) + in_b[d:]
        kT, vT = kvT[:d], kvT[d:]
    acc = None
    for h in range(nhead):                      # static, tiny head count
        r = slice(h * dh, (h + 1) * dh)
        sc = lax.dot_general(qT[r], kT[r], (((0,), (0,)), ((), ())),
                             preferred_element_type=jnp.float32) * scale
        if key_mask is not None:
            sc = jnp.where(key_mask, sc, -1e30)
        p = _softmax_lastdim(sc)
        o = lax.dot_general(p, vT[r], (((1,), (1,)), ((), ())),
                            preferred_element_type=jnp.float32)
        c = jnp.dot(o, out_w[r], preferred_element_type=jnp.float32)
        acc = c if acc is None else acc + c
    return acc + out_b


def _pred_heads(query, pln, hw1T, hb1, mew, meb, csw, csb, d):
    """out_norm + {mask_embed_head, out_cls, out_score} first/second layers.

    hw1T: (3d, d)  packed first layers [me; cls; score] (torch layout)
    mew : (d, d)   mask_embed second layer       (contracts over d only)
    csw : (2d, nc+2) block-diag [out_cls | out_score] second layers
    Returns (mask_embed (n_q, d), cls_score (n_q, nc+2)).
    """
    qn = _layer_norm(query, pln[0:1], pln[1:2])
    hT = jnp.maximum(
        lax.dot_general(hw1T, qn, (((1,), (1,)), ((), ())),
                        preferred_element_type=jnp.float32) + hb1, 0.0)   # (3d, n_q)
    emb = lax.dot_general(hT[:d], mew, (((0,), (0,)), ((), ())),
                          preferred_element_type=jnp.float32) + meb       # (n_q, d)
    cls = lax.dot_general(hT[d:], csw, (((0,), (0,)), ((), ())),
                          preferred_element_type=jnp.float32) + csb       # (n_q, nc+2)
    return emb, cls


# --------------------------------- kernels -----------------------------------

def _mask_mlp_kernel(xf_ref, w1_ref, b1_ref, w2_ref, b2_ref, out_ref):
    """mask_layer Linear-ReLU-Linear on one voxel-row tile (bf16 / f32 accum)."""
    h = jnp.maximum(
        jnp.dot(xf_ref[...], w1_ref[...], preferred_element_type=jnp.float32)
        + b1_ref[...], 0.0)
    y = jnp.dot(h.astype(jnp.bfloat16), w2_ref[...],
                preferred_element_type=jnp.float32) + b2_ref[...]
    out_ref[...] = y.astype(out_ref.dtype)


def _decoder_kernel(lids_ref, ninst_ref,                         # scalar prefetch
                    qf_ref, qw1_ref, qb1_ref, qw2_ref, qb2_ref,
                    inst_ref, sqw_ref, sqb_ref,
                    aiw_ref, aib_ref, aow_ref, aob_ref, ln_ref,
                    fw1_ref, fb1_ref, fw2_ref, fb2_ref,
                    pln_ref, hw1_ref, hb1_ref, mew_ref, meb_ref, csw_ref, csb_ref,
                    emb_ref, cls_ref,                             # outputs
                    q_scr,                                        # scratch
                    *, d, nhead, n_steps):
    """One decoder step per grid iteration; `query` persists in VMEM scratch."""
    s = pl.program_id(0)
    dh = d // nhead

    # ---- step 0: query_layer MLP (Linear-ReLU-Linear) into the scratch ----
    @pl.when(s == 0)
    def _():
        hq = jnp.maximum(
            jnp.dot(qf_ref[...], qw1_ref[...], preferred_element_type=jnp.float32)
            + qb1_ref[...], 0.0)
        q_scr[...] = (jnp.dot(hq, qw2_ref[...], preferred_element_type=jnp.float32)
                      + qb2_ref[...])

    query = q_scr[...]
    n_q = query.shape[0]

    # ---- prediction heads on the incoming query (as in the torch loop) ----
    pln = pln_ref[...]
    emb, cls = _pred_heads(query, pln, hw1_ref[...], hb1_ref[...],
                           mew_ref[...], meb_ref[...], csw_ref[...], csb_ref[...], d)
    emb_ref[s] = emb
    cls_ref[s] = cls

    # ---- lin_squeeze on this level's (padded) instance features ----
    inst = (jnp.dot(inst_ref[0], sqw_ref[0], preferred_element_type=jnp.float32)
            + sqb_ref[0])
    n_inst = ninst_ref[lids_ref[s]]
    kmask = lax.broadcasted_iota(jnp.int32, (n_q, inst.shape[0]), 1) < n_inst

    ln = ln_ref[0]                                   # (6, d): cross g/b, self g/b, ffn g/b

    # ---- cross attention + residual + post-norm (pe=None) ----
    attn = _mha(query, inst, aiw_ref[0], aib_ref[0], aow_ref[0], aob_ref[0],
                nhead=nhead, dh=dh, key_mask=kmask, same_qkv=False)
    query = _layer_norm(attn + query, ln[0:1], ln[1:2])

    # ---- self attention + residual + post-norm (q = k = v = query) ----
    attn = _mha(query, query, aiw_ref[1], aib_ref[1], aow_ref[1], aob_ref[1],
                nhead=nhead, dh=dh, key_mask=None, same_qkv=True)
    query = _layer_norm(attn + query, ln[2:3], ln[3:4])

    # ---- FFN + residual + post-norm ----
    h = jnp.maximum(
        jnp.dot(query, fw1_ref[0], preferred_element_type=jnp.float32) + fb1_ref[0], 0.0)
    ff = jnp.dot(h, fw2_ref[0], preferred_element_type=jnp.float32) + fb2_ref[0]
    query = _layer_norm(ff + query, ln[4:5], ln[5:6])

    q_scr[...] = query

    # ---- final prediction (post-loop) fused into the last step ----
    @pl.when(s == n_steps - 1)
    def _():
        emb_f, cls_f = _pred_heads(query, pln, hw1_ref[...], hb1_ref[...],
                                   mew_ref[...], meb_ref[...],
                                   csw_ref[...], csb_ref[...], d)
        emb_ref[n_steps] = emb_f
        cls_ref[n_steps] = cls_f


def _mask_matmul_kernel(emb_ref, pf_ref, out_ref):
    """masks tile = stacked mask_embeds @ point_feats_tile^T (bf16, f32 accum)."""
    out_ref[...] = lax.dot_general(
        emb_ref[...], pf_ref[...], (((1,), (1,)), ((), ())),
        preferred_element_type=jnp.float32)


# -------------------------------- wrappers ------------------------------------

def mask_mlp(input_feats, mp, d):
    n_vox, cin = input_feats.shape
    tv = 512
    if n_vox <= tv:
        n_pad = _round_up(n_vox, 16)
        tv = n_pad
    else:
        n_pad = _round_up(n_vox, tv)
    x = input_feats.astype(jnp.bfloat16)
    if n_pad != n_vox:
        x = jnp.pad(x, ((0, n_pad - n_vox), (0, 0)))
    w1 = mp["w1"].astype(jnp.bfloat16)
    w2 = mp["w2"].astype(jnp.bfloat16)
    out = pl.pallas_call(
        _mask_mlp_kernel,
        out_shape=jax.ShapeDtypeStruct((n_pad, d), jnp.bfloat16),
        grid=(n_pad // tv,),
        in_specs=[pl.BlockSpec((tv, cin), lambda i: (i, 0)),
                  pl.BlockSpec((cin, d), lambda i: (0, 0)),
                  pl.BlockSpec((1, d), lambda i: (0, 0)),
                  pl.BlockSpec((d, d), lambda i: (0, 0)),
                  pl.BlockSpec((1, d), lambda i: (0, 0))],
        out_specs=pl.BlockSpec((tv, d), lambda i: (i, 0)),
        compiler_params=pltpu.CompilerParams(dimension_semantics=("parallel",)),
    )(x, w1, mp["b1"], w2, mp["b2"])
    return out[:n_vox]


def decoder(params, cfg, query_feats, inst_stack, n_inst_tbl):
    L = cfg["num_layer"]
    n_steps = cfg["num_decode"] * L
    n_pred = n_steps + 1
    d = cfg["d_model"]
    nhead = cfg["nhead"]
    hid = cfg["hidden_dim"]
    nc2 = cfg["num_class"] + 2
    n_q, cin = query_feats.shape
    max_ip, max_c = inst_stack.shape[1], inst_stack.shape[2]

    layer_ids = jnp.arange(n_steps, dtype=jnp.int32) % L

    def const_spec(*blk):
        n = len(blk)
        return pl.BlockSpec(blk, lambda s, lids, nins: (0,) * n)

    def layer_spec(*blk):
        n = len(blk)
        return pl.BlockSpec(blk, lambda s, lids, nins: (lids[s],) + (0,) * (n - 1))

    in_specs = [
        const_spec(n_q, cin),                                  # query_feats
        const_spec(cin, d), const_spec(1, d),
        const_spec(d, d), const_spec(1, d),                    # query_layer MLP
        layer_spec(1, max_ip, max_c),                          # inst_stack
        layer_spec(1, max_c, d), layer_spec(1, 1, d),          # lin_squeeze
        layer_spec(2, 3 * d, d), layer_spec(2, 3 * d, 1),      # attn in-proj (cross,self)
        layer_spec(2, d, d), layer_spec(2, 1, d),              # attn out-proj (cross,self)
        layer_spec(1, 6, d),                                   # LN slab
        layer_spec(1, d, hid), layer_spec(1, 1, hid),          # FFN
        layer_spec(1, hid, d), layer_spec(1, 1, d),
        const_spec(2, d),                                      # out_norm
        const_spec(3 * d, d), const_spec(3 * d, 1),            # packed head L1
        const_spec(d, d), const_spec(1, d),                    # mask_embed L2
        const_spec(2 * d, nc2), const_spec(1, nc2),            # cls|score L2
    ]
    out_specs = (const_spec(n_pred, n_q, d), const_spec(n_pred, n_q, nc2))

    kernel = functools.partial(_decoder_kernel, d=d, nhead=nhead, n_steps=n_steps)
    emb, cls = pl.pallas_call(
        kernel,
        out_shape=(jax.ShapeDtypeStruct((n_pred, n_q, d), jnp.float32),
                   jax.ShapeDtypeStruct((n_pred, n_q, nc2), jnp.float32)),
        grid_spec=pltpu.PrefetchScalarGridSpec(
            num_scalar_prefetch=2,
            grid=(n_steps,),
            in_specs=in_specs,
            out_specs=out_specs,
            scratch_shapes=[pltpu.VMEM((n_q, d), jnp.float32)]),
        compiler_params=pltpu.CompilerParams(dimension_semantics=("arbitrary",)),
    )(layer_ids, n_inst_tbl,
      query_feats,
      params["query_layer"]["w1"], params["query_layer"]["b1"],
      params["query_layer"]["w2"], params["query_layer"]["b2"],
      inst_stack, params["sq_w"], params["sq_b"],
      params["attn_in_wT"], params["attn_in_b"],
      params["attn_out_w"], params["attn_out_b"],
      params["ln_slab"],
      params["ffn_w1"], params["ffn_b1"], params["ffn_w2"], params["ffn_b2"],
      params["pred"]["ln"], params["pred"]["w1T"], params["pred"]["b1"],
      params["pred"]["w2_me"], params["pred"]["b2_me"],
      params["pred"]["w2_cs"], params["pred"]["b2_cs"])
    return emb, cls


def mask_matmul(embeds, point_feats):
    n_pred, n_q, d = embeds.shape
    n_pts = point_feats.shape[0]
    m = n_pred * n_q
    m_pad = _round_up(m, 8)
    emb = embeds.reshape(m, d).astype(jnp.bfloat16)
    if m_pad != m:
        emb = jnp.pad(emb, ((0, m_pad - m), (0, 0)))
    tp = 512                                 # lane-dense (multiple of 128) point tile
    n_pts_pad = _round_up(n_pts, 128)
    if n_pts_pad <= tp:
        tp = n_pts_pad
    else:
        n_pts_pad = _round_up(n_pts_pad, tp)
    pf = point_feats.astype(jnp.bfloat16)
    if n_pts_pad != n_pts:
        pf = jnp.pad(pf, ((0, n_pts_pad - n_pts), (0, 0)))
    out = pl.pallas_call(
        _mask_matmul_kernel,
        out_shape=jax.ShapeDtypeStruct((m_pad, n_pts_pad), jnp.float32),
        grid=(n_pts_pad // tp,),
        in_specs=[pl.BlockSpec((m_pad, d), lambda i: (0, 0)),
                  pl.BlockSpec((tp, d), lambda i: (i, 0))],
        out_specs=pl.BlockSpec((m_pad, tp), lambda i: (0, i)),
        compiler_params=pltpu.CompilerParams(dimension_semantics=("parallel",)),
    )(emb, pf)
    return out[:m, :n_pts].reshape(n_pred, n_q, n_pts)


# ------------------------------- full forward ---------------------------------

def forward(params, cfg, input_feats, query_feats, v2p_map, aux_feats):
    """
    input_feats : [N_vox, in_channel]  voxels of the selected batch
    query_feats : [n_q, in_channel]
    v2p_map     : [N_pts] int32 voxel index per point
    aux_feats   : per-level instance features (already batch-filtered);
                  aux_feats[i] is used at cycle step i (== aux_out[-(num_layer-i)]).
    """
    d = cfg["d_model"]
    nc = cfg["num_class"]

    # 1) mask_layer MLP (row-tiled, bf16, 'parallel' grid)
    mask_feats = mask_mlp(input_feats, params["mask_layer"], d)      # (N_vox, d) bf16

    # 2) loop-invariant voxel->point gather (plain XLA glue, runs once).
    # TODO(synk): the multi-batch torch.where scatter of pred_masks and the spconv
    # SparseAvgPool3d attention-mask pooling (attn_mask=True path) have no clean
    # Pallas equivalent; with attn_mask=False and a single batch they reduce to
    # this row gather / identity.
    point_feats = jnp.take(mask_feats, v2p_map, axis=0)              # (N_pts, d) bf16

    # 3) pad + stack per-level instance features (consumed by cycle step i);
    #    padded key rows are masked out of the cross-attention softmax.
    max_c = max(cfg["block_channels"])
    max_ip = _round_up(max(f.shape[0] for f in aux_feats), 8)
    inst_stack = jnp.stack([
        jnp.pad(f, ((0, max_ip - f.shape[0]), (0, max_c - f.shape[1])))
        for f in aux_feats])                                          # (L, max_ip, max_c)
    n_inst_tbl = jnp.array([f.shape[0] for f in aux_feats], jnp.int32)

    # 4) ONE fused decoder-loop kernel: query never leaves VMEM between steps.
    embeds, cls = decoder(params, cfg, query_feats, inst_stack, n_inst_tbl)

    # 5) production-scale mask matmul, tiled over points, lane-dense output.
    masks_all = mask_matmul(embeds, point_feats)                      # (n_pred, n_q, N_pts)

    n_pred = embeds.shape[0]
    labels = [cls[p, :, :nc + 1] for p in range(n_pred)]
    scores = [cls[p, :, nc + 1:] for p in range(n_pred)]
    masks = [masks_all[p] for p in range(n_pred)]
    return dict(labels=labels, scores=scores, masks=masks)


# --------------------------------- params --------------------------------------

def xavier(key, fan_in, fan_out, shape=None):
    lim = math.sqrt(6.0 / (fan_in + fan_out))
    if shape is None:
        shape = (fan_in, fan_out)
    return jax.random.uniform(key, shape, jnp.float32, -lim, lim)


def init_params(key, cfg):
    d, hid, cin = cfg["d_model"], cfg["hidden_dim"], cfg["in_channel"]
    nc, L = cfg["num_class"], cfg["num_layer"]
    bc = cfg["block_channels"]
    assert d % cfg["nhead"] == 0
    keys = iter(jax.random.split(key, 256))
    nk = lambda: next(keys)

    def mlp2(din, dhid, dout):
        return {"w1": xavier(nk(), din, dhid),
                "b1": jnp.zeros((1, dhid), jnp.float32),
                "w2": xavier(nk(), dhid, dout),
                "b2": jnp.zeros((1, dout), jnp.float32)}

    # nn.MultiheadAttention weights stored for the fused kernel:
    #   in_wT (3d, d) torch in_proj layout, in_b (3d, 1), out_w (d, d) math layout.
    def attn_block():
        return (xavier(nk(), d, 3 * d, shape=(3 * d, d)),
                jnp.zeros((3 * d, 1), jnp.float32),
                xavier(nk(), d, d),
                jnp.zeros((1, d), jnp.float32))

    attn_in_wT, attn_in_b, attn_out_w, attn_out_b = [], [], [], []
    ln_slab, ffn_w1, ffn_b1, ffn_w2, ffn_b2 = [], [], [], [], []
    for _ in range(L):
        for _ in range(2):                    # cross, then self
            w, b, ow, ob = attn_block()
            attn_in_wT.append(w); attn_in_b.append(b)
            attn_out_w.append(ow); attn_out_b.append(ob)
        ln_slab.append(jnp.concatenate(
            [jnp.ones((1, d), jnp.float32), jnp.zeros((1, d), jnp.float32)] * 3,
            axis=0))                          # rows: cross g/b, self g/b, ffn g/b
        ffn_w1.append(xavier(nk(), d, hid))
        ffn_b1.append(jnp.zeros((1, hid), jnp.float32))
        ffn_w2.append(xavier(nk(), hid, d))
        ffn_b2.append(jnp.zeros((1, d), jnp.float32))

    # lin_squeeze[li] is applied at cycle step i = L-1-li; store already ordered
    # by cycle step and row-padded to max(block_channels) (zero rows => exact).
    max_c = max(bc)
    raw_sq = [xavier(nk(), bc[li], d) for li in range(L)]
    sq_w, sq_b = [], []
    for i in range(L):
        w = raw_sq[L - 1 - i]
        sq_w.append(jnp.pad(w, ((0, max_c - w.shape[0]), (0, 0)))[None])
        sq_b.append(jnp.zeros((1, 1, d), jnp.float32))

    # Prediction heads: packed (3d, d) first layer [me; cls; score] (torch layout);
    # second layers contract only over their own d-wide hidden slice.
    me1 = xavier(nk(), d, d)
    mc1 = xavier(nk(), d, d)
    ms1 = xavier(nk(), d, d)
    me2 = xavier(nk(), d, d)
    mc2 = xavier(nk(), d, nc + 1)
    ms2 = xavier(nk(), d, 1)
    w2_cs = jnp.concatenate([
        jnp.concatenate([mc2, jnp.zeros((d, 1), jnp.float32)], axis=1),
        jnp.concatenate([jnp.zeros((d, nc + 1), jnp.float32), ms2], axis=1)],
        axis=0)                                                     # (2d, nc+2)
    pred = {"ln": jnp.concatenate([jnp.ones((1, d), jnp.float32),
                                   jnp.zeros((1, d), jnp.float32)], axis=0),
            "w1T": jnp.concatenate([me1, mc1, ms1], axis=0),        # (3d, d)
            "b1": jnp.zeros((3 * d, 1), jnp.float32),
            "w2_me": me2, "b2_me": jnp.zeros((1, d), jnp.float32),
            "w2_cs": w2_cs, "b2_cs": jnp.zeros((1, nc + 2), jnp.float32)}

    return {
        "query_layer": mlp2(cin, d, d),
        "mask_layer": mlp2(cin, d, d),
        "pred": pred,
        "attn_in_wT": jnp.stack(attn_in_wT),    # (2L, 3d, d)
        "attn_in_b": jnp.stack(attn_in_b),      # (2L, 3d, 1)
        "attn_out_w": jnp.stack(attn_out_w),    # (2L, d, d)
        "attn_out_b": jnp.stack(attn_out_b),    # (2L, 1, d)
        "ln_slab": jnp.stack(ln_slab),          # (L, 6, d)
        "ffn_w1": jnp.stack(ffn_w1),            # (L, d, hid)
        "ffn_b1": jnp.stack(ffn_b1),            # (L, 1, hid)
        "ffn_w2": jnp.stack(ffn_w2),            # (L, hid, d)
        "ffn_b2": jnp.stack(ffn_b2),            # (L, 1, d)
        "sq_w": jnp.concatenate(sq_w, axis=0),  # (L, max_c, d)
        "sq_b": jnp.concatenate(sq_b, axis=0),  # (L, 1, d)
    }


# ----------------------------------- main ---------------------------------------

if __name__ == "__main__":
    cfg = dict(block_channels=(24, 48), num_decode=1, num_layer=2, num_class=3,
               in_channel=16, d_model=32, nhead=4, hidden_dim=64)

    key = jax.random.PRNGKey(0)
    k_in, k_q, k_v2p, k_a0, k_a1, k_param = jax.random.split(key, 6)

    n_vox, n_pts, n_q = 64, 96, 8
    input_feats = jax.random.normal(k_in, (n_vox, cfg["in_channel"]), jnp.float32)
    query_feats = jax.random.normal(k_q, (n_q, cfg["in_channel"]), jnp.float32)
    v2p_map = jax.random.randint(k_v2p, (n_pts,), 0, n_vox)
    # aux_out features (already filtered to batch_idx):
    # aux_out[-2] -> block_channels[1] channels, aux_out[-1] -> block_channels[0]
    aux_feats = [
        jax.random.normal(k_a0, (40, cfg["block_channels"][1]), jnp.float32),
        jax.random.normal(k_a1, (56, cfg["block_channels"][0]), jnp.float32),
    ]

    params = init_params(k_param, cfg)

    run = jax.jit(lambda p, xi, xq, v, a: forward(p, cfg, xi, xq, v, a))
    out = run(params, input_feats, query_feats, v2p_map, aux_feats)
    jax.block_until_ready(out)

    n_pred = cfg["num_decode"] * cfg["num_layer"] + 1
    assert len(out["labels"]) == n_pred
    assert out["labels"][0].shape == (n_q, cfg["num_class"] + 1)
    assert out["scores"][0].shape == (n_q, 1)
    assert out["masks"][0].shape == (n_q, n_pts)
    print("KERNEL_OK")
</pallas_src>

<mosaic_0001>
module attributes {stable_mosaic.version = 11 : i64} {
  func.func @_decoder_kernel(%arg0: i32, %arg1: memref<2xi32, #tpu.memory_space<smem>>, %arg2: memref<2xi32, #tpu.memory_space<smem>>, %arg3: memref<8x16xf32, #tpu.memory_space<vmem>>, %arg4: memref<16x32xf32, #tpu.memory_space<vmem>>, %arg5: memref<1x32xf32, #tpu.memory_space<vmem>>, %arg6: memref<32x32xf32, #tpu.memory_space<vmem>>, %arg7: memref<1x32xf32, #tpu.memory_space<vmem>>, %arg8: memref<1x56x48xf32, #tpu.memory_space<vmem>>, %arg9: memref<1x48x32xf32, #tpu.memory_space<vmem>>, %arg10: memref<1x1x32xf32, #tpu.memory_space<vmem>>, %arg11: memref<2x96x32xf32, #tpu.memory_space<vmem>>, %arg12: memref<2x96x1xf32, #tpu.memory_space<vmem>>, %arg13: memref<2x32x32xf32, #tpu.memory_space<vmem>>, %arg14: memref<2x1x32xf32, #tpu.memory_space<vmem>>, %arg15: memref<1x6x32xf32, #tpu.memory_space<vmem>>, %arg16: memref<1x32x64xf32, #tpu.memory_space<vmem>>, %arg17: memref<1x1x64xf32, #tpu.memory_space<vmem>>, %arg18: memref<1x64x32xf32, #tpu.memory_space<vmem>>, %arg19: memref<1x1x32xf32, #tpu.memory_space<vmem>>, %arg20: memref<2x32xf32, #tpu.memory_space<vmem>>, %arg21: memref<96x32xf32, #tpu.memory_space<vmem>>, %arg22: memref<96x1xf32, #tpu.memory_space<vmem>>, %arg23: memref<32x32xf32, #tpu.memory_space<vmem>>, %arg24: memref<1x32xf32, #tpu.memory_space<vmem>>, %arg25: memref<64x5xf32, #tpu.memory_space<vmem>>, %arg26: memref<1x5xf32, #tpu.memory_space<vmem>>, %arg27: memref<3x8x32xf32, #tpu.memory_space<vmem>>, %arg28: memref<3x8x5xf32, #tpu.memory_space<vmem>>, %arg29: memref<8x32xf32, #tpu.memory_space<vmem>>) attributes {dimension_semantics = [#tpu.dimension_semantics<arbitrary>], iteration_bounds = array<i64: 2>, scalar_prefetch = 2 : i64, scratch_operands = 1 : i64, tpu.core_type = #tpu.core_type<tc>, window_params = [{pipeline_mode = #tpu.pipeline_mode<synchronous>, transform_indices = @transform_0, window_bounds = array<i64: 8, 16>}, {pipeline_mode = #tpu.pipeline_mode<synchronous>, transform_indices = @transform_1, window_bounds = array<i64: 16, 32>}, {pipeline_mode = #tpu.pipeline_mode<synchronous>, transform_indices = @transform_2, window_bounds = array<i64: 1, 32>}, {pipeline_mode = #tpu.pipeline_mode<synchronous>, transform_indices = @transform_3, window_bounds = array<i64: 32, 32>}, {pipeline_mode = #tpu.pipeline_mode<synchronous>, transform_indices = @transform_4, window_bounds = array<i64: 1, 32>}, {transform_indices = @transform_5, window_bounds = array<i64: 1, 56, 48>}, {transform_indices = @transform_6, window_bounds = array<i64: 1, 48, 32>}, {transform_indices = @transform_7, window_bounds = array<i64: 1, 1, 32>}, {transform_indices = @transform_8, window_bounds = array<i64: 2, 96, 32>}, {transform_indices = @transform_9, window_bounds = array<i64: 2, 96, 1>}, {transform_indices = @transform_10, window_bounds = array<i64: 2, 32, 32>}, {transform_indices = @transform_11, window_bounds = array<i64: 2, 1, 32>}, {transform_indices = @transform_12, window_bounds = array<i64: 1, 6, 32>}, {transform_indices = @transform_13, window_bounds = array<i64: 1, 32, 64>}, {transform_indices = @transform_14, window_bounds = array<i64: 1, 1, 64>}, {transform_indices = @transform_15, window_bounds = array<i64: 1, 64, 32>}, {transform_indices = @transform_16, window_bounds = array<i64: 1, 1, 32>}, {pipeline_mode = #tpu.pipeline_mode<synchronous>, transform_indices = @transform_17, window_bounds = array<i64: 2, 32>}, {pipeline_mode = #tpu.pipeline_mode<synchronous>, transform_indices = @transform_18, window_bounds = array<i64: 96, 32>}, {pipeline_mode = #tpu.pipeline_mode<synchronous>, transform_indices = @transform_19, window_bounds = array<i64: 96, 1>}, {pipeline_mode = #tpu.pipeline_mode<synchronous>, transform_indices = @transform_20, window_bounds = array<i64: 32, 32>}, {pipeline_mode = #tpu.pipeline_mode<synchronous>, transform_indices = @transform_21, window_bounds = array<i64: 1, 32>}, {pipeline_mode = #tpu.pipeline_mode<synchronous>, transform_indices = @transform_22, window_bounds = array<i64: 64, 5>}, {pipeline_mode = #tpu.pipeline_mode<synchronous>, transform_indices = @transform_23, window_bounds = array<i64: 1, 5>}, {pipeline_mode = #tpu.pipeline_mode<synchronous>, transform_indices = @transform_24, window_bounds = array<i64: 3, 8, 32>}, {pipeline_mode = #tpu.pipeline_mode<synchronous>, transform_indices = @transform_25, window_bounds = array<i64: 3, 8, 5>}]} {
    %c0_i32 = arith.constant 0 : i32
    %0 = arith.cmpi eq, %arg0, %c0_i32 : i32
    %1 = arith.extui %0 : i1 to i32
    %c0_i32_0 = arith.constant 0 : i32
    %2 = arith.cmpi ne, %1, %c0_i32_0 : i32
    scf.if %2 {
      %c0_152 = arith.constant 0 : index
      %c0_153 = arith.constant 0 : index
      %373 = vector.load %arg3[%c0_152, %c0_153] : memref<8x16xf32, #tpu.memory_space<vmem>>, vector<8x16xf32>
      %c0_154 = arith.constant 0 : index
      %c0_155 = arith.constant 0 : index
      %374 = vector.load %arg4[%c0_154, %c0_155] : memref<16x32xf32, #tpu.memory_space<vmem>>, vector<16x32xf32>
      %cst_156 = arith.constant dense<0.000000e+00> : vector<8x32xf32>
      %375 = tpu.matmul %373, %374, %cst_156 {dimension_numbers = #tpu.dot_dimension_numbers<[1], [0], [0], [1], [0, 0, 1, 1], [], []>} : vector<8x16xf32>, vector<16x32xf32>, vector<8x32xf32> -> vector<8x32xf32>
      %c0_157 = arith.constant 0 : index
      %c0_158 = arith.constant 0 : index
      %376 = vector.load %arg5[%c0_157, %c0_158] : memref<1x32xf32, #tpu.memory_space<vmem>>, vector<1x32xf32>
      %377 = vector.broadcast %376 : vector<1x32xf32> to vector<8x32xf32>
      %378 = arith.addf %375, %377 : vector<8x32xf32>
      %cst_159 = arith.constant 0.000000e+00 : f32
      %379 = vector.broadcast %cst_159 : f32 to vector<8x32xf32>
      %380 = arith.maximumf %378, %379 : vector<8x32xf32>
      %c0_160 = arith.constant 0 : index
      %c0_161 = arith.constant 0 : index
      %381 = vector.load %arg6[%c0_160, %c0_161] : memref<32x32xf32, #tpu.memory_space<vmem>>, vector<32x32xf32>
      %cst_162 = arith.constant dense<0.000000e+00> : vector<8x32xf32>
      %382 = tpu.matmul %380, %381, %cst_162 {dimension_numbers = #tpu.dot_dimension_numbers<[1], [0], [0], [1], [0, 0, 1, 1], [], []>} : vector<8x32xf32>, vector<32x32xf32>, vector<8x32xf32> -> vector<8x32xf32>
      %c0_163 = arith.constant 0 : index
      %c0_164 = arith.constant 0 : index
      %383 = vector.load %arg7[%c0_163, %c0_164] : memref<1x32xf32, #tpu.memory_space<vmem>>, vector<1x32xf32>
      %384 = vector.broadcast %383 : vector<1x32xf32> to vector<8x32xf32>
      %385 = arith.addf %382, %384 : vector<8x32xf32>
      %c0_165 = arith.constant 0 : index
      %c0_166 = arith.constant 0 : index
      %386 = vector.load %arg29[%c0_165, %c0_166] : memref<8x32xf32, #tpu.memory_space<vmem>>, vector<8x32xf32>
      tpu.vector_store %arg29[%c0_165, %c0_166], %385 {strides = array<i32>} : memref<8x32xf32, #tpu.memory_space<vmem>>, vector<8x32xf32>,
    } else {
    }
    %c0 = arith.constant 0 : index
    %c0_1 = arith.constant 0 : index
    %3 = vector.load %arg29[%c0, %c0_1] : memref<8x32xf32, #tpu.memory_space<vmem>>, vector<8x32xf32>
    %c0_2 = arith.constant 0 : index
    %c0_3 = arith.constant 0 : index
    %4 = vector.load %arg20[%c0_2, %c0_3] : memref<2x32xf32, #tpu.memory_space<vmem>>, vector<2x32xf32>
    %c0_4 = arith.constant 0 : index
    %c0_5 = arith.constant 0 : index
    %5 = vector.load %arg21[%c0_4, %c0_5] : memref<96x32xf32, #tpu.memory_space<vmem>>, vector<96x32xf32>
    %c0_6 = arith.constant 0 : index
    %c0_7 = arith.constant 0 : index
    %6 = vector.load %arg22[%c0_6, %c0_7] : memref<96x1xf32, #tpu.memory_space<vmem>>, vector<96x1xf32>
    %c0_8 = arith.constant 0 : index
    %c0_9 = arith.constant 0 : index
    %7 = vector.load %arg23[%c0_8, %c0_9] : memref<32x32xf32, #tpu.memory_space<vmem>>, vector<32x32xf32>
    %c0_10 = arith.constant 0 : index
    %c0_11 = arith.constant 0 : index
    %8 = vector.load %arg24[%c0_10, %c0_11] : memref<1x32xf32, #tpu.memory_space<vmem>>, vector<1x32xf32>
    %c0_12 = arith.constant 0 : index
    %c0_13 = arith.constant 0 : index
    %9 = vector.load %arg25[%c0_12, %c0_13] : memref<64x5xf32, #tpu.memory_space<vmem>>, vector<64x5xf32>
    %c0_14 = arith.constant 0 : index
    %c0_15 = arith.constant 0 : index
    %10 = vector.load %arg26[%c0_14, %c0_15] : memref<1x5xf32, #tpu.memory_space<vmem>>, vector<1x5xf32>
    %11 = vector.extract_strided_slice %4 {offsets = [0, 0], sizes = [1, 32], strides = [1, 1]} : vector<2x32xf32> to vector<1x32xf32>
    %12 = vector.extract_strided_slice %4 {offsets = [1, 0], sizes = [1, 32], strides = [1, 1]} : vector<2x32xf32> to vector<1x32xf32>
    %cst = arith.constant dense<0.000000e+00> : vector<8xf32>
    %13 = vector.multi_reduction <add>, %3, %cst [1] : vector<8x32xf32> to vector<8xf32>
    %14 = vector.shape_cast %13 : vector<8xf32> to vector<8x1xf32>
    %cst_16 = arith.constant 3.200000e+01 : f32
    %15 = vector.broadcast %cst_16 : f32 to vector<8x1xf32>
    %16 = arith.divf %14, %15 : vector<8x1xf32>
    %17 = vector.broadcast %16 : vector<8x1xf32> to vector<8x32xf32>
    %18 = arith.subf %3, %17 : vector<8x32xf32>
    %19 = arith.mulf %18, %18 : vector<8x32xf32>
    %cst_17 = arith.constant dense<0.000000e+00> : vector<8xf32>
    %20 = vector.multi_reduction <add>, %19, %cst_17 [1] : vector<8x32xf32> to vector<8xf32>
    %21 = vector.shape_cast %20 : vector<8xf32> to vector<8x1xf32>
    %cst_18 = arith.constant 3.200000e+01 : f32
    %22 = vector.broadcast %cst_18 : f32 to vector<8x1xf32>
    %23 = arith.divf %21, %22 : vector<8x1xf32>
    %24 = vector.broadcast %16 : vector<8x1xf32> to vector<8x32xf32>
    %25 = arith.subf %3, %24 : vector<8x32xf32>
    %cst_19 = arith.constant 9.99999974E-6 : f32
    %26 = vector.broadcast %cst_19 : f32 to vector<8x1xf32>
    %27 = arith.addf %23, %26 : vector<8x1xf32>
    %28 = math.rsqrt %27 : vector<8x1xf32>
    %29 = vector.broadcast %28 : vector<8x1xf32> to vector<8x32xf32>
    %30 = arith.mulf %25, %29 : vector<8x32xf32>
    %31 = vector.broadcast %11 : vector<1x32xf32> to vector<8x32xf32>
    %32 = arith.mulf %30, %31 : vector<8x32xf32>
    %33 = vector.broadcast %12 : vector<1x32xf32> to vector<8x32xf32>
    %34 = arith.addf %32, %33 : vector<8x32xf32>
    %cst_20 = arith.constant dense<0.000000e+00> : vector<96x8xf32>
    %35 = tpu.matmul %5, %34, %cst_20 {dimension_numbers = #tpu.dot_dimension_numbers<[1], [1], [0], [0], [0, 0, 1, 0], [], []>} : vector<96x32xf32>, vector<8x32xf32>, vector<96x8xf32> -> vector<96x8xf32>
    %36 = vector.broadcast %6 : vector<96x1xf32> to vector<96x8xf32>
    %37 = arith.addf %35, %36 : vector<96x8xf32>
    %cst_21 = arith.constant 0.000000e+00 : f32
    %38 = vector.broadcast %cst_21 : f32 to vector<96x8xf32>
    %39 = arith.maximumf %37, %38 : vector<96x8xf32>
    %40 = vector.extract_strided_slice %39 {offsets = [0, 0], sizes = [32, 8], strides = [1, 1]} : vector<96x8xf32> to vector<32x8xf32>
    %cst_22 = arith.constant dense<0.000000e+00> : vector<8x32xf32>
    %41 = tpu.matmul %40, %7, %cst_22 {dimension_numbers = #tpu.dot_dimension_numbers<[0], [0], [1], [1], [0, 1, 1, 1], [], []>} : vector<32x8xf32>, vector<32x32xf32>, vector<8x32xf32> -> vector<8x32xf32>
    %42 = vector.broadcast %8 : vector<1x32xf32> to vector<8x32xf32>
    %43 = arith.addf %41, %42 : vector<8x32xf32>
    %44 = vector.extract_strided_slice %39 {offsets = [32, 0], sizes = [64, 8], strides = [1, 1]} : vector<96x8xf32> to vector<64x8xf32>
    %cst_23 = arith.constant dense<0.000000e+00> : vector<8x5xf32>
    %45 = tpu.matmul %44, %9, %cst_23 {dimension_numbers = #tpu.dot_dimension_numbers<[0], [0], [1], [1], [0, 1, 1, 1], [], []>} : vector<64x8xf32>, vector<64x5xf32>, vector<8x5xf32> -> vector<8x5xf32>
    %46 = vector.broadcast %10 : vector<1x5xf32> to vector<8x5xf32>
    %47 = arith.addf %45, %46 : vector<8x5xf32>
    %48 = arith.index_cast %arg0 : i32 to index
    %c0_24 = arith.constant 0 : index
    %c0_25 = arith.constant 0 : index
    %49 = vector.load %arg27[%48, %c0_24, %c0_25] : memref<3x8x32xf32, #tpu.memory_space<vmem>>, vector<1x8x32xf32>
    %50 = vector.shape_cast %49 : vector<1x8x32xf32> to vector<8x32xf32>
    %51 = vector.shape_cast %43 : vector<8x32xf32> to vector<1x8x32xf32>
    tpu.vector_store %arg27[%48, %c0_24, %c0_25], %51 {strides = array<i32>} : memref<3x8x32xf32, #tpu.memory_space<vmem>>, vector<1x8x32xf32>,
    %52 = arith.index_cast %arg0 : i32 to index
    %c0_26 = arith.constant 0 : index
    %c0_27 = arith.constant 0 : index
    %53 = vector.load %arg28[%52, %c0_26, %c0_27] : memref<3x8x5xf32, #tpu.memory_space<vmem>>, vector<1x8x5xf32>
    %54 = vector.shape_cast %53 : vector<1x8x5xf32> to vector<8x5xf32>
    %55 = vector.shape_cast %47 : vector<8x5xf32> to vector<1x8x5xf32>
    tpu.vector_store %arg28[%52, %c0_26, %c0_27], %55 {strides = array<i32>} : memref<3x8x5xf32, #tpu.memory_space<vmem>>, vector<1x8x5xf32>,
    %c0_28 = arith.constant 0 : index
    %c0_29 = arith.constant 0 : index
    %c0_30 = arith.constant 0 : index
    %56 = vector.load %arg8[%c0_28, %c0_29, %c0_30] : memref<1x56x48xf32, #tpu.memory_space<vmem>>, vector<1x56x48xf32>
    %57 = vector.shape_cast %56 : vector<1x56x48xf32> to vector<56x48xf32>
    %c0_31 = arith.constant 0 : index
    %c0_32 = arith.constant 0 : index
    %c0_33 = arith.constant 0 : index
    %58 = vector.load %arg9[%c0_31, %c0_32, %c0_33] : memref<1x48x32xf32, #tpu.memory_space<vmem>>, vector<1x48x32xf32>
    %59 = vector.shape_cast %58 : vector<1x48x32xf32> to vector<48x32xf32>
    %cst_34 = arith.constant dense<0.000000e+00> : vector<56x32xf32>
    %60 = tpu.matmul %57, %59, %cst_34 {dimension_numbers = #tpu.dot_dimension_numbers<[1], [0], [0], [1], [0, 0, 1, 1], [], []>} : vector<56x48xf32>, vector<48x32xf32>, vector<56x32xf32> -> vector<56x32xf32>
    %c0_35 = arith.constant 0 : index
    %c0_36 = arith.constant 0 : index
    %c0_37 = arith.constant 0 : index
    %61 = vector.load %arg10[%c0_35, %c0_36, %c0_37] : memref<1x1x32xf32, #tpu.memory_space<vmem>>, vector<1x1x32xf32>
    %62 = vector.shape_cast %61 : vector<1x1x32xf32> to vector<1x32xf32>
    %63 = vector.broadcast %62 : vector<1x32xf32> to vector<56x32xf32>
    %64 = arith.addf %60, %63 : vector<56x32xf32>
    %65 = arith.index_cast %arg0 : i32 to index
    %66 = memref.load %arg1[%65] : memref<2xi32, #tpu.memory_space<smem>>
    %67 = arith.index_cast %66 : i32 to index
    %68 = memref.load %arg2[%67] : memref<2xi32, #tpu.memory_space<smem>>
    %69 = tpu.iota {dimensions = array<i32: 1>} : vector<8x56xi32>
    %70 = vector.broadcast %68 : i32 to vector<8x56xi32>
    %71 = arith.cmpi slt, %69, %70 : vector<8x56xi32>
    %c0_38 = arith.constant 0 : index
    %c0_39 = arith.constant 0 : index
    %c0_40 = arith.constant 0 : index
    %72 = vector.load %arg15[%c0_38, %c0_39, %c0_40] : memref<1x6x32xf32, #tpu.memory_space<vmem>>, vector<1x6x32xf32>
    %73 = vector.shape_cast %72 : vector<1x6x32xf32> to vector<6x32xf32>
    %c0_41 = arith.constant 0 : index
    %c0_42 = arith.constant 0 : index
    %c0_43 = arith.constant 0 : index
    %74 = vector.load %arg11[%c0_41, %c0_42, %c0_43] : memref<2x96x32xf32, #tpu.memory_space<vmem>>, vector<1x96x32xf32>
    %75 = vector.shape_cast %74 : vector<1x96x32xf32> to vector<96x32xf32>
    %c0_44 = arith.constant 0 : index
    %c0_45 = arith.constant 0 : index
    %c0_46 = arith.constant 0 : index
    %76 = vector.load %arg12[%c0_44, %c0_45, %c0_46] : memref<2x96x1xf32, #tpu.memory_space<vmem>>, vector<1x96x1xf32>
    %77 = vector.shape_cast %76 : vector<1x96x1xf32> to vector<96x1xf32>
    %c0_47 = arith.constant 0 : index
    %c0_48 = arith.constant 0 : index
    %c0_49 = arith.constant 0 : index
    %78 = vector.load %arg13[%c0_47, %c0_48, %c0_49] : memref<2x32x32xf32, #tpu.memory_space<vmem>>, vector<1x32x32xf32>
    %79 = vector.shape_cast %78 : vector<1x32x32xf32> to vector<32x32xf32>
    %c0_50 = arith.constant 0 : index
    %c0_51 = arith.constant 0 : index
    %c0_52 = arith.constant 0 : index
    %80 = vector.load %arg14[%c0_50, %c0_51, %c0_52] : memref<2x1x32xf32, #tpu.memory_space<vmem>>, vector<1x1x32xf32>
    %81 = vector.shape_cast %80 : vector<1x1x32xf32> to vector<1x32xf32>
    %82 = vector.extract_strided_slice %75 {offsets = [0, 0], sizes = [32, 32], strides = [1, 1]} : vector<96x32xf32> to vector<32x32xf32>
    %cst_53 = arith.constant dense<0.000000e+00> : vector<32x8xf32>
    %83 = tpu.matmul %82, %3, %cst_53 {dimension_numbers = #tpu.dot_dimension_numbers<[1], [1], [0], [0], [0, 0, 1, 0], [], []>} : vector<32x32xf32>, vector<8x32xf32>, vector<32x8xf32> -> vector<32x8xf32>
    %84 = vector.extract_strided_slice %77 {offsets = [0, 0], sizes = [32, 1], strides = [1, 1]} : vector<96x1xf32> to vector<32x1xf32>
    %85 = vector.broadcast %84 : vector<32x1xf32> to vector<32x8xf32>
    %86 = arith.addf %83, %85 : vector<32x8xf32>
    %87 = vector.extract_strided_slice %75 {offsets = [32, 0], sizes = [64, 32], strides = [1, 1]} : vector<96x32xf32> to vector<64x32xf32>
    %cst_54 = arith.constant dense<0.000000e+00> : vector<64x56xf32>
    %88 = tpu.matmul %87, %64, %cst_54 {dimension_numbers = #tpu.dot_dimension_numbers<[1], [1], [0], [0], [0, 0, 1, 0], [], []>} : vector<64x32xf32>, vector<56x32xf32>, vector<64x56xf32> -> vector<64x56xf32>
    %89 = vector.extract_strided_slice %77 {offsets = [32, 0], sizes = [64, 1], strides = [1, 1]} : vector<96x1xf32> to vector<64x1xf32>
    %90 = vector.broadcast %89 : vector<64x1xf32> to vector<64x56xf32>
    %91 = arith.addf %88, %90 : vector<64x56xf32>
    %92 = vector.extract_strided_slice %91 {offsets = [0, 0], sizes = [32, 56], strides = [1, 1]} : vector<64x56xf32> to vector<32x56xf32>
    %93 = vector.extract_strided_slice %91 {offsets = [32, 0], sizes = [32, 56], strides = [1, 1]} : vector<64x56xf32> to vector<32x56xf32>
    %94 = vector.extract_strided_slice %86 {offsets = [0, 0], sizes = [8, 8], strides = [1, 1]} : vector<32x8xf32> to vector<8x8xf32>
    %95 = vector.extract_strided_slice %92 {offsets = [0, 0], sizes = [8, 56], strides = [1, 1]} : vector<32x56xf32> to vector<8x56xf32>
    %cst_55 = arith.constant dense<0.000000e+00> : vector<8x56xf32>
    %96 = tpu.matmul %94, %95, %cst_55 {dimension_numbers = #tpu.dot_dimension_numbers<[0], [0], [1], [1], [0, 1, 1, 1], [], []>} : vector<8x8xf32>, vector<8x56xf32>, vector<8x56xf32> -> vector<8x56xf32>
    %cst_56 = arith.constant 0.353553385 : f32
    %97 = vector.broadcast %cst_56 : f32 to vector<8x56xf32>
    %98 = arith.mulf %96, %97 : vector<8x56xf32>
    %cst_57 = arith.constant -1.000000e+30 : f32
    %99 = vector.broadcast %cst_57 : f32 to vector<8x56xf32>
    %100 = arith.select %71, %98, %99 : vector<8x56xi1>, vector<8x56xf32>
    %cst_58 = arith.constant dense<0xFF800000> : vector<8xf32>
    %101 = vector.multi_reduction <maximumf>, %100, %cst_58 [1] : vector<8x56xf32> to vector<8xf32>
    %102 = vector.shape_cast %101 : vector<8xf32> to vector<8x1xf32>
    %103 = vector.broadcast %102 : vector<8x1xf32> to vector<8x56xf32>
    %104 = arith.subf %100, %103 : vector<8x56xf32>
    %105 = math.exp %104 : vector<8x56xf32>
    %cst_59 = arith.constant dense<0.000000e+00> : vector<8xf32>
    %106 = vector.multi_reduction <add>, %105, %cst_59 [1] : vector<8x56xf32> to vector<8xf32>
    %107 = vector.shape_cast %106 : vector<8xf32> to vector<8x1xf32>
    %108 = tpu.reciprocal %107 {approx = true} : vector<8x1xf32> -> vector<8x1xf32>
    %109 = vector.broadcast %108 : vector<8x1xf32> to vector<8x56xf32>
    %110 = arith.mulf %105, %109 : vector<8x56xf32>
    %111 = vector.extract_strided_slice %93 {offsets = [0, 0], sizes = [8, 56], strides = [1, 1]} : vector<32x56xf32> to vector<8x56xf32>
    %cst_60 = arith.constant dense<0.000000e+00> : vector<8x8xf32>
    %112 = tpu.matmul %110, %111, %cst_60 {dimension_numbers = #tpu.dot_dimension_numbers<[1], [1], [0], [0], [0, 0, 1, 0], [], []>} : vector<8x56xf32>, vector<8x56xf32>, vector<8x8xf32> -> vector<8x8xf32>
    %113 = vector.extract_strided_slice %79 {offsets = [0, 0], sizes = [8, 32], strides = [1, 1]} : vector<32x32xf32> to vector<8x32xf32>
    %cst_61 = arith.constant dense<0.000000e+00> : vector<8x32xf32>
    %114 = tpu.matmul %112, %113, %cst_61 {dimension_numbers = #tpu.dot_dimension_numbers<[1], [0], [0], [1], [0, 0, 1, 1], [], []>} : vector<8x8xf32>, vector<8x32xf32>, vector<8x32xf32> -> vector<8x32xf32>
    %115 = vector.extract_strided_slice %86 {offsets = [8, 0], sizes = [8, 8], strides = [1, 1]} : vector<32x8xf32> to vector<8x8xf32>
    %116 = vector.extract_strided_slice %92 {offsets = [8, 0], sizes = [8, 56], strides = [1, 1]} : vector<32x56xf32> to vector<8x56xf32>
    %cst_62 = arith.constant dense<0.000000e+00> : vector<8x56xf32>
    %117 = tpu.matmul %115, %116, %cst_62 {dimension_numbers = #tpu.dot_dimension_numbers<[0], [0], [1], [1], [0, 1, 1, 1], [], []>} : vector<8x8xf32>, vector<8x56xf32>, vector<8x56xf32> -> vector<8x56xf32>
    %cst_63 = arith.constant 0.353553385 : f32
    %118 = vector.broadcast %cst_63 : f32 to vector<8x56xf32>
    %119 = arith.mulf %117, %118 : vector<8x56xf32>
    %cst_64 = arith.constant -1.000000e+30 : f32
    %120 = vector.broadcast %cst_64 : f32 to vector<8x56xf32>
    %121 = arith.select %71, %119, %120 : vector<8x56xi1>, vector<8x56xf32>
    %cst_65 = arith.constant dense<0xFF800000> : vector<8xf32>
    %122 = vector.multi_reduction <maximumf>, %121, %cst_65 [1] : vector<8x56xf32> to vector<8xf32>
    %123 = vector.shape_cast %122 : vector<8xf32> to vector<8x1xf32>
    %124 = vector.broadcast %123 : vector<8x1xf32> to vector<8x56xf32>
    %125 = arith.subf %121, %124 : vector<8x56xf32>
    %126 = math.exp %125 : vector<8x56xf32>
    %cst_66 = arith.constant dense<0.000000e+00> : vector<8xf32>
    %127 = vector.multi_reduction <add>, %126, %cst_66 [1] : vector<8x56xf32> to vector<8xf32>
    %128 = vector.shape_cast %127 : vector<8xf32> to vector<8x1xf32>
    %129 = tpu.reciprocal %128 {approx = true} : vector<8x1xf32> -> vector<8x1xf32>
    %130 = vector.broadcast %129 : vector<8x1xf32> to vector<8x56xf32>
    %131 = arith.mulf %126, %130 : vector<8x56xf32>
    %132 = vector.extract_strided_slice %93 {offsets = [8, 0], sizes = [8, 56], strides = [1, 1]} : vector<32x56xf32> to vector<8x56xf32>
    %cst_67 = arith.constant dense<0.000000e+00> : vector<8x8xf32>
    %133 = tpu.matmul %131, %132, %cst_67 {dimension_numbers = #tpu.dot_dimension_numbers<[1], [1], [0], [0], [0, 0, 1, 0], [], []>} : vector<8x56xf32>, vector<8x56xf32>, vector<8x8xf32> -> vector<8x8xf32>
    %134 = vector.extract_strided_slice %79 {offsets = [8, 0], sizes = [8, 32], strides = [1, 1]} : vector<32x32xf32> to vector<8x32xf32>
    %cst_68 = arith.constant dense<0.000000e+00> : vector<8x32xf32>
    %135 = tpu.matmul %133, %134, %cst_68 {dimension_numbers = #tpu.dot_dimension_numbers<[1], [0], [0], [1], [0, 0, 1, 1], [], []>} : vector<8x8xf32>, vector<8x32xf32>, vector<8x32xf32> -> vector<8x32xf32>
    %136 = arith.addf %114, %135 : vector<8x32xf32>
    %137 = vector.extract_strided_slice %86 {offsets = [16, 0], sizes = [8, 8], strides = [1, 1]} : vector<32x8xf32> to vector<8x8xf32>
    %138 = vector.extract_strided_slice %92 {offsets = [16, 0], sizes = [8, 56], strides = [1, 1]} : vector<32x56xf32> to vector<8x56xf32>
    %cst_69 = arith.constant dense<0.000000e+00> : vector<8x56xf32>
    %139 = tpu.matmul %137, %138, %cst_69 {dimension_numbers = #tpu.dot_dimension_numbers<[0], [0], [1], [1], [0, 1, 1, 1], [], []>} : vector<8x8xf32>, vector<8x56xf32>, vector<8x56xf32> -> vector<8x56xf32>
    %cst_70 = arith.constant 0.353553385 : f32
    %140 = vector.broadcast %cst_70 : f32 to vector<8x56xf32>
    %141 = arith.mulf %139, %140 : vector<8x56xf32>
    %cst_71 = arith.constant -1.000000e+30 : f32
    %142 = vector.broadcast %cst_71 : f32 to vector<8x56xf32>
    %143 = arith.select %71, %141, %142 : vector<8x56xi1>, vector<8x56xf32>
    %cst_72 = arith.constant dense<0xFF800000> : vector<8xf32>
    %144 = vector.multi_reduction <maximumf>, %143, %cst_72 [1] : vector<8x56xf32> to vector<8xf32>
    %145 = vector.shape_cast %144 : vector<8xf32> to vector<8x1xf32>
    %146 = vector.broadcast %145 : vector<8x1xf32> to vector<8x56xf32>
    %147 = arith.subf %143, %146 : vector<8x56xf32>
    %148 = math.exp %147 : vector<8x56xf32>
    %cst_73 = arith.constant dense<0.000000e+00> : vector<8xf32>
    %149 = vector.multi_reduction <add>, %148, %cst_73 [1] : vector<8x56xf32> to vector<8xf32>
    %150 = vector.shape_cast %149 : vector<8xf32> to vector<8x1xf32>
    %151 = tpu.reciprocal %150 {approx = true} : vector<8x1xf32> -> vector<8x1xf32>
    %152 = vector.broadcast %151 : vector<8x1xf32> to vector<8x56xf32>
    %153 = arith.mulf %148, %152 : vector<8x56xf32>
    %154 = vector.extract_strided_slice %93 {offsets = [16, 0], sizes = [8, 56], strides = [1, 1]} : vector<32x56xf32> to vector<8x56xf32>
    %cst_74 = arith.constant dense<0.000000e+00> : vector<8x8xf32>
    %155 = tpu.matmul %153, %154, %cst_74 {dimension_numbers = #tpu.dot_dimension_numbers<[1], [1], [0], [0], [0, 0, 1, 0], [], []>} : vector<8x56xf32>, vector<8x56xf32>, vector<8x8xf32> -> vector<8x8xf32>
    %156 = vector.extract_strided_slice %79 {offsets = [16, 0], sizes = [8, 32], strides = [1, 1]} : vector<32x32xf32> to vector<8x32xf32>
    %cst_75 = arith.constant dense<0.000000e+00> : vector<8x32xf32>
    %157 = tpu.matmul %155, %156, %cst_75 {dimension_numbers = #tpu.dot_dimension_numbers<[1], [0], [0], [1], [0, 0, 1, 1], [], []>} : vector<8x8xf32>, vector<8x32xf32>, vector<8x32xf32> -> vector<8x32xf32>
    %158 = arith.addf %136, %157 : vector<8x32xf32>
    %159 = vector.extract_strided_slice %86 {offsets = [24, 0], sizes = [8, 8], strides = [1, 1]} : vector<32x8xf32> to vector<8x8xf32>
    %160 = vector.extract_strided_slice %92 {offsets = [24, 0], sizes = [8, 56], strides = [1, 1]} : vector<32x56xf32> to vector<8x56xf32>
    %cst_76 = arith.constant dense<0.000000e+00> : vector<8x56xf32>
    %161 = tpu.matmul %159, %160, %cst_76 {dimension_numbers = #tpu.dot_dimension_numbers<[0], [0], [1], [1], [0, 1, 1, 1], [], []>} : vector<8x8xf32>, vector<8x56xf32>, vector<8x56xf32> -> vector<8x56xf32>
    %cst_77 = arith.constant 0.353553385 : f32
    %162 = vector.broadcast %cst_77 : f32 to vector<8x56xf32>
    %163 = arith.mulf %161, %162 : vector<8x56xf32>
    %cst_78 = arith.constant -1.000000e+30 : f32
    %164 = vector.broadcast %cst_78 : f32 to vector<8x56xf32>
    %165 = arith.select %71, %163, %164 : vector<8x56xi1>, vector<8x56xf32>
    %cst_79 = arith.constant dense<0xFF800000> : vector<8xf32>
    %166 = vector.multi_reduction <maximumf>, %165, %cst_79 [1] : vector<8x56xf32> to vector<8xf32>
    %167 = vector.shape_cast %166 : vector<8xf32> to vector<8x1xf32>
    %168 = vector.broadcast %167 : vector<8x1xf32> to vector<8x56xf32>
    %169 = arith.subf %165, %168 : vector<8x56xf32>
    %170 = math.exp %169 : vector<8x56xf32>
    %cst_80 = arith.constant dense<0.000000e+00> : vector<8xf32>
    %171 = vector.multi_reduction <add>, %170, %cst_80 [1] : vector<8x56xf32> to vector<8xf32>
    %172 = vector.shape_cast %171 : vector<8xf32> to vector<8x1xf32>
    %173 = tpu.reciprocal %172 {approx = true} : vector<8x1xf32> -> vector<8x1xf32>
    %174 = vector.broadcast %173 : vector<8x1xf32> to vector<8x56xf32>
    %175 = arith.mulf %170, %174 : vector<8x56xf32>
    %176 = vector.extract_strided_slice %93 {offsets = [24, 0], sizes = [8, 56], strides = [1, 1]} : vector<32x56xf32> to vector<8x56xf32>
    %cst_81 = arith.constant dense<0.000000e+00> : vector<8x8xf32>
    %177 = tpu.matmul %175, %176, %cst_81 {dimension_numbers = #tpu.dot_dimension_numbers<[1], [1], [0], [0], [0, 0, 1, 0], [], []>} : vector<8x56xf32>, vector<8x56xf32>, vector<8x8xf32> -> vector<8x8xf32>
    %178 = vector.extract_strided_slice %79 {offsets = [24, 0], sizes = [8, 32], strides = [1, 1]} : vector<32x32xf32> to vector<8x32xf32>
    %cst_82 = arith.constant dense<0.000000e+00> : vector<8x32xf32>
    %179 = tpu.matmul %177, %178, %cst_82 {dimension_numbers = #tpu.dot_dimension_numbers<[1], [0], [0], [1], [0, 0, 1, 1], [], []>} : vector<8x8xf32>, vector<8x32xf32>, vector<8x32xf32> -> vector<8x32xf32>
    %180 = arith.addf %158, %179 : vector<8x32xf32>
    %181 = vector.broadcast %81 : vector<1x32xf32> to vector<8x32xf32>
    %182 = arith.addf %180, %181 : vector<8x32xf32>
    %183 = arith.addf %182, %3 : vector<8x32xf32>
    %184 = vector.extract_strided_slice %73 {offsets = [0, 0], sizes = [1, 32], strides = [1, 1]} : vector<6x32xf32> to vector<1x32xf32>
    %185 = vector.extract_strided_slice %73 {offsets = [1, 0], sizes = [1, 32], strides = [1, 1]} : vector<6x32xf32> to vector<1x32xf32>
    %cst_83 = arith.constant dense<0.000000e+00> : vector<8xf32>
    %186 = vector.multi_reduction <add>, %183, %cst_83 [1] : vector<8x32xf32> to vector<8xf32>
    %187 = vector.shape_cast %186 : vector<8xf32> to vector<8x1xf32>
    %cst_84 = arith.constant 3.200000e+01 : f32
    %188 = vector.broadcast %cst_84 : f32 to vector<8x1xf32>
    %189 = arith.divf %187, %188 : vector<8x1xf32>
    %190 = vector.broadcast %189 : vector<8x1xf32> to vector<8x32xf32>
    %191 = arith.subf %183, %190 : vector<8x32xf32>
    %192 = arith.mulf %191, %191 : vector<8x32xf32>
    %cst_85 = arith.constant dense<0.000000e+00> : vector<8xf32>
    %193 = vector.multi_reduction <add>, %192, %cst_85 [1] : vector<8x32xf32> to vector<8xf32>
    %194 = vector.shape_cast %193 : vector<8xf32> to vector<8x1xf32>
    %cst_86 = arith.constant 3.200000e+01 : f32
    %195 = vector.broadcast %cst_86 : f32 to vector<8x1xf32>
    %196 = arith.divf %194, %195 : vector<8x1xf32>
    %197 = vector.broadcast %189 : vector<8x1xf32> to vector<8x32xf32>
    %198 = arith.subf %183, %197 : vector<8x32xf32>
    %cst_87 = arith.constant 9.99999974E-6 : f32
    %199 = vector.broadcast %cst_87 : f32 to vector<8x1xf32>
    %200 = arith.addf %196, %199 : vector<8x1xf32>
    %201 = math.rsqrt %200 : vector<8x1xf32>
    %202 = vector.broadcast %201 : vector<8x1xf32> to vector<8x32xf32>
    %203 = arith.mulf %198, %202 : vector<8x32xf32>
    %204 = vector.broadcast %184 : vector<1x32xf32> to vector<8x32xf32>
    %205 = arith.mulf %203, %204 : vector<8x32xf32>
    %206 = vector.broadcast %185 : vector<1x32xf32> to vector<8x32xf32>
    %207 = arith.addf %205, %206 : vector<8x32xf32>
    %c1 = arith.constant 1 : index
    %c0_88 = arith.constant 0 : index
    %c0_89 = arith.constant 0 : index
    %208 = vector.load %arg11[%c1, %c0_88, %c0_89] : memref<2x96x32xf32, #tpu.memory_space<vmem>>, vector<1x96x32xf32>
    %209 = vector.shape_cast %208 : vector<1x96x32xf32> to vector<96x32xf32>
    %c1_90 = arith.constant 1 : index
    %c0_91 = arith.constant 0 : index
    %c0_92 = arith.constant 0 : index
    %210 = vector.load %arg12[%c1_90, %c0_91, %c0_92] : memref<2x96x1xf32, #tpu.memory_space<vmem>>, vector<1x96x1xf32>
    %211 = vector.shape_cast %210 : vector<1x96x1xf32> to vector<96x1xf32>
    %c1_93 = arith.constant 1 : index
    %c0_94 = arith.constant 0 : index
    %c0_95 = arith.constant 0 : index
    %212 = vector.load %arg13[%c1_93, %c0_94, %c0_95] : memref<2x32x32xf32, #tpu.memory_space<vmem>>, vector<1x32x32xf32>
    %213 = vector.shape_cast %212 : vector<1x32x32xf32> to vector<32x32xf32>
    %c1_96 = arith.constant 1 : index
    %c0_97 = arith.constant 0 : index
    %c0_98 = arith.constant 0 : index
    %214 = vector.load %arg14[%c1_96, %c0_97, %c0_98] : memref<2x1x32xf32, #tpu.memory_space<vmem>>, vector<1x1x32xf32>
    %215 = vector.shape_cast %214 : vector<1x1x32xf32> to vector<1x32xf32>
    %cst_99 = arith.constant dense<0.000000e+00> : vector<96x8xf32>
    %216 = tpu.matmul %209, %207, %cst_99 {dimension_numbers = #tpu.dot_dimension_numbers<[1], [1], [0], [0], [0, 0, 1, 0], [], []>} : vector<96x32xf32>, vector<8x32xf32>, vector<96x8xf32> -> vector<96x8xf32>
    %217 = vector.broadcast %211 : vector<96x1xf32> to vector<96x8xf32>
    %218 = arith.addf %216, %217 : vector<96x8xf32>
    %219 = vector.extract_strided_slice %218 {offsets = [0, 0], sizes = [32, 8], strides = [1, 1]} : vector<96x8xf32> to vector<32x8xf32>
    %220 = vector.extract_strided_slice %218 {offsets = [32, 0], sizes = [32, 8], strides = [1, 1]} : vector<96x8xf32> to vector<32x8xf32>
    %221 = vector.extract_strided_slice %218 {offsets = [64, 0], sizes = [32, 8], strides = [1, 1]} : vector<96x8xf32> to vector<32x8xf32>
    %222 = vector.extract_strided_slice %219 {offsets = [0, 0], sizes = [8, 8], strides = [1, 1]} : vector<32x8xf32> to vector<8x8xf32>
    %223 = vector.extract_strided_slice %220 {offsets = [0, 0], sizes = [8, 8], strides = [1, 1]} : vector<32x8xf32> to vector<8x8xf32>
    %cst_100 = arith.constant dense<0.000000e+00> : vector<8x8xf32>
    %224 = tpu.matmul %222, %223, %cst_100 {dimension_numbers = #tpu.dot_dimension_numbers<[0], [0], [1], [1], [0, 1, 1, 1], [], []>} : vector<8x8xf32>, vector<8x8xf32>, vector<8x8xf32> -> vector<8x8xf32>
    %cst_101 = arith.constant 0.353553385 : f32
    %225 = vector.broadcast %cst_101 : f32 to vector<8x8xf32>
    %226 = arith.mulf %224, %225 : vector<8x8xf32>
    %cst_102 = arith.constant dense<0xFF800000> : vector<8xf32>
    %227 = vector.multi_reduction <maximumf>, %226, %cst_102 [1] : vector<8x8xf32> to vector<8xf32>
    %228 = vector.shape_cast %227 : vector<8xf32> to vector<8x1xf32>
    %229 = vector.broadcast %228 : vector<8x1xf32> to vector<8x8xf32>
    %230 = arith.subf %226, %229 : vector<8x8xf32>
    %231 = math.exp %230 : vector<8x8xf32>
    %cst_103 = arith.constant dense<0.000000e+00> : vector<8xf32>
    %232 = vector.multi_reduction <add>, %231, %cst_103 [1] : vector<8x8xf32> to vector<8xf32>
    %233 = vector.shape_cast %232 : vector<8xf32> to vector<8x1xf32>
    %234 = tpu.reciprocal %233 {approx = true} : vector<8x1xf32> -> vector<8x1xf32>
    %235 = vector.broadcast %234 : vector<8x1xf32> to vector<8x8xf32>
    %236 = arith.mulf %231, %235 : vector<8x8xf32>
    %237 = vector.extract_strided_slice %221 {offsets = [0, 0], sizes = [8, 8], strides = [1, 1]} : vector<32x8xf32> to vector<8x8xf32>
    %cst_104 = arith.constant dense<0.000000e+00> : vector<8x8xf32>
    %238 = tpu.matmul %236, %237, %cst_104 {dimension_numbers = #tpu.dot_dimension_numbers<[1], [1], [0], [0], [0, 0, 1, 0], [], []>} : vector<8x8xf32>, vector<8x8xf32>, vector<8x8xf32> -> vector<8x8xf32>
    %239 = vector.extract_strided_slice %213 {offsets = [0, 0], sizes = [8, 32], strides = [1, 1]} : vector<32x32xf32> to vector<8x32xf32>
    %cst_105 = arith.constant dense<0.000000e+00> : vector<8x32xf32>
    %240 = tpu.matmul %238, %239, %cst_105 {dimension_numbers = #tpu.dot_dimension_numbers<[1], [0], [0], [1], [0, 0, 1, 1], [], []>} : vector<8x8xf32>, vector<8x32xf32>, vector<8x32xf32> -> vector<8x32xf32>
    %241 = vector.extract_strided_slice %219 {offsets = [8, 0], sizes = [8, 8], strides = [1, 1]} : vector<32x8xf32> to vector<8x8xf32>
    %242 = vector.extract_strided_slice %220 {offsets = [8, 0], sizes = [8, 8], strides = [1, 1]} : vector<32x8xf32> to vector<8x8xf32>
    %cst_106 = arith.constant dense<0.000000e+00> : vector<8x8xf32>
    %243 = tpu.matmul %241, %242, %cst_106 {dimension_numbers = #tpu.dot_dimension_numbers<[0], [0], [1], [1], [0, 1, 1, 1], [], []>} : vector<8x8xf32>, vector<8x8xf32>, vector<8x8xf32> -> vector<8x8xf32>
    %cst_107 = arith.constant 0.353553385 : f32
    %244 = vector.broadcast %cst_107 : f32 to vector<8x8xf32>
    %245 = arith.mulf %243, %244 : vector<8x8xf32>
    %cst_108 = arith.constant dense<0xFF800000> : vector<8xf32>
    %246 = vector.multi_reduction <maximumf>, %245, %cst_108 [1] : vector<8x8xf32> to vector<8xf32>
    %247 = vector.shape_cast %246 : vector<8xf32> to vector<8x1xf32>
    %248 = vector.broadcast %247 : vector<8x1xf32> to vector<8x8xf32>
    %249 = arith.subf %245, %248 : vector<8x8xf32>
    %250 = math.exp %249 : vector<8x8xf32>
    %cst_109 = arith.constant dense<0.000000e+00> : vector<8xf32>
    %251 = vector.multi_reduction <add>, %250, %cst_109 [1] : vector<8x8xf32> to vector<8xf32>
    %252 = vector.shape_cast %251 : vector<8xf32> to vector<8x1xf32>
    %253 = tpu.reciprocal %252 {approx = true} : vector<8x1xf32> -> vector<8x1xf32>
    %254 = vector.broadcast %253 : vector<8x1xf32> to vector<8x8xf32>
    %255 = arith.mulf %250, %254 : vector<8x8xf32>
    %256 = vector.extract_strided_slice %221 {offsets = [8, 0], sizes = [8, 8], strides = [1, 1]} : vector<32x8xf32> to vector<8x8xf32>
    %cst_110 = arith.constant dense<0.000000e+00> : vector<8x8xf32>
    %257 = tpu.matmul %255, %256, %cst_110 {dimension_numbers = #tpu.dot_dimension_numbers<[1], [1], [0], [0], [0, 0, 1, 0], [], []>} : vector<8x8xf32>, vector<8x8xf32>, vector<8x8xf32> -> vector<8x8xf32>
    %258 = vector.extract_strided_slice %213 {offsets = [8, 0], sizes = [8, 32], strides = [1, 1]} : vector<32x32xf32> to vector<8x32xf32>
    %cst_111 = arith.constant dense<0.000000e+00> : vector<8x32xf32>
    %259 = tpu.matmul %257, %258, %cst_111 {dimension_numbers = #tpu.dot_dimension_numbers<[1], [0], [0], [1], [0, 0, 1, 1], [], []>} : vector<8x8xf32>, vector<8x32xf32>, vector<8x32xf32> -> vector<8x32xf32>
    %260 = arith.addf %240, %259 : vector<8x32xf32>
    %261 = vector.extract_strided_slice %219 {offsets = [16, 0], sizes = [8, 8], strides = [1, 1]} : vector<32x8xf32> to vector<8x8xf32>
    %262 = vector.extract_strided_slice %220 {offsets = [16, 0], sizes = [8, 8], strides = [1, 1]} : vector<32x8xf32> to vector<8x8xf32>
    %cst_112 = arith.constant dense<0.000000e+00> : vector<8x8xf32>
    %263 = tpu.matmul %261, %262, %cst_112 {dimension_numbers = #tpu.dot_dimension_numbers<[0], [0], [1], [1], [0, 1, 1, 1], [], []>} : vector<8x8xf32>, vector<8x8xf32>, vector<8x8xf32> -> vector<8x8xf32>
    %cst_113 = arith.constant 0.353553385 : f32
    %264 = vector.broadcast %cst_113 : f32 to vector<8x8xf32>
    %265 = arith.mulf %263, %264 : vector<8x8xf32>
    %cst_114 = arith.constant dense<0xFF800000> : vector<8xf32>
    %266 = vector.multi_reduction <maximumf>, %265, %cst_114 [1] : vector<8x8xf32> to vector<8xf32>
    %267 = vector.shape_cast %266 : vector<8xf32> to vector<8x1xf32>
    %268 = vector.broadcast %267 : vector<8x1xf32> to vector<8x8xf32>
    %269 = arith.subf %265, %268 : vector<8x8xf32>
    %270 = math.exp %269 : vector<8x8xf32>
    %cst_115 = arith.constant dense<0.000000e+00> : vector<8xf32>
    %271 = vector.multi_reduction <add>, %270, %cst_115 [1] : vector<8x8xf32> to vector<8xf32>
    %272 = vector.shape_cast %271 : vector<8xf32> to vector<8x1xf32>
    %273 = tpu.reciprocal %272 {approx = true} : vector<8x1xf32> -> vector<8x1xf32>
    %274 = vector.broadcast %273 : vector<8x1xf32> to vector<8x8xf32>
    %275 = arith.mulf %270, %274 : vector<8x8xf32>
    %276 = vector.extract_strided_slice %221 {offsets = [16, 0], sizes = [8, 8], strides = [1, 1]} : vector<32x8xf32> to vector<8x8xf32>
    %cst_116 = arith.constant dense<0.000000e+00> : vector<8x8xf32>
    %277 = tpu.matmul %275, %276, %cst_116 {dimension_numbers = #tpu.dot_dimension_numbers<[1], [1], [0], [0], [0, 0, 1, 0], [], []>} : vector<8x8xf32>, vector<8x8xf32>, vector<8x8xf32> -> vector<8x8xf32>
    %278 = vector.extract_strided_slice %213 {offsets = [16, 0], sizes = [8, 32], strides = [1, 1]} : vector<32x32xf32> to vector<8x32xf32>
    %cst_117 = arith.constant dense<0.000000e+00> : vector<8x32xf32>
    %279 = tpu.matmul %277, %278, %cst_117 {dimension_numbers = #tpu.dot_dimension_numbers<[1], [0], [0], [1], [0, 0, 1, 1], [], []>} : vector<8x8xf32>, vector<8x32xf32>, vector<8x32xf32> -> vector<8x32xf32>
    %280 = arith.addf %260, %279 : vector<8x32xf32>
    %281 = vector.extract_strided_slice %219 {offsets = [24, 0], sizes = [8, 8], strides = [1, 1]} : vector<32x8xf32> to vector<8x8xf32>
    %282 = vector.extract_strided_slice %220 {offsets = [24, 0], sizes = [8, 8], strides = [1, 1]} : vector<32x8xf32> to vector<8x8xf32>
    %cst_118 = arith.constant dense<0.000000e+00> : vector<8x8xf32>
    %283 = tpu.matmul %281, %282, %cst_118 {dimension_numbers = #tpu.dot_dimension_numbers<[0], [0], [1], [1], [0, 1, 1, 1], [], []>} : vector<8x8xf32>, vector<8x8xf32>, vector<8x8xf32> -> vector<8x8xf32>
    %cst_119 = arith.constant 0.353553385 : f32
    %284 = vector.broadcast %cst_119 : f32 to vector<8x8xf32>
    %285 = arith.mulf %283, %284 : vector<8x8xf32>
    %cst_120 = arith.constant dense<0xFF800000> : vector<8xf32>
    %286 = vector.multi_reduction <maximumf>, %285, %cst_120 [1] : vector<8x8xf32> to vector<8xf32>
    %287 = vector.shape_cast %286 : vector<8xf32> to vector<8x1xf32>
    %288 = vector.broadcast %287 : vector<8x1xf32> to vector<8x8xf32>
    %289 = arith.subf %285, %288 : vector<8x8xf32>
    %290 = math.exp %289 : vector<8x8xf32>
    %cst_121 = arith.constant dense<0.000000e+00> : vector<8xf32>
    %291 = vector.multi_reduction <add>, %290, %cst_121 [1] : vector<8x8xf32> to vector<8xf32>
    %292 = vector.shape_cast %291 : vector<8xf32> to vector<8x1xf32>
    %293 = tpu.reciprocal %292 {approx = true} : vector<8x1xf32> -> vector<8x1xf32>
    %294 = vector.broadcast %293 : vector<8x1xf32> to vector<8x8xf32>
    %295 = arith.mulf %290, %294 : vector<8x8xf32>
    %296 = vector.extract_strided_slice %221 {offsets = [24, 0], sizes = [8, 8], strides = [1, 1]} : vector<32x8xf32> to vector<8x8xf32>
    %cst_122 = arith.constant dense<0.000000e+00> : vector<8x8xf32>
    %297 = tpu.matmul %295, %296, %cst_122 {dimension_numbers = #tpu.dot_dimension_numbers<[1], [1], [0], [0], [0, 0, 1, 0], [], []>} : vector<8x8xf32>, vector<8x8xf32>, vector<8x8xf32> -> vector<8x8xf32>
    %298 = vector.extract_strided_slice %213 {offsets = [24, 0], sizes = [8, 32], strides = [1, 1]} : vector<32x32xf32> to vector<8x32xf32>
    %cst_123 = arith.constant dense<0.000000e+00> : vector<8x32xf32>
    %299 = tpu.matmul %297, %298, %cst_123 {dimension_numbers = #tpu.dot_dimension_numbers<[1], [0], [0], [1], [0, 0, 1, 1], [], []>} : vector<8x8xf32>, vector<8x32xf32>, vector<8x32xf32> -> vector<8x32xf32>
    %300 = arith.addf %280, %299 : vector<8x32xf32>
    %301 = vector.broadcast %215 : vector<1x32xf32> to vector<8x32xf32>
    %302 = arith.addf %300, %301 : vector<8x32xf32>
    %303 = arith.addf %302, %207 : vector<8x32xf32>
    %304 = vector.extract_strided_slice %73 {offsets = [2, 0], sizes = [1, 32], strides = [1, 1]} : vector<6x32xf32> to vector<1x32xf32>
    %305 = vector.extract_strided_slice %73 {offsets = [3, 0], sizes = [1, 32], strides = [1, 1]} : vector<6x32xf32> to vector<1x32xf32>
    %cst_124 = arith.constant dense<0.000000e+00> : vector<8xf32>
    %306 = vector.multi_reduction <add>, %303, %cst_124 [1] : vector<8x32xf32> to vector<8xf32>
    %307 = vector.shape_cast %306 : vector<8xf32> to vector<8x1xf32>
    %cst_125 = arith.constant 3.200000e+01 : f32
    %308 = vector.broadcast %cst_125 : f32 to vector<8x1xf32>
    %309 = arith.divf %307, %308 : vector<8x1xf32>
    %310 = vector.broadcast %309 : vector<8x1xf32> to vector<8x32xf32>
    %311 = arith.subf %303, %310 : vector<8x32xf32>
    %312 = arith.mulf %311, %311 : vector<8x32xf32>
    %cst_126 = arith.constant dense<0.000000e+00> : vector<8xf32>
    %313 = vector.multi_reduction <add>, %312, %cst_126 [1] : vector<8x32xf32> to vector<8xf32>
    %314 = vector.shape_cast %313 : vector<8xf32> to vector<8x1xf32>
    %cst_127 = arith.constant 3.200000e+01 : f32
    %315 = vector.broadcast %cst_127 : f32 to vector<8x1xf32>
    %316 = arith.divf %314, %315 : vector<8x1xf32>
    %317 = vector.broadcast %309 : vector<8x1xf32> to vector<8x32xf32>
    %318 = arith.subf %303, %317 : vector<8x32xf32>
    %cst_128 = arith.constant 9.99999974E-6 : f32
    %319 = vector.broadcast %cst_128 : f32 to vector<8x1xf32>
    %320 = arith.addf %316, %319 : vector<8x1xf32>
    %321 = math.rsqrt %320 : vector<8x1xf32>
    %322 = vector.broadcast %321 : vector<8x1xf32> to vector<8x32xf32>
    %323 = arith.mulf %318, %322 : vector<8x32xf32>
    %324 = vector.broadcast %304 : vector<1x32xf32> to vector<8x32xf32>
    %325 = arith.mulf %323, %324 : vector<8x32xf32>
    %326 = vector.broadcast %305 : vector<1x32xf32> to vector<8x32xf32>
    %327 = arith.addf %325, %326 : vector<8x32xf32>
    %c0_129 = arith.constant 0 : index
    %c0_130 = arith.constant 0 : index
    %c0_131 = arith.constant 0 : index
    %328 = vector.load %arg16[%c0_129, %c0_130, %c0_131] : memref<1x32x64xf32, #tpu.memory_space<vmem>>, vector<1x32x64xf32>
    %329 = vector.shape_cast %328 : vector<1x32x64xf32> to vector<32x64xf32>
    %cst_132 = arith.constant dense<0.000000e+00> : vector<8x64xf32>
    %330 = tpu.matmul %327, %329, %cst_132 {dimension_numbers = #tpu.dot_dimension_numbers<[1], [0], [0], [1], [0, 0, 1, 1], [], []>} : vector<8x32xf32>, vector<32x64xf32>, vector<8x64xf32> -> vector<8x64xf32>
    %c0_133 = arith.constant 0 : index
    %c0_134 = arith.constant 0 : index
    %c0_135 = arith.constant 0 : index
    %331 = vector.load %arg17[%c0_133, %c0_134, %c0_135] : memref<1x1x64xf32, #tpu.memory_space<vmem>>, vector<1x1x64xf32>
    %332 = vector.shape_cast %331 : vector<1x1x64xf32> to vector<1x64xf32>
    %333 = vector.broadcast %332 : vector<1x64xf32> to vector<8x64xf32>
    %334 = arith.addf %330, %333 : vector<8x64xf32>
    %cst_136 = arith.constant 0.000000e+00 : f32
    %335 = vector.broadcast %cst_136 : f32 to vector<8x64xf32>
    %336 = arith.maximumf %334, %335 : vector<8x64xf32>
    %c0_137 = arith.constant 0 : index
    %c0_138 = arith.constant 0 : index
    %c0_139 = arith.constant 0 : index
    %337 = vector.load %arg18[%c0_137, %c0_138, %c0_139] : memref<1x64x32xf32, #tpu.memory_space<vmem>>, vector<1x64x32xf32>
    %338 = vector.shape_cast %337 : vector<1x64x32xf32> to vector<64x32xf32>
    %cst_140 = arith.constant dense<0.000000e+00> : vector<8x32xf32>
    %339 = tpu.matmul %336, %338, %cst_140 {dimension_numbers = #tpu.dot_dimension_numbers<[1], [0], [0], [1], [0, 0, 1, 1], [], []>} : vector<8x64xf32>, vector<64x32xf32>, vector<8x32xf32> -> vector<8x32xf32>
    %c0_141 = arith.constant 0 : index
    %c0_142 = arith.constant 0 : index
    %c0_143 = arith.constant 0 : index
    %340 = vector.load %arg19[%c0_141, %c0_142, %c0_143] : memref<1x1x32xf32, #tpu.memory_space<vmem>>, vector<1x1x32xf32>
    %341 = vector.shape_cast %340 : vector<1x1x32xf32> to vector<1x32xf32>
    %342 = vector.broadcast %341 : vector<1x32xf32> to vector<8x32xf32>
    %343 = arith.addf %339, %342 : vector<8x32xf32>
    %344 = arith.addf %343, %327 : vector<8x32xf32>
    %345 = vector.extract_strided_slice %73 {offsets = [4, 0], sizes = [1, 32], strides = [1, 1]} : vector<6x32xf32> to vector<1x32xf32>
    %346 = vector.extract_strided_slice %73 {offsets = [5, 0], sizes = [1, 32], strides = [1, 1]} : vector<6x32xf32> to vector<1x32xf32>
    %cst_144 = arith.constant dense<0.000000e+00> : vector<8xf32>
    %347 = vector.multi_reduction <add>, %344, %cst_144 [1] : vector<8x32xf32> to vector<8xf32>
    %348 = vector.shape_cast %347 : vector<8xf32> to vector<8x1xf32>
    %cst_145 = arith.constant 3.200000e+01 : f32
    %349 = vector.broadcast %cst_145 : f32 to vector<8x1xf32>
    %350 = arith.divf %348, %349 : vector<8x1xf32>
    %351 = vector.broadcast %350 : vector<8x1xf32> to vector<8x32xf32>
    %352 = arith.subf %344, %351 : vector<8x32xf32>
    %353 = arith.mulf %352, %352 : vector<8x32xf32>
    %cst_146 = arith.constant dense<0.000000e+00> : vector<8xf32>
    %354 = vector.multi_reduction <add>, %353, %cst_146 [1] : vector<8x32xf32> to vector<8xf32>
    %355 = vector.shape_cast %354 : vector<8xf32> to vector<8x1xf32>
    %cst_147 = arith.constant 3.200000e+01 : f32
    %356 = vector.broadcast %cst_147 : f32 to vector<8x1xf32>
    %357 = arith.divf %355, %356 : vector<8x1xf32>
    %358 = vector.broadcast %350 : vector<8x1xf32> to vector<8x32xf32>
    %359 = arith.subf %344, %358 : vector<8x32xf32>
    %cst_148 = arith.constant 9.99999974E-6 : f32
    %360 = vector.broadcast %cst_148 : f32 to vector<8x1xf32>
    %361 = arith.addf %357, %360 : vector<8x1xf32>
    %362 = math.rsqrt %361 : vector<8x1xf32>
    %363 = vector.broadcast %362 : vector<8x1xf32> to vector<8x32xf32>
    %364 = arith.mulf %359, %363 : vector<8x32xf32>
    %365 = vector.broadcast %345 : vector<1x32xf32> to vector<8x32xf32>
    %366 = arith.mulf %364, %365 : vector<8x32xf32>
    %367 = vector.broadcast %346 : vector<1x32xf32> to vector<8x32xf32>
    %368 = arith.addf %366, %367 : vector<8x32xf32>
    %c0_149 = arith.constant 0 : index
    %c0_150 = arith.constant 0 : index
    %369 = vector.load %arg29[%c0_149, %c0_150] : memref<8x32xf32, #tpu.memory_space<vmem>>, vector<8x32xf32>
    tpu.vector_store %arg29[%c0_149, %c0_150], %368 {strides = array<i32>} : memref<8x32xf32, #tpu.memory_space<vmem>>, vector<8x32xf32>,
    %c1_i32 = arith.constant 1 : i32
    %370 = arith.cmpi eq, %arg0, %c1_i32 : i32
    %371 = arith.extui %370 : i1 to i32
    %c0_i32_151 = arith.constant 0 : i32
    %372 = arith.cmpi ne, %371, %c0_i32_151 : i32
    scf.if %372 {
      %c0_152 = arith.constant 0 : index
      %c0_153 = arith.constant 0 : index
      %373 = vector.load %arg21[%c0_152, %c0_153] : memref<96x32xf32, #tpu.memory_space<vmem>>, vector<96x32xf32>
      %c0_154 = arith.constant 0 : index
      %c0_155 = arith.constant 0 : index
      %374 = vector.load %arg22[%c0_154, %c0_155] : memref<96x1xf32, #tpu.memory_space<vmem>>, vector<96x1xf32>
      %c0_156 = arith.constant 0 : index
      %c0_157 = arith.constant 0 : index
      %375 = vector.load %arg23[%c0_156, %c0_157] : memref<32x32xf32, #tpu.memory_space<vmem>>, vector<32x32xf32>
      %c0_158 = arith.constant 0 : index
      %c0_159 = arith.constant 0 : index
      %376 = vector.load %arg24[%c0_158, %c0_159] : memref<1x32xf32, #tpu.memory_space<vmem>>, vector<1x32xf32>
      %c0_160 = arith.constant 0 : index
      %c0_161 = arith.constant 0 : index
      %377 = vector.load %arg25[%c0_160, %c0_161] : memref<64x5xf32, #tpu.memory_space<vmem>>, vector<64x5xf32>
      %c0_162 = arith.constant 0 : index
      %c0_163 = arith.constant 0 : index
      %378 = vector.load %arg26[%c0_162, %c0_163] : memref<1x5xf32, #tpu.memory_space<vmem>>, vector<1x5xf32>
      %379 = vector.extract_strided_slice %4 {offsets = [0, 0], sizes = [1, 32], strides = [1, 1]} : vector<2x32xf32> to vector<1x32xf32>
      %380 = vector.extract_strided_slice %4 {offsets = [1, 0], sizes = [1, 32], strides = [1, 1]} : vector<2x32xf32> to vector<1x32xf32>
      %cst_164 = arith.constant dense<0.000000e+00> : vector<8xf32>
      %381 = vector.multi_reduction <add>, %368, %cst_164 [1] : vector<8x32xf32> to vector<8xf32>
      %382 = vector.shape_cast %381 : vector<8xf32> to vector<8x1xf32>
      %cst_165 = arith.constant 3.200000e+01 : f32
      %383 = vector.broadcast %cst_165 : f32 to vector<8x1xf32>
      %384 = arith.divf %382, %383 : vector<8x1xf32>
      %385 = vector.broadcast %384 : vector<8x1xf32> to vector<8x32xf32>
      %386 = arith.subf %368, %385 : vector<8x32xf32>
      %387 = arith.mulf %386, %386 : vector<8x32xf32>
      %cst_166 = arith.constant dense<0.000000e+00> : vector<8xf32>
      %388 = vector.multi_reduction <add>, %387, %cst_166 [1] : vector<8x32xf32> to vector<8xf32>
      %389 = vector.shape_cast %388 : vector<8xf32> to vector<8x1xf32>
      %cst_167 = arith.constant 3.200000e+01 : f32
      %390 = vector.broadcast %cst_167 : f32 to vector<8x1xf32>
      %391 = arith.divf %389, %390 : vector<8x1xf32>
      %392 = vector.broadcast %384 : vector<8x1xf32> to vector<8x32xf32>
      %393 = arith.subf %368, %392 : vector<8x32xf32>
      %cst_168 = arith.constant 9.99999974E-6 : f32
      %394 = vector.broadcast %cst_168 : f32 to vector<8x1xf32>
      %395 = arith.addf %391, %394 : vector<8x1xf32>
      %396 = math.rsqrt %395 : vector<8x1xf32>
      %397 = vector.broadcast %396 : vector<8x1xf32> to vector<8x32xf32>
      %398 = arith.mulf %393, %397 : vector<8x32xf32>
      %399 = vector.broadcast %379 : vector<1x32xf32> to vector<8x32xf32>
      %400 = arith.mulf %398, %399 : vector<8x32xf32>
      %401 = vector.broadcast %380 : vector<1x32xf32> to vector<8x32xf32>
      %402 = arith.addf %400, %401 : vector<8x32xf32>
      %cst_169 = arith.constant dense<0.000000e+00> : vector<96x8xf32>
      %403 = tpu.matmul %373, %402, %cst_169 {dimension_numbers = #tpu.dot_dimension_numbers<[1], [1], [0], [0], [0, 0, 1, 0], [], []>} : vector<96x32xf32>, vector<8x32xf32>, vector<96x8xf32> -> vector<96x8xf32>
      %404 = vector.broadcast %374 : vector<96x1xf32> to vector<96x8xf32>
      %405 = arith.addf %403, %404 : vector<96x8xf32>
      %cst_170 = arith.constant 0.000000e+00 : f32
      %406 = vector.broadcast %cst_170 : f32 to vector<96x8xf32>
      %407 = arith.maximumf %405, %406 : vector<96x8xf32>
      %408 = vector.extract_strided_slice %407 {offsets = [0, 0], sizes = [32, 8], strides = [1, 1]} : vector<96x8xf32> to vector<32x8xf32>
      %cst_171 = arith.constant dense<0.000000e+00> : vector<8x32xf32>
      %409 = tpu.matmul %408, %375, %cst_171 {dimension_numbers = #tpu.dot_dimension_numbers<[0], [0], [1], [1], [0, 1, 1, 1], [], []>} : vector<32x8xf32>, vector<32x32xf32>, vector<8x32xf32> -> vector<8x32xf32>
      %410 = vector.broadcast %376 : vector<1x32xf32> to vector<8x32xf32>
      %411 = arith.addf %409, %410 : vector<8x32xf32>
      %412 = vector.extract_strided_slice %407 {offsets = [32, 0], sizes = [64, 8], strides = [1, 1]} : vector<96x8xf32> to vector<64x8xf32>
      %cst_172 = arith.constant dense<0.000000e+00> : vector<8x5xf32>
      %413 = tpu.matmul %412, %377, %cst_172 {dimension_numbers = #tpu.dot_dimension_numbers<[0], [0], [1], [1], [0, 1, 1, 1], [], []>} : vector<64x8xf32>, vector<64x5xf32>, vector<8x5xf32> -> vector<8x5xf32>
      %414 = vector.broadcast %378 : vector<1x5xf32> to vector<8x5xf32>
      %415 = arith.addf %413, %414 : vector<8x5xf32>
      %c2 = arith.constant 2 : index
      %c0_173 = arith.constant 0 : index
      %c0_174 = arith.constant 0 : index
      %416 = vector.load %arg27[%c2, %c0_173, %c0_174] : memref<3x8x32xf32, #tpu.memory_space<vmem>>, vector<1x8x32xf32>
      %417 = vector.shape_cast %416 : vector<1x8x32xf32> to vector<8x32xf32>
      %418 = vector.shape_cast %411 : vector<8x32xf32> to vector<1x8x32xf32>
      tpu.vector_store %arg27[%c2, %c0_173, %c0_174], %418 {strides = array<i32>} : memref<3x8x32xf32, #tpu.memory_space<vmem>>, vector<1x8x32xf32>,
      %c2_175 = arith.constant 2 : index
      %c0_176 = arith.constant 0 : index
      %c0_177 = arith.constant 0 : index
      %419 = vector.load %arg28[%c2_175, %c0_176, %c0_177] : memref<3x8x5xf32, #tpu.memory_space<vmem>>, vector<1x8x5xf32>
      %420 = vector.shape_cast %419 : vector<1x8x5xf32> to vector<8x5xf32>
      %421 = vector.shape_cast %415 : vector<8x5xf32> to vector<1x8x5xf32>
      tpu.vector_store %arg28[%c2_175, %c0_176, %c0_177], %421 {strides = array<i32>} : memref<3x8x5xf32, #tpu.memory_space<vmem>>, vector<1x8x5xf32>,
    } else {
    }
    return
  }
  func.func @transform_0(%arg0: i32, %arg1: memref<2xi32, #tpu.memory_space<smem>>, %arg2: memref<2xi32, #tpu.memory_space<smem>>) -> (i32, i32) {
    %c0_i32 = arith.constant 0 : i32
    %c0_i32_0 = arith.constant 0 : i32
    %c0_i32_1 = arith.constant 0 : i32
    return %c0_i32, %c0_i32_0 : i32, i32
  }
  func.func @transform_1(%arg0: i32, %arg1: memref<2xi32, #tpu.memory_space<smem>>, %arg2: memref<2xi32, #tpu.memory_space<smem>>) -> (i32, i32) {
    %c0_i32 = arith.constant 0 : i32
    %c0_i32_0 = arith.constant 0 : i32
    %c0_i32_1 = arith.constant 0 : i32
    return %c0_i32, %c0_i32_0 : i32, i32
  }
  func.func @transform_2(%arg0: i32, %arg1: memref<2xi32, #tpu.memory_space<smem>>, %arg2: memref<2xi32, #tpu.memory_space<smem>>) -> (i32, i32) {
    %c0_i32 = arith.constant 0 : i32
    %c0_i32_0 = arith.constant 0 : i32
    %c0_i32_1 = arith.constant 0 : i32
    return %c0_i32, %c0_i32_0 : i32, i32
  }
  func.func @transform_3(%arg0: i32, %arg1: memref<2xi32, #tpu.memory_space<smem>>, %arg2: memref<2xi32, #tpu.memory_space<smem>>) -> (i32, i32) {
    %c0_i32 = arith.constant 0 : i32
    %c0_i32_0 = arith.constant 0 : i32
    %c0_i32_1 = arith.constant 0 : i32
    return %c0_i32, %c0_i32_0 : i32, i32
  }
  func.func @transform_4(%arg0: i32, %arg1: memref<2xi32, #tpu.memory_space<smem>>, %arg2: memref<2xi32, #tpu.memory_space<smem>>) -> (i32, i32) {
    %c0_i32 = arith.constant 0 : i32
    %c0_i32_0 = arith.constant 0 : i32
    %c0_i32_1 = arith.constant 0 : i32
    return %c0_i32, %c0_i32_0 : i32, i32
  }
  func.func @transform_5(%arg0: i32, %arg1: memref<2xi32, #tpu.memory_space<smem>>, %arg2: memref<2xi32, #tpu.memory_space<smem>>) -> (i32, i32, i32) {
    %0 = arith.index_cast %arg0 : i32 to index
    %1 = memref.load %arg1[%0] : memref<2xi32, #tpu.memory_space<smem>>
    %c0_i32 = arith.constant 0 : i32
    %c0_i32_0 = arith.constant 0 : i32
    %c0_i32_1 = arith.constant 0 : i32
    return %1, %c0_i32, %c0_i32_0 : i32, i32, i32
  }
  func.func @transform_6(%arg0: i32, %arg1: memref<2xi32, #tpu.memory_space<smem>>, %arg2: memref<2xi32, #tpu.memory_space<smem>>) -> (i32, i32, i32) {
    %0 = arith.index_cast %arg0 : i32 to index
    %1 = memref.load %arg1[%0] : memref<2xi32, #tpu.memory_space<smem>>
    %c0_i32 = arith.constant 0 : i32
    %c0_i32_0 = arith.constant 0 : i32
    %c0_i32_1 = arith.constant 0 : i32
    return %1, %c0_i32, %c0_i32_0 : i32, i32, i32
  }
  func.func @transform_7(%arg0: i32, %arg1: memref<2xi32, #tpu.memory_space<smem>>, %arg2: memref<2xi32, #tpu.memory_space<smem>>) -> (i32, i32, i32) {
    %0 = arith.index_cast %arg0 : i32 to index
    %1 = memref.load %arg1[%0] : memref<2xi32, #tpu.memory_space<smem>>
    %c0_i32 = arith.constant 0 : i32
    %c0_i32_0 = arith.constant 0 : i32
    %c0_i32_1 = arith.constant 0 : i32
    return %1, %c0_i32, %c0_i32_0 : i32, i32, i32
  }
  func.func @transform_8(%arg0: i32, %arg1: memref<2xi32, #tpu.memory_space<smem>>, %arg2: memref<2xi32, #tpu.memory_space<smem>>) -> (i32, i32, i32) {
    %0 = arith.index_cast %arg0 : i32 to index
    %1 = memref.load %arg1[%0] : memref<2xi32, #tpu.memory_space<smem>>
    %c0_i32 = arith.constant 0 : i32
    %c0_i32_0 = arith.constant 0 : i32
    %c0_i32_1 = arith.constant 0 : i32
    return %1, %c0_i32, %c0_i32_0 : i32, i32, i32
  }
  func.func @transform_9(%arg0: i32, %arg1: memref<2xi32, #tpu.memory_space<smem>>, %arg2: memref<2xi32, #tpu.memory_space<smem>>) -> (i32, i32, i32) {
    %0 = arith.index_cast %arg0 : i32 to index
    %1 = memref.load %arg1[%0] : memref<2xi32, #tpu.memory_space<smem>>
    %c0_i32 = arith.constant 0 : i32
    %c0_i32_0 = arith.constant 0 : i32
    %c0_i32_1 = arith.constant 0 : i32
    return %1, %c0_i32, %c0_i32_0 : i32, i32, i32
  }
  func.func @transform_10(%arg0: i32, %arg1: memref<2xi32, #tpu.memory_space<smem>>, %arg2: memref<2xi32, #tpu.memory_space<smem>>) -> (i32, i32, i32) {
    %0 = arith.index_cast %arg0 : i32 to index
    %1 = memref.load %arg1[%0] : memref<2xi32, #tpu.memory_space<smem>>
    %c0_i32 = arith.constant 0 : i32
    %c0_i32_0 = arith.constant 0 : i32
    %c0_i32_1 = arith.constant 0 : i32
    return %1, %c0_i32, %c0_i32_0 : i32, i32, i32
  }
  func.func @transform_11(%arg0: i32, %arg1: memref<2xi32, #tpu.memory_space<smem>>, %arg2: memref<2xi32, #tpu.memory_space<smem>>) -> (i32, i32, i32) {
    %0 = arith.index_cast %arg0 : i32 to index
    %1 = memref.load %arg1[%0] : memref<2xi32, #tpu.memory_space<smem>>
    %c0_i32 = arith.constant 0 : i32
    %c0_i32_0 = arith.constant 0 : i32
    %c0_i32_1 = arith.constant 0 : i32
    return %1, %c0_i32, %c0_i32_0 : i32, i32, i32
  }
  func.func @transform_12(%arg0: i32, %arg1: memref<2xi32, #tpu.memory_space<smem>>, %arg2: memref<2xi32, #tpu.memory_space<smem>>) -> (i32, i32, i32) {
    %0 = arith.index_cast %arg0 : i32 to index
    %1 = memref.load %arg1[%0] : memref<2xi32, #tpu.memory_space<smem>>
    %c0_i32 = arith.constant 0 : i32
    %c0_i32_0 = arith.constant 0 : i32
    %c0_i32_1 = arith.constant 0 : i32
    return %1, %c0_i32, %c0_i32_0 : i32, i32, i32
  }
  func.func @transform_13(%arg0: i32, %arg1: memref<2xi32, #tpu.memory_space<smem>>, %arg2: memref<2xi32, #tpu.memory_space<smem>>) -> (i32, i32, i32) {
    %0 = arith.index_cast %arg0 : i32 to index
    %1 = memref.load %arg1[%0] : memref<2xi32, #tpu.memory_space<smem>>
    %c0_i32 = arith.constant 0 : i32
    %c0_i32_0 = arith.constant 0 : i32
    %c0_i32_1 = arith.constant 0 : i32
    return %1, %c0_i32, %c0_i32_0 : i32, i32, i32
  }
  func.func @transform_14(%arg0: i32, %arg1: memref<2xi32, #tpu.memory_space<smem>>, %arg2: memref<2xi32, #tpu.memory_space<smem>>) -> (i32, i32, i32) {
    %0 = arith.index_cast %arg0 : i32 to index
    %1 = memref.load %arg1[%0] : memref<2xi32, #tpu.memory_space<smem>>
    %c0_i32 = arith.constant 0 : i32
    %c0_i32_0 = arith.constant 0 : i32
    %c0_i32_1 = arith.constant 0 : i32
    return %1, %c0_i32, %c0_i32_0 : i32, i32, i32
  }
  func.func @transform_15(%arg0: i32, %arg1: memref<2xi32, #tpu.memory_space<smem>>, %arg2: memref<2xi32, #tpu.memory_space<smem>>) -> (i32, i32, i32) {
    %0 = arith.index_cast %arg0 : i32 to index
    %1 = memref.load %arg1[%0] : memref<2xi32, #tpu.memory_space<smem>>
    %c0_i32 = arith.constant 0 : i32
    %c0_i32_0 = arith.constant 0 : i32
    %c0_i32_1 = arith.constant 0 : i32
    return %1, %c0_i32, %c0_i32_0 : i32, i32, i32
  }
  func.func @transform_16(%arg0: i32, %arg1: memref<2xi32, #tpu.memory_space<smem>>, %arg2: memref<2xi32, #tpu.memory_space<smem>>) -> (i32, i32, i32) {
    %0 = arith.index_cast %arg0 : i32 to index
    %1 = memref.load %arg1[%0] : memref<2xi32, #tpu.memory_space<smem>>
    %c0_i32 = arith.constant 0 : i32
    %c0_i32_0 = arith.constant 0 : i32
    %c0_i32_1 = arith.constant 0 : i32
    return %1, %c0_i32, %c0_i32_0 : i32, i32, i32
  }
  func.func @transform_17(%arg0: i32, %arg1: memref<2xi32, #tpu.memory_space<smem>>, %arg2: memref<2xi32, #tpu.memory_space<smem>>) -> (i32, i32) {
    %c0_i32 = arith.constant 0 : i32
    %c0_i32_0 = arith.constant 0 : i32
    %c0_i32_1 = arith.constant 0 : i32
    return %c0_i32, %c0_i32_0 : i32, i32
  }
  func.func @transform_18(%arg0: i32, %arg1: memref<2xi32, #tpu.memory_space<smem>>, %arg2: memref<2xi32, #tpu.memory_space<smem>>) -> (i32, i32) {
    %c0_i32 = arith.constant 0 : i32
    %c0_i32_0 = arith.constant 0 : i32
    %c0_i32_1 = arith.constant 0 : i32
    return %c0_i32, %c0_i32_0 : i32, i32
  }
  func.func @transform_19(%arg0: i32, %arg1: memref<2xi32, #tpu.memory_space<smem>>, %arg2: memref<2xi32, #tpu.memory_space<smem>>) -> (i32, i32) {
    %c0_i32 = arith.constant 0 : i32
    %c0_i32_0 = arith.constant 0 : i32
    %c0_i32_1 = arith.constant 0 : i32
    return %c0_i32, %c0_i32_0 : i32, i32
  }
  func.func @transform_20(%arg0: i32, %arg1: memref<2xi32, #tpu.memory_space<smem>>, %arg2: memref<2xi32, #tpu.memory_space<smem>>) -> (i32, i32) {
    %c0_i32 = arith.constant 0 : i32
    %c0_i32_0 = arith.constant 0 : i32
    %c0_i32_1 = arith.constant 0 : i32
    return %c0_i32, %c0_i32_0 : i32, i32
  }
  func.func @transform_21(%arg0: i32, %arg1: memref<2xi32, #tpu.memory_space<smem>>, %arg2: memref<2xi32, #tpu.memory_space<smem>>) -> (i32, i32) {
    %c0_i32 = arith.constant 0 : i32
    %c0_i32_0 = arith.constant 0 : i32
    %c0_i32_1 = arith.constant 0 : i32
    return %c0_i32, %c0_i32_0 : i32, i32
  }
  func.func @transform_22(%arg0: i32, %arg1: memref<2xi32, #tpu.memory_space<smem>>, %arg2: memref<2xi32, #tpu.memory_space<smem>>) -> (i32, i32) {
    %c0_i32 = arith.constant 0 : i32
    %c0_i32_0 = arith.constant 0 : i32
    %c0_i32_1 = arith.constant 0 : i32
    return %c0_i32, %c0_i32_0 : i32, i32
  }
  func.func @transform_23(%arg0: i32, %arg1: memref<2xi32, #tpu.memory_space<smem>>, %arg2: memref<2xi32, #tpu.memory_space<smem>>) -> (i32, i32) {
    %c0_i32 = arith.constant 0 : i32
    %c0_i32_0 = arith.constant 0 : i32
    %c0_i32_1 = arith.constant 0 : i32
    return %c0_i32, %c0_i32_0 : i32, i32
  }
  func.func @transform_24(%arg0: i32, %arg1: memref<2xi32, #tpu.memory_space<smem>>, %arg2: memref<2xi32, #tpu.memory_space<smem>>) -> (i32, i32, i32) {
    %c0_i32 = arith.constant 0 : i32
    %c0_i32_0 = arith.constant 0 : i32
    %c0_i32_1 = arith.constant 0 : i32
    %c0_i32_2 = arith.constant 0 : i32
    return %c0_i32, %c0_i32_0, %c0_i32_1 : i32, i32, i32
  }
  func.func @transform_25(%arg0: i32, %arg1: memref<2xi32, #tpu.memory_space<smem>>, %arg2: memref<2xi32, #tpu.memory_space<smem>>) -> (i32, i32, i32) {
    %c0_i32 = arith.constant 0 : i32
    %c0_i32_0 = arith.constant 0 : i32
    %c0_i32_1 = arith.constant 0 : i32
    %c0_i32_2 = arith.constant 0 : i32
    return %c0_i32, %c0_i32_0, %c0_i32_1 : i32, i32, i32
  }
}

module attributes {stable_mosaic.version = 11 : i64} {
  func.func @_mask_mlp_kernel(%arg0: i32, %arg1: memref<64x16xbf16, #tpu.memory_space<vmem>>, %arg2: memref<16x32xbf16, #tpu.memory_space<vmem>>, %arg3: memref<1x32xf32, #tpu.memory_space<vmem>>, %arg4: memref<32x32xbf16, #tpu.memory_space<vmem>>, %arg5: memref<1x32xf32, #tpu.memory_space<vmem>>, %arg6: memref<64x32xbf16, #tpu.memory_space<vmem>>) attributes {dimension_semantics = [#tpu.dimension_semantics<parallel>], iteration_bounds = array<i64: 1>, scalar_prefetch = 0 : i64, scratch_operands = 0 : i64, tpu.core_type = #tpu.core_type<tc>, window_params = [{transform_indices = @transform_0, window_bounds = array<i64: 64, 16>}, {pipeline_mode = #tpu.pipeline_mode<synchronous>, transform_indices = @transform_1, window_bounds = array<i64: 16, 32>}, {pipeline_mode = #tpu.pipeline_mode<synchronous>, transform_indices = @transform_2, window_bounds = array<i64: 1, 32>}, {pipeline_mode = #tpu.pipeline_mode<synchronous>, transform_indices = @transform_3, window_bounds = array<i64: 32, 32>}, {pipeline_mode = #tpu.pipeline_mode<synchronous>, transform_indices = @transform_4, window_bounds = array<i64: 1, 32>}, {transform_indices = @transform_5, window_bounds = array<i64: 64, 32>}]} {
    %c0 = arith.constant 0 : index
    %c0_0 = arith.constant 0 : index
    %0 = vector.load %arg1[%c0, %c0_0] : memref<64x16xbf16, #tpu.memory_space<vmem>>, vector<64x16xbf16>
    %c0_1 = arith.constant 0 : index
    %c0_2 = arith.constant 0 : index
    %1 = vector.load %arg2[%c0_1, %c0_2] : memref<16x32xbf16, #tpu.memory_space<vmem>>, vector<16x32xbf16>
    %cst = arith.constant dense<0.000000e+00> : vector<64x32xf32>
    %2 = tpu.matmul %0, %1, %cst {dimension_numbers = #tpu.dot_dimension_numbers<[1], [0], [0], [1], [0, 0, 1, 1], [], []>} : vector<64x16xbf16>, vector<16x32xbf16>, vector<64x32xf32> -> vector<64x32xf32>
    %c0_3 = arith.constant 0 : index
    %c0_4 = arith.constant 0 : index
    %3 = vector.load %arg3[%c0_3, %c0_4] : memref<1x32xf32, #tpu.memory_space<vmem>>, vector<1x32xf32>
    %4 = vector.broadcast %3 : vector<1x32xf32> to vector<64x32xf32>
    %5 = arith.addf %2, %4 : vector<64x32xf32>
    %cst_5 = arith.constant 0.000000e+00 : f32
    %6 = vector.broadcast %cst_5 : f32 to vector<64x32xf32>
    %7 = arith.maximumf %5, %6 : vector<64x32xf32>
    %8 = arith.truncf %7 : vector<64x32xf32> to vector<64x32xbf16>
    %c0_6 = arith.constant 0 : index
    %c0_7 = arith.constant 0 : index
    %9 = vector.load %arg4[%c0_6, %c0_7] : memref<32x32xbf16, #tpu.memory_space<vmem>>, vector<32x32xbf16>
    %cst_8 = arith.constant dense<0.000000e+00> : vector<64x32xf32>
    %10 = tpu.matmul %8, %9, %cst_8 {dimension_numbers = #tpu.dot_dimension_numbers<[1], [0], [0], [1], [0, 0, 1, 1], [], []>} : vector<64x32xbf16>, vector<32x32xbf16>, vector<64x32xf32> -> vector<64x32xf32>
    %c0_9 = arith.constant 0 : index
    %c0_10 = arith.constant 0 : index
    %11 = vector.load %arg5[%c0_9, %c0_10] : memref<1x32xf32, #tpu.memory_space<vmem>>, vector<1x32xf32>
    %12 = vector.broadcast %11 : vector<1x32xf32> to vector<64x32xf32>
    %13 = arith.addf %10, %12 : vector<64x32xf32>
    %14 = arith.truncf %13 : vector<64x32xf32> to vector<64x32xbf16>
    %c0_11 = arith.constant 0 : index
    %c0_12 = arith.constant 0 : index
    %15 = vector.load %arg6[%c0_11, %c0_12] : memref<64x32xbf16, #tpu.memory_space<vmem>>, vector<64x32xbf16>
    tpu.vector_store %arg6[%c0_11, %c0_12], %14 {strides = array<i32>} : memref<64x32xbf16, #tpu.memory_space<vmem>>, vector<64x32xbf16>,
    return
  }
  func.func @transform_0(%arg0: i32) -> (i32, i32) {
    %c0_i32 = arith.constant 0 : i32
    %c0_i32_0 = arith.constant 0 : i32
    return %arg0, %c0_i32 : i32, i32
  }
  func.func @transform_1(%arg0: i32) -> (i32, i32) {
    %c0_i32 = arith.constant 0 : i32
    %c0_i32_0 = arith.constant 0 : i32
    %c0_i32_1 = arith.constant 0 : i32
    return %c0_i32, %c0_i32_0 : i32, i32
  }
  func.func @transform_2(%arg0: i32) -> (i32, i32) {
    %c0_i32 = arith.constant 0 : i32
    %c0_i32_0 = arith.constant 0 : i32
    %c0_i32_1 = arith.constant 0 : i32
    return %c0_i32, %c0_i32_0 : i32, i32
  }
  func.func @transform_3(%arg0: i32) -> (i32, i32) {
    %c0_i32 = arith.constant 0 : i32
    %c0_i32_0 = arith.constant 0 : i32
    %c0_i32_1 = arith.constant 0 : i32
    return %c0_i32, %c0_i32_0 : i32, i32
  }
  func.func @transform_4(%arg0: i32) -> (i32, i32) {
    %c0_i32 = arith.constant 0 : i32
    %c0_i32_0 = arith.constant 0 : i32
    %c0_i32_1 = arith.constant 0 : i32
    return %c0_i32, %c0_i32_0 : i32, i32
  }
  func.func @transform_5(%arg0: i32) -> (i32, i32) {
    %c0_i32 = arith.constant 0 : i32
    %c0_i32_0 = arith.constant 0 : i32
    return %arg0, %c0_i32 : i32, i32
  }
}

module attributes {stable_mosaic.version = 11 : i64} {
  func.func @_mask_matmul_kernel(%arg0: i32, %arg1: memref<24x32xbf16, #tpu.memory_space<vmem>>, %arg2: memref<128x32xbf16, #tpu.memory_space<vmem>>, %arg3: memref<24x128xf32, #tpu.memory_space<vmem>>) attributes {dimension_semantics = [#tpu.dimension_semantics<parallel>], iteration_bounds = array<i64: 1>, scalar_prefetch = 0 : i64, scratch_operands = 0 : i64, tpu.core_type = #tpu.core_type<tc>, window_params = [{pipeline_mode = #tpu.pipeline_mode<synchronous>, transform_indices = @transform_0, window_bounds = array<i64: 24, 32>}, {transform_indices = @transform_1, window_bounds = array<i64: 128, 32>}, {transform_indices = @transform_2, window_bounds = array<i64: 24, 128>}]} {
    %c0 = arith.constant 0 : index
    %c0_0 = arith.constant 0 : index
    %0 = vector.load %arg1[%c0, %c0_0] : memref<24x32xbf16, #tpu.memory_space<vmem>>, vector<24x32xbf16>
    %c0_1 = arith.constant 0 : index
    %c0_2 = arith.constant 0 : index
    %1 = vector.load %arg2[%c0_1, %c0_2] : memref<128x32xbf16, #tpu.memory_space<vmem>>, vector<128x32xbf16>
    %cst = arith.constant dense<0.000000e+00> : vector<24x128xf32>
    %2 = tpu.matmul %0, %1, %cst {dimension_numbers = #tpu.dot_dimension_numbers<[1], [1], [0], [0], [0, 0, 1, 0], [], []>} : vector<24x32xbf16>, vector<128x32xbf16>, vector<24x128xf32> -> vector<24x128xf32>
    %c0_3 = arith.constant 0 : index
    %c0_4 = arith.constant 0 : index
    %3 = vector.load %arg3[%c0_3, %c0_4] : memref<24x128xf32, #tpu.memory_space<vmem>>, vector<24x128xf32>
    tpu.vector_store %arg3[%c0_3, %c0_4], %2 {strides = array<i32>} : memref<24x128xf32, #tpu.memory_space<vmem>>, vector<24x128xf32>,
    return
  }
  func.func @transform_0(%arg0: i32) -> (i32, i32) {
    %c0_i32 = arith.constant 0 : i32
    %c0_i32_0 = arith.constant 0 : i32
    %c0_i32_1 = arith.constant 0 : i32
    return %c0_i32, %c0_i32_0 : i32, i32
  }
  func.func @transform_1(%arg0: i32) -> (i32, i32) {
    %c0_i32 = arith.constant 0 : i32
    %c0_i32_0 = arith.constant 0 : i32
    return %arg0, %c0_i32 : i32, i32
  }
  func.func @transform_2(%arg0: i32) -> (i32, i32) {
    %c0_i32 = arith.constant 0 : i32
    %c0_i32_0 = arith.constant 0 : i32
    return %c0_i32, %arg0 : i32, i32
  }
}

</mosaic_0001>

<bundles_post_ra>
// kernel: _lambda_.5
= control target key start
LH: loop header
LB: loop body
LE: loop exit
PB: predicated region body
PF: predicated region fallthrough
CT: control target
= control target key end

     0   :  { %vm79_vm0 = vcmask 261120   ;;  %s297_s1 = inlined_call_operand.vmem [shape: bf16[128,32], index: 1, kind: input, shape index: {}]   ;;  %s298_s0 = inlined_call_operand.vmem [shape: bf16[24,32], index: 0, kind: input, shape index: {}]   ;;  %s299_s2 = inlined_call_operand.vmem [shape: f32[24,128], index: 2, kind: output, shape index: {}]  }
   0x1   :  { %v215_v0 = vld [vmem:[%s297_s1 + $0x38] sm:$0xff]   ;;  %v216_v1 = vld [vmem:[%s297_s1 + $0x30] sm:$0xff]   ;;  %v217_v3 = vld [vmem:[%s297_s1 + $0x28] sm:$0xff]  }
   0x2   :  { %207 = vmatprep.subr.msk.bf16.mxu0 %vm79_vm0, %v215_v0  ;;  %v108_v2 = vsel %vm79_vm0, %v215_v0, 0  ;;  %v105_v4 = vsel %vm79_vm0, %v216_v1, 0  ;;  %v223_v5 = vld [vmem:[%s298_s0] sm:$0xff]   ;;  %v102_v6 = vsel %vm79_vm0, %v217_v3, 0  ;;  %v219_v9 = vld [vmem:[%s297_s1 + $0x18] sm:$0xff]   ;;  %v220_v11 = vld [vmem:[%s297_s1 + $0x10] sm:$0xff]  }
   0x3   :  { %188 = vmatpush3.bf16.xpose.msra.mxu0 %v108_v2  ;;  %203 = vmatprep.mubr.msk.bf16.mxu0 %vm79_vm0, %v223_v5  ;;  %v218_v7 = vld [vmem:[%s297_s1 + $0x20] sm:$0xff]   ;;  %v96_v10 = vsel %vm79_vm0, %v219_v9, 0  ;;  %v93_v12 = vsel %vm79_vm0, %v220_v11, 0  ;;  %v221_v13 = vld [vmem:[%s297_s1 + $0x8] sm:$0xff]  }
   0x4   :  { %208 = vmatprep.subr.msk.bf16.mxu0 %vm79_vm0, %v216_v1  ;;  %v99_v8 = vsel %vm79_vm0, %v218_v7, 0  ;;  %v90_v14 = vsel %vm79_vm0, %v221_v13, 0  ;;  %v222_v15 = vld [vmem:[%s297_s1] sm:$0xff]   ;;  %v224_v17 = vld [vmem:[%s298_s0 + $0x8] ss:$0 sps:$4 sm:$0xff]  }
   0x5   :  { %v87_v16 = vsel %vm79_vm0, %v222_v15, 0 }
   0xb   :  { %190 = vmatpush3.bf16.xpose.msra.mxu0 %v105_v4 }
   0xc   :  { %209 = vmatprep.subr.msk.bf16.mxu0 %vm79_vm0, %v217_v3 }
  0x13   :  { %192 = vmatpush3.bf16.xpose.msra.mxu0 %v102_v6 }
  0x14   :  { %210 = vmatprep.subr.msk.bf16.mxu0 %vm79_vm0, %v218_v7 }
  0x1b   :  { %194 = vmatpush3.bf16.xpose.msra.mxu0 %v99_v8 }
  0x1c   :  { %211 = vmatprep.subr.msk.bf16.mxu0 %vm79_vm0, %v219_v9 }
  0x23   :  { %196 = vmatpush3.bf16.xpose.msra.mxu0 %v96_v10 }
  0x24   :  { %212 = vmatprep.subr.msk.bf16.mxu0 %vm79_vm0, %v220_v11 }
  0x2b   :  { %198 = vmatpush3.bf16.xpose.msra.mxu0 %v93_v12 }
  0x2c   :  { %213 = vmatprep.subr.msk.bf16.mxu0 %vm79_vm0, %v221_v13 }
  0x33   :  { %200 = vmatpush3.bf16.xpose.msra.mxu0 %v90_v14 }
  0x34   :  { %214 = vmatprep.subr.msk.bf16.mxu0 %vm79_vm0, %v222_v15 }
  0x3b   :  { %202 = vmatpush3.bf16.xpose.msra.mxu0 %v87_v16 }
  0x42   :  { %204 = vmatmul.mubr.msk.bf16.vlgmr.msra.gmra.mxu0 %vm79_vm0, %v224_v17 }
 0x102   :  { %v205_v18 = vpop.f32.mrf.mxu0 }
 0x103   :  { %160 = vst [vmem:[%s299_s2 + $0x10] sm:$0xff] %v205_v18 }
 0x104   :  { %v144_v19 = vpop.f32.mrf.mxu0 }
 0x105   :  { %158 = vst [vmem:[%s299_s2] sm:$0xff] %v144_v19 }
 0x106   :  { %v206_v20 = vpop.f32.mrf.mxu0 }
 0x108   :  { %v147_v21 = vpop.f32.mrf.mxu0 }
 0x109   :  { %159 = vst [vmem:[%s299_s2 + $0x8] sm:$0xff] %v147_v21 }

// kernel: _lambda_.3
= control target key start
LH: loop header
LB: loop body
LE: loop exit
PB: predicated region body
PF: predicated region fallthrough
CT: control target
= control target key end

     0   :  { %vm64_vm0 = vcmask 130048   ;;  %vm177_vm1 = vcmask 261120   ;;  %vm287_vm2 = vcmask 257024   ;;  %s466_s1 = inlined_call_operand.vmem [shape: bf16[16,32], index: 1, kind: input, shape index: {}]   ;;  %s467_s0 = inlined_call_operand.vmem [shape: bf16[64,16], index: 0, kind: input, shape index: {}]   ;;  %s468_s3 = inlined_call_operand.vmem [shape: bf16[32,32], index: 3, kind: input, shape index: {}]   ;;  %s469_s2 = inlined_call_operand.vmem [shape: f32[1,32], index: 2, kind: input, shape index: {}]   ;;  %s470_s4 = inlined_call_operand.vmem [shape: f32[1,32], index: 4, kind: input, shape index: {}]   ;;  %s471_s5 = inlined_call_operand.vmem [shape: bf16[64,32], index: 5, kind: output, shape index: {}]  }
   0x1   :  { %v366_v0 = vld [vmem:[%s466_s1] sm:$0xff]   ;;  %v368_v2 = vld [vmem:[%s467_s0 + $0x8] sm:$0xff]   ;;  %v369_v3 = vld [vmem:[%s467_s0 + $0x10] sm:$0xff]  }
   0x2   :  { %v367_v1 = vld [vmem:[%s467_s0] sm:$0xff]   ;;  %344 = vmatprep.subr.bf16.mxu0 %v366_v0  ;;  %v370_v4 = vld [vmem:[%s467_s0 + $0x18] sm:$0xff]   ;;  %v371_v5 = vld [vmem:[%s468_s3 + $0x8] sm:$0xff]  }
   0x3   :  { %345 = vmatpush3.bf16.msra.mxu0 %v366_v0  ;;  %346 = vmatprep.mubr.msk.bf16.mxu0 %vm64_vm0, %v367_v1  ;;  %v372_v6 = vld [vmem:[%s468_s3] sm:$0xff]  }
   0x4   :  { %354 = vmatprep.subr.bf16.mxu1 %v371_v5  ;;  %v300_v9 = vld [vmem:[%s469_s2] ss:$0 sm:$0xff] }
   0x5   :  { %355 = vmatpush3.bf16.msra.mxu1 %v371_v5  ;;  %v310_v36 = vld [vmem:[%s470_s4] ss:$0 sm:$0xff] }
   0x6   :  { %347 = vmatmul.mubr.msk.bf16.vlgmr.msra.gmra.mxu0 %vm64_vm0, %v368_v2  ;;  %356 = vmatprep.subr.bf16.mxu1 %v372_v6 }
   0x7   :  { %350 = vmatprep.mubr.msk.bf16.mxu0 %vm64_vm0, %v369_v3 }
   0x9   :  { %357 = vmatpush3.bf16.msra.mxu1 %v372_v6 }
   0xe   :  { %351 = vmatmul.mubr.msk.bf16.gmra.mxu0 %vm64_vm0, %v370_v4 }
  0xc6   :  { %v348_v7 = vpop.f32.mrf.mxu0 }
  0xc7   :  { %v120_v13 = vadd.f32 %v348_v7, %v300_v9 }
  0xc8   :  { %v111_v8 = vpop.f32.mrf.mxu0 }
  0xc9   :  { %v112_v11 = vadd.f32 %v300_v9, %v111_v8  ;;  %v144_v20 = vmax.f32 %v120_v13, 0.0 }
  0xca   :  { %v349_v10 = vpop.f32.mrf.mxu0 }
  0xcb   :  { %v123_v12 = vadd.f32 %v349_v10, %v300_v9  ;;  %v142_v18 = vmax.f32 %v112_v11, 0.0 }
  0xcc   :  { %v114_v14 = vpop.f32.mrf.mxu0 }
  0xcd   :  { %v115_v15 = vadd.f32 %v300_v9, %v114_v14  ;;  %v145_v16 = vmax.f32 %v123_v12, 0.0 }
  0xce   :  { %v352_v17 = vpop.f32.mrf.mxu0 }
  0xcf   :  { %v143_v19 = vmax.f32 %v115_v15, 0.0  ;;  %v151_v23 = vpack.c.bf16 %v145_v16, %v144_v20  ;;  %v136_v27 = vadd.f32 %v352_v17, %v300_v9 }
  0xd0   :  { %v127_v21 = vpop.f32.mrf.mxu0 }
  0xd1   :  { %v150_v22 = vpack.c.bf16 %v143_v19, %v142_v18  ;;  %v128_v25 = vadd.f32 %v300_v9, %v127_v21  ;;  %v148_v33 = vmax.f32 %v136_v27, 0.0 }
  0xd2   :  { %v353_v24 = vpop.f32.mrf.mxu0 }
  0xd3   :  { %v139_v26 = vadd.f32 %v353_v24, %v300_v9  ;;  %358 = vmatprep.mubr.msk.bf16.mxu1 %vm177_vm1, %v150_v22  ;;  %v146_v31 = vmax.f32 %v128_v25, 0.0 }
  0xd4   :  { %v130_v28 = vpop.f32.mrf.mxu0  ;;  %359 = vmatmul.mubr.msk.bf16.vlgmr.msra.gmra.mxu1 %vm177_vm1, %v151_v23 }
  0xd5   :  { %v131_v29 = vadd.f32 %v300_v9, %v130_v28  ;;  %v149_v30 = vmax.f32 %v139_v26, 0.0 }
  0xd7   :  { %v147_v32 = vmax.f32 %v131_v29, 0.0  ;;  %v153_v35 = vpack.c.bf16 %v149_v30, %v148_v33 }
  0xd9   :  { %v152_v34 = vpack.c.bf16 %v147_v32, %v146_v31 }
  0xdb   :  { %362 = vmatprep.mubr.msk.bf16.mxu1 %vm177_vm1, %v152_v34 }
  0xdc   :  { %363 = vmatmul.mubr.msk.bf16.gmra.mxu1 %vm177_vm1, %v153_v35 }
 0x194   :  { %v360_v37 = vpop.f32.mrf.mxu1 }
 0x195   :  { %v233_v38 = vadd.f32 %v360_v37, %v310_v36 }
 0x196   :  { %v224_v39 = vpop.f32.mrf.mxu1 }
 0x197   :  { %v327_v40 = vpack.c.bf16 %v233_v38, %v233_v38  ;;  %v225_v41 = vadd.f32 %v310_v36, %v224_v39 }
 0x198   :  { %v361_v42 = vpop.f32.mrf.mxu1 }
 0x199   :  { %290 = vst.msk [vmem:[%s471_s5 + $0x8] sm:$0xf] %vm287_vm2, %v327_v40  ;;  %v325_v43 = vpack.c.bf16 %v225_v41, %v225_v41  ;;  %v236_v44 = vadd.f32 %v361_v42, %v310_v36 }
 0x19a   :  { %v227_v45 = vpop.f32.mrf.mxu1 }
 0x19b   :  { %288 = vst.msk [vmem:[%s471_s5] sm:$0xf] %vm287_vm2, %v325_v43  ;;  %v328_v46 = vpack.c.bf16 %v236_v44, %v236_v44  ;;  %v228_v47 = vadd.f32 %v310_v36, %v227_v45 }
 0x19c   :  { %v364_v48 = vpop.f32.mrf.mxu1 }
 0x19d   :  { %291 = vst.msk [vmem:[%s471_s5 + $0xc] sm:$0xf] %vm287_vm2, %v328_v46  ;;  %v326_v49 = vpack.c.bf16 %v228_v47, %v228_v47  ;;  %v249_v50 = vadd.f32 %v364_v48, %v310_v36 }
 0x19e   :  { %v240_v51 = vpop.f32.mrf.mxu1 }
 0x19f   :  { %289 = vst.msk [vmem:[%s471_s5 + $0x4] sm:$0xf] %vm287_vm2, %v326_v49  ;;  %v331_v52 = vpack.c.bf16 %v249_v50, %v249_v50  ;;  %v241_v53 = vadd.f32 %v310_v36, %v240_v51 }
 0x1a0   :  { %v365_v54 = vpop.f32.mrf.mxu1 }
 0x1a1   :  { %294 = vst.msk [vmem:[%s471_s5 + $0x18] sm:$0xf] %vm287_vm2, %v331_v52  ;;  %v329_v55 = vpack.c.bf16 %v241_v53, %v241_v53  ;;  %v252_v56 = vadd.f32 %v365_v54, %v310_v36 }
 0x1a2   :  { %v243_v57 = vpop.f32.mrf.mxu1 }
 0x1a3   :  { %292 = vst.msk [vmem:[%s471_s5 + $0x10] sm:$0xf] %vm287_vm2, %v329_v55  ;;  %v332_v58 = vpack.c.bf16 %v252_v56, %v252_v56  ;;  %v244_v59 = vadd.f32 %v310_v36, %v243_v57 }
 0x1a5   :  { %295 = vst.msk [vmem:[%s471_s5 + $0x1c] sm:$0xf] %vm287_vm2, %v332_v58  ;;  %v330_v60 = vpack.c.bf16 %v244_v59, %v244_v59 }
 0x1a7   :  { %293 = vst.msk [vmem:[%s471_s5 + $0x14] sm:$0xf] %vm287_vm2, %v330_v60 }

// kernel: _lambda_.4
= control target key start
LH: loop header
LB: loop body
LE: loop exit
PB: predicated region body
PF: predicated region fallthrough
CT: control target
= control target key end

     0   :  { %s7386_s0 = inlined_call_operand.vmem [shape: s32[2], index: 0, kind: input, shape index: {}]   ;;  %s7387_s2 = inlined_call_operand.vmem [shape: f32[8,16], index: 2, kind: input, shape index: {}]   ;;  %s7388_s3 = inlined_call_operand.vmem [shape: f32[16,32], index: 3, kind: input, shape index: {}]   ;;  %s7389_s4 = inlined_call_operand.vmem [shape: f32[1,32], index: 4, kind: input, shape index: {}]   ;;  %s7390_s5 = inlined_call_operand.vmem [shape: f32[32,32], index: 5, kind: input, shape index: {}]   ;;  %s7391_s6 = inlined_call_operand.vmem [shape: f32[1,32], index: 6, kind: input, shape index: {}]   ;;  %s7392_s7 = inlined_call_operand.vmem [shape: f32[2,56,48], index: 7, kind: input, shape index: {}]   ;;  %s7393_s8 = inlined_call_operand.vmem [shape: f32[2,48,32], index: 8, kind: input, shape index: {}]   ;;  %s7394_s9 = inlined_call_operand.vmem [shape: f32[2,1,32], index: 9, kind: input, shape index: {}]   ;;  %s7395_s10 = inlined_call_operand.vmem [shape: f32[4,96,32], index: 10, kind: input, shape index: {}]   ;;  %s7396_s11 = inlined_call_operand.vmem [shape: f32[4,96,1], index: 11, kind: input, shape index: {}]   ;;  %s7397_s12 = inlined_call_operand.vmem [shape: f32[4,32,32], index: 12, kind: input, shape index: {}]   ;;  %s7398_s13 = inlined_call_operand.vmem [shape: f32[4,1,32], index: 13, kind: input, shape index: {}]   ;;  %s7399_s14 = inlined_call_operand.vmem [shape: f32[2,6,32], index: 14, kind: input, shape index: {}]   ;;  %s7400_s15 = inlined_call_operand.vmem [shape: f32[2,32,64], index: 15, kind: input, shape index: {}]   ;;  %s7401_s16 = inlined_call_operand.vmem [shape: f32[2,1,64], index: 16, kind: input, shape index: {}]   ;;  %s7402_s17 = inlined_call_operand.vmem [shape: f32[2,64,32], index: 17, kind: input, shape index: {}]   ;;  %s7403_s18 = inlined_call_operand.vmem [shape: f32[2,1,32], index: 18, kind: input, shape index: {}]   ;;  %s7404_s19 = inlined_call_operand.vmem [shape: f32[2,32], index: 19, kind: input, shape index: {}]   ;;  %s7405_s20 = inlined_call_operand.vmem [shape: f32[96,32], index: 20, kind: input, shape index: {}]   ;;  %s7406_s21 = inlined_call_operand.vmem [shape: f32[96,1], index: 21, kind: input, shape index: {}]   ;;  %s7407_s22 = inlined_call_operand.vmem [shape: f32[32,32], index: 22, kind: input, shape index: {}]   ;;  %s7408_s23 = inlined_call_operand.vmem [shape: f32[1,32], index: 23, kind: input, shape index: {}]   ;;  %s7409_s24 = inlined_call_operand.vmem [shape: f32[64,5], index: 24, kind: input, shape index: {}]   ;;  %s7410_s25 = inlined_call_operand.vmem [shape: f32[1,5], index: 25, kind: input, shape index: {}]   ;;  %s7411_s26 = inlined_call_operand.vmem [shape: f32[3,8,32], index: 26, kind: output, shape index: {0}]   ;;  %s7412_s27 = inlined_call_operand.vmem [shape: f32[3,8,5], index: 27, kind: output, shape index: {1}]   ;;  %s7413_s1 = inlined_call_operand.vmem [shape: s32[2], index: 1, kind: input, shape index: {}]  }
   0x1   :  { %7425 = sst [smem:[#allocation10_spill]] %s7386_s0 }
   0x2   :  { %7426 = sst [smem:[#allocation11_spill]] %s7387_s2 }
   0x3   :  { %7427 = sst [smem:[#allocation12_spill]] %s7388_s3 }
   0x4   :  { %7428 = sst [smem:[#allocation13_spill]] %s7389_s4 }
   0x5   :  { %7429 = sst [smem:[#allocation14_spill]] %s7390_s5 }
   0x6   :  { %7430 = sst [smem:[#allocation15_spill]] %s7391_s6  ;;  %s37_s6 = sshll.u32 %s7413_s1, 4  ;;  %s38_s6 = int_to_ptr.vmem [resolvable:$true] %s37_s6 }
   0x7   :  { %7431 = sst [smem:[#allocation16_spill]] %s7392_s7 }
   0x8   :  { %7432 = sst [smem:[#allocation17_spill]] %s7393_s8 }
   0x9   :  { %7433 = sst [smem:[#allocation18_spill]] %s7394_s9 }
   0xa   :  { %7434 = sst [smem:[#allocation19_spill]] %s7395_s10 }
   0xb   :  { %7435 = sst [smem:[#allocation20_spill]] %s7396_s11 }
   0xc   :  { %7436 = sst [smem:[#allocation21_spill]] %s7397_s12 }
   0xd   :  { %7437 = sst [smem:[#allocation22_spill]] %s7398_s13 }
   0xe   :  { %7438 = sst [smem:[#allocation23_spill]] %s7407_s22 }
   0xf   :  { %7439 = sst [smem:[#allocation24_spill]] %s7408_s23 }
  0x10   :  { %7440 = sst [smem:[#allocation25_spill]] %s7409_s24 }
  0x11   :  { %7441 = sst [smem:[#allocation26_spill]] %s7410_s25 }
  0x12   :  { %7442 = sst [smem:[#allocation27_spill]] %s7411_s26 }
  0x13   :  { %7443 = sst [smem:[#allocation28_spill]] %s7412_s27 }
  0x14   :  { %s7444_s9 = sld [smem:[#allocation10_spill]] }
  0x1a   :  { %s33_s22 = sshll.u32 %s7444_s9, 4  ;;  %s34_s22 = int_to_ptr.vmem [resolvable:$true] %s33_s22 }
  0x1b   :  { %s6353_s28 = scalar_lea.vmem %s34_s22, 16  ;;  %p6358_p1 = scmp.lt.s32.totalorder %s34_s22, %s34_s22 }
  0x1c   :  { %p6354_p0 = scmp.ne.s32.totalorder %s34_s22, %s6353_s28  ;;  %p6359_p2 = scmp.lt.s32.totalorder %s6353_s28, %s6353_s28 }
  0x1e   :  { %p6360_p3 = por %p6359_p2, %p6358_p1 }
  0x20   :  { %p6361_p4 = pnand %p6360_p3, %p6354_p0 }
  0x22   :  { %6364 = shalt.err (!%p6361_p4)  }
  0x23   :  { %s6387_s0 = smov [#allocation4]   ;;  %s6365_s11 = scalar_lea.vmem %s38_s6, 16 }
  0x24   :  { %36 = dma.vmem_to_smem %s34_s22, 16, %s6387_s0, [#allocation3] }
  0x25   :  { %p6366_p5 = scmp.ne.s32.totalorder %s38_s6, %s6365_s11  ;;  %p6370_p6 = scmp.lt.s32.totalorder %s38_s6, %s38_s6 }
  0x26   :  { %p6371_p7 = scmp.lt.s32.totalorder %s6365_s11, %s6365_s11 }
  0x28   :  { %p6372_p8 = por %p6371_p7, %p6370_p6 }
  0x2a   :  { %p6373_p9 = pnand %p6372_p8, %p6366_p5 }
  0x2c   :  { %6376 = shalt.err (!%p6373_p9)  }
  0x2d   :  { %s6388_s29 = smov [#allocation5]  }
  0x2e   :  { %40 = dma.vmem_to_smem %s38_s6, 16, %s6388_s29, [#allocation3] }
  0x2f   :  { %6381 = dma.done.wait [#allocation3], 32 }
  0x30   :  { %6382 = vsyncadd [#allocation3], 4294967264 }
  0x31   :  { %42 = sfence }
  0x32   :  { %s6543_s1 = smov 0  }
  0x33 LB: > { %7445 = sst [smem:[#allocation7_spill]] %s6385_s1  ;;  %s6549_s22 = sadd.s32 4294967295, %s6385_s1   ;;  %s6385_s1 = sphi %s6543_s1, %s48_s1  }
  0x34   : > { %p5585_p10 = scmp.ge.s32.totalorder %s6385_s1, 1  ;;  %p849_p11 = scmp.lt.s32.totalorder %s6385_s1, 3 }
  0x36   : > { %p850_p12 = pnand %p5585_p10, %p849_p11 }
  0x38   : > { %853 = sbr.rel (%p850_p12) target bundleno = 8417 (0x20e1), region = 116 }
  0x3d   : > { %s974_s2 = sld [smem:[#allocation4 + %s6549_s22]]  ;;  %p5601_p11 = scmp.ne.s32.totalorder %s6549_s22, 0 }
  0x3e   : > { %s981_s7 = sld [smem:[#allocation4 + %s6549_s22]] }
  0x3f   : > { %s988_s12 = sld [smem:[#allocation4 + %s6549_s22]] }
  0x40   : > { %s993_s3 = sld [smem:[#allocation4 + %s6549_s22]] }
  0x41   : > { %s1002_s4 = sld [smem:[#allocation4 + %s6549_s22]] }
  0x42   : > { %s1011_s8 = sld [smem:[#allocation4 + %s6549_s22]] }
  0x43   : > { %p975_p13 = scmp.lt.s32.totalorder %s974_s2, 1  ;;  %s6560_s5 = sld [smem:[#allocation4 + %s6549_s22]] }
  0x44   : > { %p982_p0 = scmp.lt.s32.totalorder %s981_s7, 1  ;;  %s6563_s9 = sld [smem:[#allocation4 + %s6549_s22]] }
  0x45   : > { %s7482_s2 = smov (!%p975_p13, %s974_s2), 1  ;;  %p989_p1 = scmp.lt.s32.totalorder %s988_s12, 1 }
  0x46   : > { %s7484_s7 = smov (!%p982_p0, %s981_s7), 1  ;;  %s6284_s30 = smul.u32 56, %s7482_s2 }
  0x47   : > { %s6285_s10 = smul.u32 48, %s7484_s7  ;;  %s5588_s6 = sshll.u32 %s993_s3, 1 }
  0x48   : > { %s7446_s11 = sld [smem:[#allocation16_spill]]  ;;  %p995_p2 = scmp.lt.s32.totalorder %s5588_s6, 3 }
  0x49   : > { %s7447_s25 = sld [smem:[#allocation17_spill]]  ;;  %s5590_s23 = sshll.u32 %s1002_s4, 1 }
  0x4a   : > { %s7486_s12 = smov (!%p989_p1, %s988_s12), 1  ;;  %s7488_s6 = smov (!%p995_p2, %s5588_s6), 3 }
  0x4b   : > { %7448 = sst [smem:[#allocation8_spill]] %s7486_s12  ;;  %p1004_p3 = scmp.lt.s32.totalorder %s5590_s23, 3 }
  0x4c   : > { %s5592_s28 = sshll.u32 %s1011_s8, 1  ;;  %s7450_s1 = sld [smem:[#allocation19_spill]] }
  0x4d   : > { %s7490_s23 = smov (!%p1004_p3, %s5590_s23), 3  ;;  %p1013_p4 = scmp.lt.s32.totalorder %s5592_s28, 3 }
  0x4e   : > { %s6568_s29 = scalar_lea.vmem %s7446_s11, %s6284_s30  ;;  %s6286_s30 = smul.u32 96, %s7488_s6 }
  0x4f   : > { %s6573_s26 = scalar_lea.vmem %s7447_s25, %s6285_s10  ;;  %s6287_s10 = smul.u32 96, %s7490_s23 }
  0x50   : > { %s5595_s0 = sshll.u32 %s6560_s5, 1  ;;  %s7492_s28 = smov (!%p1013_p4, %s5592_s28), 3 }
  0x51   : > { %s7451_s7 = sld [smem:[#allocation20_spill]]  ;;  %p1022_p5 = scmp.lt.s32.totalorder %s5595_s0, 3 }
  0x52   : > { %s6584_s4 = scalar_lea.vmem %s7450_s1, %s6286_s30  ;;  %s5754_s8 = sshll.u32 %s7492_s28, 5 }
  0x53   : > { %p1028_p6 = scmp.lt.s32.totalorder %s6563_s9, 1  ;;  %s7453_s12 = sld [smem:[#allocation21_spill]] }
  0x54   : > { %s1033_s30 = sld [smem:[#allocation4 + %s6549_s22]]  ;;  %s7494_s0 = smov (!%p1022_p5, %s5595_s0), 3 }
  0x55   : > { %s7496_s9 = smov (!%p1028_p6, %s6563_s9), 1  ;;  %s7454_s13 = sld [smem:[#allocation22_spill]] }
  0x56   : > { %s1040_s1 = sld [smem:[#allocation4 + %s6549_s22]]  ;;  %s5596_s11 = sshll.u32 %s7496_s9, 3 }
  0x57   : > { %s6590_s3 = scalar_lea.vmem %s7451_s7, %s6287_s10  ;;  %s1045_s10 = sld [smem:[#allocation4 + %s6549_s22]] }
  0x58   : > { %7452 = sst [smem:[#allocation9_spill]] %s6590_s3  ;;  %s6610_s28 = scalar_lea.vmem %s7399_s14, %s5596_s11 }
  0x59   : > { %s6596_s27 = scalar_lea.vmem %s7453_s12, %s5754_s8  ;;  %s1052_s3 = sld [smem:[#allocation4 + %s6549_s22]] }
  0x5a   : > { %p1034_p7 = scmp.lt.s32.totalorder %s1033_s30, 1  ;;  %s7455_s9 = sld [smem:[#allocation12_spill]] (!%p5601_p11) }
  0x5b   : > { %s6603_s5 = scalar_lea.vmem %s7454_s13, %s7494_s0  ;;  %s7456_s2 = sld [smem:[#allocation14_spill]] (!%p5601_p11) }
  0x5c   : > { %s7498_s30 = smov (!%p1034_p7, %s1033_s30), 1  ;;  %p1041_p8 = scmp.lt.s32.totalorder %s1040_s1, 1 }
  0x5d   : > { %s5755_s24 = sshll.u32 %s7498_s30, 5  ;;  %p1046_p9 = scmp.lt.s32.totalorder %s1045_s10, 1 }
  0x5e   : > { %s6616_s6 = scalar_lea.vmem %s7400_s15, %s5755_s24  ;;  %s7500_s1 = smov (!%p1041_p8, %s1040_s1), 1 }
  0x5f   : > { %p1053_p10 = scmp.lt.s32.totalorder %s1052_s3, 1  ;;  %s7502_s10 = smov (!%p1046_p9, %s1045_s10), 1 }
  0x60   : > { %s5756_s25 = sshll.u32 %s7502_s10, 6  ;;  %1060 = sbr.rel (%p5601_p11) target bundleno = 499 (0x1f3), region = 120 }
  0x61   : > { %s6627_s30 = scalar_lea.vmem %s7402_s17, %s5756_s25  ;;  %s7504_s3 = smov (!%p1053_p10, %s1052_s3), 1 }
  0x62   : > { %s7457_s12 = sld [smem:[#allocation11_spill]] (!%p5601_p11) }
  0x63   : > { %s7458_s24 = sld [smem:[#allocation13_spill]] (!%p5601_p11) }
  0x64   : > { %s7459_s10 = sld [smem:[#allocation15_spill]] (!%p5601_p11) }
  0x65   : > { %v1063_v0 = vld [vmem:[%s7455_s9 + $0x8] sm:$0xff]  ;;  %v6389_v1 = vmov 0.0   ;;  %v1062_v2 = vld [vmem:[%s7455_s9] sm:$0xff]  ;;  %vm6390_vm0 = vmmov 0   ;;  %v1149_v3 = vld [vmem:[%s7456_s2 + $0x18] sm:$0xff]  ;;  %vm1071_vm1 = vcmask 130048  }
  0x66   : > { %5927 = vmatprep.subr.mxu0 %v6389_v1  ;;  %5931 = vmatprep.mubr.msk.f32.mxu0 %vm6390_vm0, %v6389_v1  ;;  %v1148_v5 = vld [vmem:[%s7456_s2 + $0x10] sm:$0xff]  ;;  %v1147_v6 = vld [vmem:[%s7456_s2 + $0x8] sm:$0xff]  ;;  %v1146_v7 = vld [vmem:[%s7456_s2] sm:$0xff]  ;;  %vm1157_vm2 = vcmask 261120  }
  0x67   : > { %5928 = vmatpush3.msra.mxu0 %v1063_v0  ;;  %5934 = vmatprep.subr.mxu1 %v6389_v1 }
  0x68   : > { %v1061_v4 = vld [vmem:[%s7457_s12] sm:$0xff]  ;;  %5929 = vmatprep.subr.mxu0 %v6389_v1  ;;  %5935 = vmatpush3.msra.mxu1 %v1149_v3 }
  0x69   : > { %5930 = vmatpush3.msra.mxu0 %v1062_v2  ;;  %5936 = vmatprep.subr.mxu1 %v6389_v1  ;;  %v5602_v8 = vld [vmem:[%s7458_s24] ss:$0 sm:$0xff] }
  0x6a   : > { %5932 = vmatmul.mubr.msk.f32.vlgmr.msra.gmra.mxu0 %vm1071_vm1, %v1061_v4  ;;  %5942 = vmatprep.mubr.msk.f32.mxu1 %vm6390_vm0, %v6389_v1  ;;  %v5604_v13 = vld [vmem:[%s7459_s10] ss:$0 sm:$0xff] }
  0x6b   : > { %5937 = vmatpush3.msra.mxu1 %v1148_v5 }
  0x6c   : > { %5938 = vmatprep.subr.mxu1 %v6389_v1 }
  0x6d   : > { %5939 = vmatpush3.msra.mxu1 %v1147_v6 }
  0x6e   : > { %5940 = vmatprep.subr.mxu1 %v6389_v1 }
  0x6f   : > { %5941 = vmatpush3.msra.mxu1 %v1146_v7 }
 0x12a   : > { %v1141_v9 = vpop.f32.mrf.mxu0 }
 0x12b   : > { %v1142_v10 = vadd.f32 %v5602_v8, %v1141_v9 }
 0x12c   : > { %v5933_v11 = vpop.f32.mrf.mxu0 }
 0x12d   : > { %v1145_v12 = vmax.f32 %v1142_v10, 0.0 }
 0x12f   : > { %5943 = vmatmul.mubr.msk.f32.vlgmr.msra.gmra.mxu1 %vm1157_vm2, %v1145_v12 }
 0x1ef   : > { %v1227_v14 = vpop.f32.mrf.mxu1 }
 0x1f0   : > { %v1228_v15 = vadd.f32 %v5604_v13, %v1227_v14 }
 0x1f1   : > { %v5944_v16 = vpop.f32.mrf.mxu1 }
 0x1f2   : > { %1231 = vst.msk [vmem:[#allocation2] sm:$0xff] %vm1157_vm2, %v1228_v15 }
 0x1f3 PF: > { %vm1272_vm3 = vcmask 261120   ;;  %v1234_v24 = vld [vmem:[%s7405_s20] sm:$0xff]  ;;  %v6391_v27 = vmov 0   ;;  %v1247_v28 = vld [vmem:[%s7406_s21 + $0x8] sm:$0xff]  ;;  %v1249_v29 = vld [vmem:[%s7406_s21 + $0x18] sm:$0xff]  ;;  %v1287_v42 = vlaneseq  ;;  %v6392_v57 = vmov 0.0  }
 0x1f4   : > { %v1242_v25 = vld [vmem:[%s7405_s20 + $0x40] sm:$0xff]  ;;  %5947 = vmatprep.mubr.msk.f32.mxu0 %vm1272_vm3, %v1234_v24  ;;  %6306 = vset.pattern.permute.xlu1 %v6391_v27  ;;  %v1248_v31 = vld [vmem:[%s7406_s21 + $0x10] sm:$0xff]  ;;  %v1251_v32 = vld [vmem:[%s7406_s21 + $0x28] sm:$0xff]  ;;  %vm6393_vm4 = vmmov 0   ;;  %vm1782_vm5 = vcmask 392192   ;;  %s7460_s25 = sld [smem:[#allocation23_spill]] }
 0x1f5   : > { %5959 = vmatprep.mubr.msk.f32.mxu1 %vm1272_vm3, %v1242_v25  ;;  %v1246_v26 = vld [vmem:[%s7406_s21] sm:$0xff]  ;;  %6307 = vset.pattern.permute.xlu0 %v6391_v27  ;;  %v1252_v33 = vld [vmem:[%s7406_s21 + $0x30] sm:$0xff]  ;;  %v1253_v34 = vld [vmem:[%s7406_s21 + $0x38] sm:$0xff]  ;;  %v6714_v43 = vshrl.u32 %v1287_v42, 7  ;;  %s7461_s8 = sld [smem:[#allocation8_spill]]  ;;  %vm1682_vm6 = vcmask 523264  }
 0x1f6   : > { %1299 = vperm.xlu1 %6306, %v1246_v26   ;;  %v1250_v30 = vld [vmem:[%s7406_s21 + $0x20] sm:$0xff]  ;;  %v1255_v36 = vld [vmem:[%s7406_s21 + $0x48] sm:$0xff]  ;;  %v1256_v37 = vld [vmem:[%s7406_s21 + $0x50] sm:$0xff]  ;;  %s7462_s10 = sld [smem:[#allocation9_spill]]  ;;  %vm1760_vm7 = vcmask 39936   ;;  %vm2282_vm8 = vcmask 64512  }
 0x1f7   : > { %v1254_v35 = vld [vmem:[%s7406_s21 + $0x40] sm:$0xff]  ;;  %v1257_v38 = vld [vmem:[%s7406_s21 + $0x58] sm:$0xff]  ;;  %v1289_v44 = vsub.s32 0, %v6714_v43  ;;  %v1294_v46 = vsub.s32 1, %v6714_v43  ;;  %v1235_v53 = vld [vmem:[%s7405_s20 + $0x8] sm:$0xff]  ;;  %s7463_s12 = sld [smem:[#allocation18_spill]] }
 0x1f8   : > { %v1233_v45 = vld [vmem:[%s7404_s19] sm:$0x3]  ;;  %v1243_v54 = vld [vmem:[%s7405_s20 + $0x48] sm:$0xff]  ;;  %v1236_v55 = vld [vmem:[%s7405_s20 + $0x10] sm:$0xff]  ;;  %s7465_s7 = sld [smem:[#allocation25_spill]]  ;;  %vm2358_vm10 = vcmask 457728  }
 0x1f9   : > { %v6663_v17 = vld [vmem:[#allocation2] sm:$0xff]  ;;  %v6723_v47 = vrot.slane %v1233_v45, %v1289_v44  ;;  %v6727_v50 = vrot.slane %v1233_v45, %v1294_v46  ;;  %v1244_v56 = vld [vmem:[%s7405_s20 + $0x50] sm:$0xff]  ;;  %v1774_v58 = vld [vmem:[%s6573_s26 + $0x28] sm:$0xff]  ;;  %s7467_s23 = sld [smem:[#allocation27_spill]]  ;;  %p5732_p12 = scmp.ne.s32.totalorder %s6549_s22, 1 }
 0x1fa   : > { %v1273_v18 = vsel %vm1272_vm3, %v6663_v17, 0.0  ;;  %1304 = vperm.xlu1 %6306, %v1247_v28   ;;  %v1237_v59 = vld [vmem:[%s7405_s20 + $0x18] sm:$0xff]  ;;  %v1238_v61 = vld [vmem:[%s7405_s20 + $0x20] sm:$0xff]  ;;  %v1239_v0 = vld [vmem:[%s7405_s20 + $0x28] sm:$0xff]  ;;  %s7469_s0 = sld [smem:[#allocation28_spill]] }
 0x1fb   : > { %1274 = vadd.xlane.f32.xlu0 %v1273_v18  ;;  %v1245_v60 = vld [vmem:[%s7405_s20 + $0x58] sm:$0xff]  ;;  %v1773_v62 = vld [vmem:[%s6573_s26 + $0x20] sm:$0xff]  ;;  %v1240_v1 = vld [vmem:[%s7405_s20 + $0x30] sm:$0xff]  ;;  %s1904_s9 = sld [smem:[#allocation4 + %s6549_s22]] }
 0x1fc   : > { %v1772_v63 = vld [vmem:[%s6573_s26 + $0x18] sm:$0xff]  ;;  %v1771_v2 = vld [vmem:[%s6573_s26 + $0x10] sm:$0xff]  ;;  %v1770_v3 = vld [vmem:[%s6573_s26 + $0x8] sm:$0xff]  ;;  %s7476_s11 = sld [smem:[#allocation24_spill]] (!%p5732_p12) }
 0x1fd   : > { %v1241_v4 = vld [vmem:[%s7405_s20 + $0x38] sm:$0xff]  ;;  %v1769_v5 = vld [vmem:[%s6573_s26] sm:$0xff]  ;;  %v1763_v7 = vld [vmem:[%s6568_s29 + $0x8] sm:$0xff] }
 0x1fe   : > { %1314 = vperm.xlu1 %6306, %v1249_v29   ;;  %v1762_v6 = vld [vmem:[%s6568_s29] sm:$0xff]  ;;  %v1764_v8 = vld [vmem:[%s6568_s29 + $0x10] sm:$0xff]  ;;  %v1765_v9 = vld [vmem:[%s6568_s29 + $0x18] sm:$0xff] }
 0x1ff   : > { %v1766_v10 = vld [vmem:[%s6568_s29 + $0x20] sm:$0xff]  ;;  %v1767_v11 = vld [vmem:[%s6568_s29 + $0x28] sm:$0xff]  ;;  %v1768_v12 = vld [vmem:[%s6568_s29 + $0x30] sm:$0xff]  ;;  %s7477_s29 = sld [smem:[#allocation27_spill]] (!%p5732_p12) }
 0x200   : > { %v1915_v13 = vld [vmem:[%s6584_s4 + $0x20] sm:$0xff]  ;;  %v1261_v14 = vld [vmem:[%s7460_s25 + $0x18] sm:$0xff]  ;;  %v1260_v15 = vld [vmem:[%s7460_s25 + $0x10] sm:$0xff] }
 0x201   : > { %v1259_v16 = vld [vmem:[%s7460_s25 + $0x8] sm:$0xff]  ;;  %v1258_v18 = vld [vmem:[%s7460_s25] sm:$0xff]  ;;  %s7464_s25 = scalar_lea.vmem %s7463_s12, %s7461_s8  ;;  %s7466_s12 = sld [smem:[#allocation24_spill]] }
 0x202   : > { %1319 = vperm.xlu1 %6306, %v1250_v30   ;;  %s7468_s8 = sld [smem:[#allocation26_spill]] }
 0x203   : > { %s1905_s2 = sld [smem:[#allocation5 + %s1904_s9]] }
 0x206   : > { %1324 = vperm.xlu1 %6306, %v1251_v32  }
 0x20a   : > { %1329 = vperm.xlu1 %6306, %v1252_v33  }
 0x20e   : > { %1334 = vperm.xlu1 %6306, %v1253_v34  }
 0x212   : > { %1339 = vperm.xlu1 %6306, %v1254_v35  }
 0x216   : > { %1344 = vperm.xlu1 %6306, %v1255_v36  }
 0x21a   : > { %1349 = vperm.xlu1 %6306, %v1256_v37  }
 0x21e   : > { %1354 = vperm.xlu1 %6306, %v1257_v38  }
 0x284   : > { %v1275_v19 = vpop.xlane.xlu0 %1274 }
 0x285   : > { %v1277_v20 = vmul.f32 0.03125, %v1275_v19  ;;  %v1300_v19 = vpop.permute.xlu1 %1299 }
 0x287   : > { %v1278_v21 = vsub.f32 %v6663_v17, %v1277_v20 }
 0x289   : > { %v1279_v22 = vmul.f32 %v1278_v21, %v1278_v21  ;;  %v1305_v20 = vpop.permute.xlu1 %1304 }
 0x28b   : > { %v1280_v23 = vsel %vm1272_vm3, %v1279_v22, 0.0 }
 0x28c   : > { %1281 = vadd.xlane.f32.xlu0 %v1280_v23 }
 0x2a2   : > { %1309 = vperm.xlu0 %6307, %v1248_v31  }
 0x315   : > { %v1282_v39 = vpop.xlane.xlu0 %1281 }
 0x316   : > { %v1283_v40 = vmul.f32 0.03125, %v1282_v39 }
 0x318   : > { %v1284_v41 = vadd.f32 1e-05, %v1283_v40 }
 0x31a   : > { %6308 = vrsqrt.f32 %v1284_v41 }
 0x31d   : > { %v1310_v32 = vpop.permute.xlu0 %1309 }
 0x327   : > { %v6309_v48 = vpop.eup %6308 }
 0x328   : > { %v1286_v49 = vmul.f32 %v6309_v48, %v1278_v21  ;;  %v1315_v21 = vpop.permute.xlu1 %1314 }
 0x32a   : > { %v1291_v51 = vmul.f32 %v6723_v47, %v1286_v49 }
 0x32c   : > { %v1296_v52 = vadd.f32 %v6727_v50, %v1291_v51  ;;  %v1320_v22 = vpop.permute.xlu1 %1319 }
 0x32e   : > { %5945 = vmatprep.subr.msk.mxu0 %vm1272_vm3, %v1296_v52  ;;  %6282 = vmatprep.subr.msk.mxu1 %vm1272_vm3, %v1296_v52 }
 0x32f   : > { %5946 = vmatpush3.xpose.msk.msra.mxu0 %vm1272_vm3, %v1296_v52  ;;  %6283 = vmatpush3.xpose.msk.msra.mxu1 %vm1272_vm3, %v1296_v52 }
 0x330   : > { %5995 = vmatprep.subr.mxu0 %v6392_v57  ;;  %5965 = vmatprep.subr.mxu1 %v6392_v57  ;;  %v1325_v23 = vpop.permute.xlu1 %1324 }
 0x332   : > { %5948 = vmatmul.mubr.msk.f32.vlgmr.msra.gmra.mxu0 %vm1272_vm3, %v1235_v53  ;;  %5960 = vmatmul.mubr.msk.f32.vlgmr.msra.gmra.mxu1 %vm1272_vm3, %v1243_v54 }
 0x333   : > { %5950 = vmatprep.mubr.msk.f32.mxu0 %vm1272_vm3, %v1236_v55  ;;  %5962 = vmatprep.mubr.msk.f32.mxu1 %vm1272_vm3, %v1244_v56 }
 0x334   : > { %5996 = vmatpush3.msra.mxu0 %v1774_v58  ;;  %5966 = vmatpush3.msra.mxu1 %v1261_v14  ;;  %v1330_v28 = vpop.permute.xlu1 %1329 }
 0x335   : > { %5997 = vmatprep.subr.mxu0 %v6392_v57  ;;  %5967 = vmatprep.subr.mxu1 %v6392_v57 }
 0x336   : > { %5951 = vmatmul.mubr.msk.f32.gmra.mxu0 %vm1272_vm3, %v1237_v59  ;;  %5963 = vmatmul.mubr.msk.f32.gmra.mxu1 %vm1272_vm3, %v1245_v60 }
 0x337   : > { %5953 = vmatprep.mubr.msk.f32.mxu0 %vm1272_vm3, %v1238_v61  ;;  %5998 = vmatpush3.msra.mxu0 %v1773_v62 }
 0x338   : > { %5999 = vmatprep.subr.mxu0 %v6392_v57  ;;  %5973 = vmatprep.mubr.msk.f32.mxu1 %vm6393_vm4, %v6392_v57  ;;  %v1335_v37 = vpop.permute.xlu1 %1334 }
 0x339   : > { %6000 = vmatpush3.msra.mxu0 %v1772_v63  ;;  %5968 = vmatpush3.msra.mxu1 %v1260_v15 }
 0x33a   : > { %5954 = vmatmul.mubr.msk.f32.gmra.mxu0 %vm1272_vm3, %v1239_v0  ;;  %6001 = vmatprep.subr.mxu0 %v6392_v57 }
 0x33b   : > { %5956 = vmatprep.mubr.msk.f32.mxu0 %vm1272_vm3, %v1240_v1  ;;  %6002 = vmatpush3.msra.mxu0 %v1771_v2 }
 0x33c   : > { %6003 = vmatprep.subr.mxu0 %v6392_v57  ;;  %5969 = vmatprep.subr.mxu1 %v6392_v57  ;;  %v1340_v52 = vpop.permute.xlu1 %1339 }
 0x33d   : > { %6004 = vmatpush3.msra.mxu0 %v1770_v3  ;;  %5970 = vmatpush3.msra.mxu1 %v1259_v16 }
 0x33e   : > { %5957 = vmatmul.mubr.msk.f32.gmra.mxu0 %vm1272_vm3, %v1241_v4  ;;  %6005 = vmatprep.subr.mxu0 %v6392_v57 }
 0x33f   : > { %6006 = vmatpush3.msra.mxu0 %v1769_v5  ;;  %6007 = vmatprep.mubr.msk.f32.mxu0 %vm6393_vm4, %v6392_v57 }
 0x340   : > { %5971 = vmatprep.subr.mxu1 %v6392_v57  ;;  %v1345_v0 = vpop.permute.xlu1 %1344 }
 0x341   : > { %5972 = vmatpush3.msra.mxu1 %v1258_v18 }
 0x342   : > { %6008 = vmatmul.mubr.msk.f32.vlgmr.msra.gmra.mxu0 %vm1782_vm5, %v1762_v6  ;;  %5976 = vmatprep.subr.mxu1 %v6392_v57 }
 0x343   : > { %6010 = vmatprep.mubr.msk.f32.mxu0 %vm6393_vm4, %v6392_v57 }
 0x346   : > { %6011 = vmatmul.mubr.msk.f32.gmra.mxu0 %vm1782_vm5, %v1763_v7  ;;  %v1350_v7 = vpop.permute.xlu1 %1349 }
 0x347   : > { %6013 = vmatprep.mubr.msk.f32.mxu0 %vm6393_vm4, %v6392_v57 }
 0x34a   : > { %6014 = vmatmul.mubr.msk.f32.gmra.mxu0 %vm1782_vm5, %v1764_v8  ;;  %v1355_v16 = vpop.permute.xlu1 %1354 }
 0x34b   : > { %6016 = vmatprep.mubr.msk.f32.mxu0 %vm6393_vm4, %v6392_v57 }
 0x34e   : > { %6017 = vmatmul.mubr.msk.f32.gmra.mxu0 %vm1782_vm5, %v1765_v9 }
 0x34f   : > { %6019 = vmatprep.mubr.msk.f32.mxu0 %vm6393_vm4, %v6392_v57 }
 0x352   : > { %6020 = vmatmul.mubr.msk.f32.gmra.mxu0 %vm1782_vm5, %v1766_v10 }
 0x353   : > { %6022 = vmatprep.mubr.msk.f32.mxu0 %vm6393_vm4, %v6392_v57 }
 0x356   : > { %6023 = vmatmul.mubr.msk.f32.gmra.mxu0 %vm1782_vm5, %v1767_v11 }
 0x357   : > { %6025 = vmatprep.mubr.msk.f32.mxu0 %vm6393_vm4, %v6392_v57 }
 0x35a   : > { %6026 = vmatmul.mubr.msk.f32.gmra.mxu0 %vm1782_vm5, %v1768_v12 }
 0x35b   : > { %6050 = vmatprep.mubr.msk.f32.mxu0 %vm1272_vm3, %v1915_v13 }
 0x3f2   : > { %v5949_v24 = vpop.f32.mrf.mxu0  ;;  %v5961_v56 = vpop.f32.mrf.mxu1 }
 0x3f3   : > { %v1468_v29 = vadd.f32 %v5949_v24, %v1305_v20  ;;  %v1508_v8 = vadd.f32 %v5961_v56, %v1345_v0  ;;  %v1917_v56 = vld [vmem:[%s6584_s4 + $0x30] sm:$0xff] }
 0x3f4   : > { %v1462_v25 = vpop.f32.mrf.mxu0  ;;  %v1502_v62 = vpop.f32.mrf.mxu1 }
 0x3f5   : > { %v1463_v26 = vadd.f32 %v1462_v25, %v1300_v19  ;;  %v1522_v34 = vmax.f32 %v1468_v29, 0.0  ;;  %v1503_v2 = vadd.f32 %v1502_v62, %v1340_v52  ;;  %v1530_v13 = vmax.f32 %v1508_v8, 0.0  ;;  %v1923_v29 = vld [vmem:[%s7462_s10] sm:$0xff] }
 0x3f6   : > { %v5952_v27 = vpop.f32.mrf.mxu0  ;;  %v5964_v4 = vpop.f32.mrf.mxu1  ;;  %v1911_v52 = vld [vmem:[%s6584_s4] sm:$0xff] }
 0x3f7   : > { %v1521_v30 = vmax.f32 %v1463_v26, 0.0  ;;  %v1478_v40 = vadd.f32 %v5952_v27, %v1315_v21  ;;  %v1529_v9 = vmax.f32 %v1503_v2, 0.0  ;;  %v1518_v19 = vadd.f32 %v5964_v4, %v1355_v16  ;;  %v5624_v21 = vld [vmem:[%s7464_s25] ss:$0 sm:$0xff]  ;;  %v1926_v16 = vld [vmem:[%s7462_s10 + $0x18] sm:$0xff] }
 0x3f8   : > { %v1472_v31 = vpop.f32.mrf.mxu0  ;;  %v1512_v10 = vpop.f32.mrf.mxu1 }
 0x3f9   : > { %1539 = vxpose.xlu1.b32.start [1/4] (short) (narrow) %v1521_v30, 8  ;;  %v1473_v35 = vadd.f32 %v1472_v31, %v1310_v32  ;;  %v1524_v53 = vmax.f32 %v1478_v40, 0.0  ;;  %v1513_v14 = vadd.f32 %v1512_v10, %v1350_v7  ;;  %v1532_v24 = vmax.f32 %v1518_v19, 0.0  ;;  %v1267_v40 = vld [vmem:[%s7465_s7 + $0x20] sm:$0xff]  ;;  %v1924_v10 = vld [vmem:[%s7462_s10 + $0x8] sm:$0xff] }
 0x3fa   : > { %v5955_v33 = vpop.f32.mrf.mxu0  ;;  %v1919_v19 = vld [vmem:[%s6584_s4 + $0x40] sm:$0xff] }
 0x3fb   : > { %v1488_v41 = vadd.f32 %v5955_v33, %v1325_v23  ;;  %v1523_v45 = vmax.f32 %v1473_v35, 0.0  ;;  %v1531_v20 = vmax.f32 %v1513_v14, 0.0  ;;  %v1927_v35 = vld [vmem:[%s7462_s10 + $0x20] sm:$0xff] }
 0x3fc   : > { %v1482_v36 = vpop.f32.mrf.mxu0 }
 0x3fd   : > { %v1483_v38 = vadd.f32 %v1482_v36, %v1320_v22  ;;  %1540 = vxpose.xlu1.b32.cont [2/4] (short) (narrow) %v1522_v34, 8  ;;  %v1526_v54 = vmax.f32 %v1488_v41, 0.0  ;;  %v1916_v34 = vld [vmem:[%s6584_s4 + $0x28] sm:$0xff]  ;;  %v1270_v36 = vld [vmem:[%s7465_s7 + $0x38] sm:$0xff] }
 0x3fe   : > { %v5958_v39 = vpop.f32.mrf.mxu0  ;;  %v1266_v41 = vld [vmem:[%s7465_s7 + $0x18] sm:$0xff] }
 0x3ff   : > { %v1525_v48 = vmax.f32 %v1483_v38, 0.0  ;;  %v1498_v60 = vadd.f32 %v5958_v39, %v1335_v37  ;;  %v1269_v38 = vld [vmem:[%s7465_s7 + $0x30] sm:$0xff]  ;;  %v1268_v39 = vld [vmem:[%s7465_s7 + $0x28] sm:$0xff] }
 0x400   : > { %v1492_v49 = vpop.f32.mrf.mxu0 }
 0x401   : > { %1650 = vxpose.xlu0.b32.start [1/8] (short) (narrow) %v1525_v48, 8  ;;  %1541 = vxpose.xlu1.b32.cont [3/4] (short) (narrow) %v1523_v45, 8  ;;  %v1493_v55 = vadd.f32 %v1492_v49, %v1330_v28  ;;  %v1528_v3 = vmax.f32 %v1498_v60, 0.0  ;;  %v1265_v45 = vld [vmem:[%s7465_s7 + $0x10] sm:$0xff]  ;;  %v1264_v48 = vld [vmem:[%s7465_s7 + $0x8] sm:$0xff]  ;;  %v1263_v49 = vld [vmem:[%s7465_s7] sm:$0xff] }
 0x402   : > { %v6836_v51 = vpop.f32.mrf.mxu0  ;;  %s5623_s7 = sshll.u32 %s6549_s22, 3  ;;  %s7474_s22 = sld [smem:[#allocation23_spill]] (!%p5732_p12) }
 0x403   : > { %v1527_v61 = vmax.f32 %v1493_v55, 0.0  ;;  %v1871_v33 = vadd.f32 %v5624_v21, %v6836_v51  ;;  %v1914_v55 = vld [vmem:[%s6584_s4 + $0x18] sm:$0xff]  ;;  %s1757_s24 = scalar_lea.vmem %s7467_s23, %s5623_s7  ;;  %s1759_s26 = scalar_lea.vmem %s7469_s0, %s5623_s7 }
 0x404   : > { %v6009_v58 = vpop.f32.mrf.mxu0  ;;  %s7475_s0 = sld [smem:[#allocation25_spill]] (!%p5732_p12) }
 0x405   : > { %1651 = vxpose.xlu0.b32.cont [2/8] (short) (narrow) %v1526_v54, 8  ;;  %1542 = vxpose.xlu1.b32.end [4/4] (short) (narrow) %v1524_v53, 8  ;;  %v1912_v53 = vld [vmem:[%s6584_s4 + $0x8] sm:$0xff]  ;;  %v1913_v54 = vld [vmem:[%s6584_s4 + $0x10] sm:$0xff] }
 0x406   : > { %v1875_v59 = vpop.f32.mrf.mxu0 }
 0x407   : > { %v1876_v32 = vadd.f32 %v5624_v21, %v1875_v59 }
 0x408   : > { %v6012_v63 = vpop.f32.mrf.mxu0 }
 0x409   : > { %1652 = vxpose.xlu0.b32.cont [3/8] (short) (narrow) %v1527_v61, 8  ;;  %v5619_v61 = vld [vmem:[%s7466_s12] ss:$0 sm:$0xff] }
 0x40a   : > { %v1880_v1 = vpop.f32.mrf.mxu0 }
 0x40b   : > { %v1881_v31 = vadd.f32 %v5624_v21, %v1880_v1  ;;  %v5621_v1 = vld [vmem:[%s7468_s8] ss:$0 sm:$0xff] }
 0x40c   : > { %v6015_v5 = vpop.f32.mrf.mxu0 }
 0x40d   : > { %1653 = vxpose.xlu0.b32.cont [4/8] (short) (narrow) %v1528_v3, 8 }
 0x40e   : > { %v1885_v6 = vpop.f32.mrf.mxu0 }
 0x40f   : > { %v1886_v30 = vadd.f32 %v5624_v21, %v1885_v6  ;;  %v1918_v6 = vld [vmem:[%s6584_s4 + $0x38] sm:$0xff] }
 0x410   : > { %v6018_v11 = vpop.f32.mrf.mxu0 }
 0x411   : > { %1654 = vxpose.xlu0.b32.cont [5/8] (short) (narrow) %v1529_v9, 8  ;;  %v1928_v11 = vld [vmem:[%s7462_s10 + $0x28] sm:$0xff] }
 0x412   : > { %v1890_v12 = vpop.f32.mrf.mxu0 }
 0x413   : > { %v1891_v28 = vadd.f32 %v5624_v21, %v1890_v12 }
 0x414   : > { %v6021_v15 = vpop.f32.mrf.mxu0 }
 0x415   : > { %1655 = vxpose.xlu0.b32.cont [6/8] (short) (narrow) %v1530_v13, 8  ;;  %v1925_v15 = vld [vmem:[%s7462_s10 + $0x10] sm:$0xff] }
 0x416   : > { %v1895_v18 = vpop.f32.mrf.mxu0 }
 0x417   : > { %v1896_v25 = vadd.f32 %v5624_v21, %v1895_v18  ;;  %v1930_v18 = vld [vmem:[%s7462_s10 + $0x38] sm:$0xff] }
 0x418   : > { %v6024_v22 = vpop.f32.mrf.mxu0 }
 0x419   : > { %1656 = vxpose.xlu0.b32.cont [7/8] (short) (narrow) %v1531_v20, 8  ;;  %v1920_v20 = vld [vmem:[%s6584_s4 + $0x48] sm:$0xff] }
 0x41a   : > { %v1900_v23 = vpop.f32.mrf.mxu0 }
 0x41b   : > { %v1901_v26 = vadd.f32 %v5624_v21, %v1900_v23 }
 0x41c   : > { %v6027_v27 = vpop.f32.mrf.mxu0 }
 0x41d   : > { %6036 = vmatprep.subr.msk.mxu0 %vm1272_vm3, %v1901_v26  ;;  %1657 = vxpose.xlu0.b32.end [8/8] (short) (narrow) %v1532_v24, 8 }
 0x41e   : > { %6037 = vmatpush3.xpose.msk.msra.mxu0 %vm1272_vm3, %v1901_v26 }
 0x41f   : > { %6038 = vmatprep.subr.msk.mxu0 %vm1272_vm3, %v1896_v25 }
 0x422   : > { %6039 = vmatpush3.xpose.msk.msra.mxu0 %vm1272_vm3, %v1896_v25 }
 0x423   : > { %1942 = vperm.xlu1 %6306, %v1923_v29   ;;  %6040 = vmatprep.subr.msk.mxu0 %vm1272_vm3, %v1891_v28 }
 0x426   : > { %6041 = vmatpush3.xpose.msk.msra.mxu0 %vm1272_vm3, %v1891_v28  ;;  %v1907_v28 = vand.u32 127, %v1287_v42 }
 0x427   : > { %6042 = vmatprep.subr.msk.mxu0 %vm1272_vm3, %v1886_v30 }
 0x42a   : > { %6043 = vmatpush3.xpose.msk.msra.mxu0 %vm1272_vm3, %v1886_v30  ;;  %v1908_v30 = vstv %s1905_s2  ;;  %s7479_s2 = sld [smem:[#allocation28_spill]] (!%p5732_p12) }
 0x42b   : > { %6044 = vmatprep.subr.msk.mxu0 %vm1272_vm3, %v1881_v31  ;;  %vm6951_vm9 = vcmp.lt.s32.totalorder %v1907_v28, %v1908_v30 }
 0x42e   : > { %6045 = vmatpush3.xpose.msk.msra.mxu0 %vm1272_vm3, %v1881_v31 }
 0x42f   : > { %6046 = vmatprep.subr.msk.mxu0 %vm1272_vm3, %v1876_v32 }
 0x432   : > { %6047 = vmatpush3.xpose.msk.msra.mxu0 %vm1272_vm3, %v1876_v32 }
 0x433   : > { %6048 = vmatprep.subr.msk.mxu0 %vm1272_vm3, %v1871_v33 }
 0x436   : > { %6049 = vmatpush3.xpose.msk.msra.mxu0 %vm1272_vm3, %v1871_v33 }
 0x437   : > { %6107 = vmatprep.subr.mxu0 %v6392_v57 }
 0x439   : > { %6051 = vmatmul.mubr.msk.f32.vlgmr.msra.gmra.mxu0 %vm1272_vm3, %v1916_v34 }
 0x43a   : > { %6053 = vmatprep.mubr.msk.f32.mxu0 %vm1272_vm3, %v1917_v56 }
 0x43d   : > { %6054 = vmatmul.mubr.msk.f32.gmra.mxu0 %vm1272_vm3, %v1918_v6 }
 0x43e   : > { %6056 = vmatprep.mubr.msk.f32.mxu0 %vm1272_vm3, %v1919_v19 }
 0x441   : > { %6057 = vmatmul.mubr.msk.f32.gmra.mxu0 %vm1272_vm3, %v1920_v20  ;;  %v1935_v20 = vld [vmem:[%s6596_s27] sm:$0xff] }
 0x446   : > { %2062 = vperm.xlu0 %6307, %v1927_v35  }
 0x475   : > { %v1555_v37 = vpop.trf.xlu1 }
 0x476   : > { %5974 = vmatmul.mubr.msk.f32.vlgmr.msra.gmra.mxu1 %vm1272_vm3, %v1555_v37 }
 0x477   : > { %5977 = vmatpush3.msra.mxu1 %v1270_v36  ;;  %5992 = vmatprep.mubr.msk.f32.mxu1 %vm6393_vm4, %v6392_v57 }
 0x478   : > { %5978 = vmatprep.subr.mxu1 %v6392_v57 }
 0x479   : > { %5979 = vmatpush3.msra.mxu1 %v1269_v38 }
 0x47a   : > { %5980 = vmatprep.subr.mxu1 %v6392_v57 }
 0x47b   : > { %5981 = vmatpush3.msra.mxu1 %v1268_v39 }
 0x47c   : > { %5982 = vmatprep.subr.mxu1 %v6392_v57 }
 0x47d   : > { %5983 = vmatpush3.msra.mxu1 %v1267_v40  ;;  %v1666_v51 = vpop.trf.xlu0 }
 0x47e   : > { %5984 = vmatprep.subr.mxu1 %v6392_v57 }
 0x47f   : > { %5985 = vmatpush3.msra.mxu1 %v1266_v41 }
 0x480   : > { %5986 = vmatprep.subr.mxu1 %v6392_v57 }
 0x481   : > { %5987 = vmatpush3.msra.mxu1 %v1265_v45 }
 0x482   : > { %5988 = vmatprep.subr.mxu1 %v6392_v57 }
 0x483   : > { %5989 = vmatpush3.msra.mxu1 %v1264_v48 }
 0x484   : > { %5990 = vmatprep.subr.mxu1 %v6392_v57 }
 0x485   : > { %5991 = vmatpush3.msra.mxu1 %v1263_v49  ;;  %v1931_v49 = vld [vmem:[%s7462_s10 + $0x40] sm:$0xff] }
 0x486   : > { %5993 = vmatmul.mubr.msk.f32.vlgmr.msra.gmra.mxu1 %vm1682_vm6, %v1666_v51  ;;  %6028 = vmatprep.subr.msk.mxu1 %vm1272_vm3, %v6663_v17 }
 0x487   : > { %6029 = vmatpush3.xpose.msk.msra.mxu1 %vm1272_vm3, %v6663_v17  ;;  %6030 = vmatprep.mubr.msk.f32.mxu1 %vm1272_vm3, %v1911_v52 }
 0x488   : > { %6062 = vmatprep.subr.mxu1 %v6392_v57 }
 0x48a   : > { %6031 = vmatmul.mubr.msk.f32.vlgmr.msra.gmra.mxu1 %vm1272_vm3, %v1912_v53 }
 0x48b   : > { %6033 = vmatprep.mubr.msk.f32.mxu1 %vm1272_vm3, %v1913_v54 }
 0x48e   : > { %6034 = vmatmul.mubr.msk.f32.gmra.mxu1 %vm1272_vm3, %v1914_v55 }
 0x48f   : > { %6064 = vmatprep.mubr.msk.f32.mxu1 %vm6393_vm4, %v6392_v57 }
 0x49e   : > { %v1943_v7 = vpop.permute.xlu1 %1942 }
 0x4c1   : > { %v2063_v58 = vpop.permute.xlu0 %2062 }
 0x4f9   : > { %v6915_v17 = vpop.f32.mrf.mxu0 }
 0x4fb   : > { %v2211_v59 = vpop.f32.mrf.mxu0 }
 0x4fc   : > { %v2212_v60 = vadd.f32 %v2211_v59, %v2063_v58 }
 0x4fd   : > { %v6055_v31 = vpop.f32.mrf.mxu0 }
 0x4fe   : > { %6063 = vmatpush3.msra.mxu1 %v2212_v60 }
 0x4ff   : > { %6067 = vmatprep.subr.mxu1 %v6392_v57  ;;  %v6961_v51 = vpop.f32.mrf.mxu0 }
 0x501   : > { %v6058_v53 = vpop.f32.mrf.mxu0 }
 0x503   : > { %v2231_v54 = vpop.f32.mrf.mxu0 }
 0x536   : > { %v1640_v62 = vpop.f32.mrf.mxu1 }
 0x537   : > { %v1641_v63 = vadd.f32 %v5619_v61, %v1640_v62 }
 0x538   : > { %v5975_v0 = vpop.f32.mrf.mxu1 }
 0x539   : > { %1758 = vst.msk [vmem:[%s1757_s24] sm:$0xff] %vm1272_vm3, %v1641_v63 }
 0x546   : > { %v1752_v2 = vpop.f32.mrf.mxu1 }
 0x547   : > { %v1753_v3 = vadd.f32 %v5621_v1, %v1752_v2 }
 0x548   : > { %v5994_v4 = vpop.f32.mrf.mxu1 }
 0x549   : > { %1761 = vst.msk [vmem:[%s1759_s26] sm:$0xff] %vm1760_vm7, %v1753_v3 }
 0x54a   : > { %v6032_v5 = vpop.f32.mrf.mxu1 }
 0x54c   : > { %v2041_v8 = vpop.f32.mrf.mxu1 }
 0x54d   : > { %v2042_v9 = vadd.f32 %v2041_v8, %v1943_v7  ;;  %v1932_v8 = vld [vmem:[%s7462_s10 + $0x48] sm:$0xff] }
 0x54e   : > { %v6035_v23 = vpop.f32.mrf.mxu1 }
 0x54f   : > { %2250 = vxpose.xlu1.b32.start.end [1/1] (short) (narrow) %v2042_v9, 8  ;;  %v1929_v9 = vld [vmem:[%s7462_s10 + $0x30] sm:$0xff] }
 0x550   : > { %v2051_v24 = vpop.f32.mrf.mxu1 }
 0x56d   : > { %1947 = vperm.xlu1 %6306, %v1924_v10  }
 0x571   : > { %2067 = vperm.xlu1 %6306, %v1928_v11  }
 0x5cb   : > { %v2266_v12 = vpop.trf.xlu1 }
 0x5cc   : > { %6065 = vmatmul.mubr.msk.f32.vlgmr.msra.gmra.mxu1 %vm2282_vm8, %v2266_v12 }
 0x5cd   : > { %6069 = vmatprep.mubr.msk.f32.mxu1 %vm6393_vm4, %v6392_v57 }
 0x5e8   : > { %v1948_v13 = vpop.permute.xlu1 %1947 }
 0x5e9   : > { %v2047_v14 = vadd.f32 %v6032_v5, %v1948_v13 }
 0x5eb   : > { %2446 = vxpose.xlu1.b32.start.end [1/1] (short) (narrow) %v2047_v14, 8 }
 0x5ec   : > { %v2068_v21 = vpop.permute.xlu1 %2067 }
 0x5ed   : > { %v2217_v60 = vadd.f32 %v6915_v17, %v2068_v21 }
 0x609   : > { %1952 = vperm.xlu1 %6306, %v1925_v15   ;;  %v1936_v15 = vld [vmem:[%s6596_s27 + $0x8] sm:$0xff] }
 0x60d   : > { %1957 = vperm.xlu1 %6306, %v1926_v16   ;;  %v1921_v16 = vld [vmem:[%s6584_s4 + $0x50] sm:$0xff] }
 0x60e   : > { %6059 = vmatprep.mubr.msk.f32.mxu0 %vm1272_vm3, %v1921_v16 }
 0x611   : > { %2077 = vperm.xlu1 %6306, %v1930_v18   ;;  %v1922_v18 = vld [vmem:[%s6584_s4 + $0x58] sm:$0xff] }
 0x612   : > { %6060 = vmatmul.mubr.msk.f32.gmra.mxu0 %vm1272_vm3, %v1922_v18 }
 0x613   : > { %6109 = vmatprep.mubr.msk.f32.mxu0 %vm6393_vm4, %v6392_v57 }
 0x667   : > { %v2462_v22 = vpop.trf.xlu1 }
 0x684   : > { %v1953_v25 = vpop.permute.xlu1 %1952 }
 0x685   : > { %v6948_v26 = vadd.f32 %v2051_v24, %v1953_v25 }
 0x688   : > { %v1958_v27 = vpop.permute.xlu1 %1957 }
 0x689   : > { %v2057_v29 = vadd.f32 %v6035_v23, %v1958_v27 }
 0x68b   : > { %3054 = vxpose.xlu1.b32.start.end [1/1] (short) (narrow) %v2057_v29, 8 }
 0x68c   : > { %v2078_v32 = vpop.permute.xlu1 %2077  ;;  %v2352_v33 = vpop.f32.mrf.mxu1 }
 0x68d   : > { %v2227_v35 = vadd.f32 %v6055_v31, %v2078_v32  ;;  %v2356_v36 = vmul.f32 0.35355338, %v2352_v33 }
 0x68e   : > { %v6066_v37 = vpop.f32.mrf.mxu1 }
 0x68f   : > { %6108 = vmatpush3.msra.mxu0 %v2227_v35  ;;  %v2357_v38 = vsel %vm6951_vm9, %v2356_v36, -1e+30 }
 0x690   : > { %v2359_v42 = vsel %vm2358_vm10, %v2357_v38, -inf  ;;  %6117 = vmatprep.subr.mxu0 %v6392_v57 }
 0x691   : > { %2360 = vmax.xlane.f32.xlu0 %v2359_v42 }
 0x6d2   : > { %v6061_v37 = vpop.f32.mrf.mxu0 }
 0x6d4   : > { %v2241_v42 = vpop.f32.mrf.mxu0 }
 0x707   : > { %v3070_v19 = vpop.trf.xlu1 }
 0x708   : > { %6110 = vmatmul.mubr.msk.f32.vlgmr.msra.gmra.mxu0 %vm2282_vm8, %v3070_v19 }
 0x709   : > { %6119 = vmatprep.mubr.msk.f32.mxu0 %vm6393_vm4, %v6392_v57 }
 0x71a   : > { %v2361_v39 = vpop.xlane.xlu0 %2360 }
 0x71b   : > { %v2362_v40 = vsub.f32 %v2357_v38, %v2361_v39  ;;  %v1933_v38 = vld [vmem:[%s7462_s10 + $0x50] sm:$0xff] }
 0x71d   : > { %v2363_v41 = vmul.f32 1.442695, %v2362_v40  ;;  %v1934_v40 = vld [vmem:[%s7462_s10 + $0x58] sm:$0xff] }
 0x71f   : > { %6310 = vpow2.f32 %v2363_v41 }
 0x72c   : > { %v6311_v45 = vpop.eup %6310 }
 0x72d   : > { %v2365_v48 = vsel %vm2358_vm10, %v6311_v45, 0.0 }
 0x72e   : > { %2366 = vadd.xlane.f32.xlu0 %v2365_v48 }
 0x744   : > { %2082 = vperm.xlu0 %6307, %v1931_v49  }
 0x7b7   : > { %v2367_v52 = vpop.xlane.xlu0 %2366 }
 0x7b8   : > { %6312 = vrcp.f32 %v2367_v52 }
 0x7bf   : > { %v2083_v55 = vpop.permute.xlu0 %2082 }
 0x7c0   : > { %v2232_v56 = vadd.f32 %v2231_v54, %v2083_v55 }
 0x7c2   : > { %6068 = vmatpush3.xpose.msk.msra.mxu1 %vm2358_vm10, %v2232_v56 }
 0x7c3   : > { %6072 = vmatprep.subr.mxu1 %v6392_v57 }
 0x7c5   : > { %v6313_v58 = vpop.eup %6312 }
 0x7c6   : > { %v2369_v59 = vmul.f32 %v6313_v58, %v6311_v45 }
 0x7c8   : > { %6070 = vmatmul.mubr.msk.f32.vlgmr.msra.gmra.mxu1 %vm2358_vm10, %v2369_v59  ;;  %v3155_v39 = vpop.f32.mrf.mxu0 }
 0x7c9   : > { %6073 = vmatpush3.msra.mxu1 %v2217_v60  ;;  %6074 = vmatprep.mubr.msk.f32.mxu1 %vm6393_vm4, %v6392_v57 }
 0x7ca   : > { %6077 = vmatprep.subr.mxu1 %v6392_v57  ;;  %v6111_v41 = vpop.f32.mrf.mxu0 }
 0x7cc   : > { %6075 = vmatmul.mubr.msk.f32.vlgmr.msra.gmra.mxu1 %vm2282_vm8, %v2462_v22 }
 0x7cd   : > { %6079 = vmatprep.mubr.msk.f32.mxu1 %vm6393_vm4, %v6392_v57 }
 0x888   : > { %v2442_v61 = vpop.f32.mrf.mxu1 }
 0x88a   : > { %v6071_v62 = vpop.f32.mrf.mxu1 }
 0x88c   : > { %v2547_v63 = vpop.f32.mrf.mxu1 }
 0x88d   : > { %v2551_v0 = vmul.f32 0.35355338, %v2547_v63 }
 0x88e   : > { %v6076_v17 = vpop.f32.mrf.mxu1 }
 0x88f   : > { %v2552_v1 = vsel %vm6951_vm9, %v2551_v0, -1e+30 }
 0x890   : > { %v2553_v2 = vsel %vm2358_vm10, %v2552_v1, -inf }
 0x891   : > { %2554 = vmax.xlane.f32.xlu0 %v2553_v2 }
 0x91a   : > { %v2555_v3 = vpop.xlane.xlu0 %2554 }
 0x91b   : > { %v2556_v4 = vsub.f32 %v2552_v1, %v2555_v3  ;;  %v1937_v1 = vld [vmem:[%s6596_s27 + $0x10] sm:$0xff] }
 0x91d   : > { %v2557_v5 = vmul.f32 1.442695, %v2556_v4 }
 0x91f   : > { %6314 = vpow2.f32 %v2557_v5 }
 0x92c   : > { %v6315_v6 = vpop.eup %6314 }
 0x92d   : > { %v2559_v7 = vsel %vm2358_vm10, %v6315_v6, 0.0 }
 0x92e   : > { %2560 = vadd.xlane.f32.xlu0 %v2559_v7 }
 0x944   : > { %2087 = vperm.xlu0 %6307, %v1932_v8  }
 0x948   : > { %2072 = vperm.xlu0 %6307, %v1929_v9   ;;  %v1938_v9 = vld [vmem:[%s6596_s27 + $0x18] sm:$0xff] }
 0x949   : > { %6118 = vmatpush3.msra.mxu0 %v1938_v9 }
 0x94a   : > { %6142 = vmatprep.subr.mxu0 %v6392_v57 }
 0x966   : > { %2786 = vxpose.xlu0.b32.start.end [1/1] (short) (narrow) %v6948_v26, 8 }
 0x9b7   : > { %v2561_v10 = vpop.xlane.xlu0 %2560 }
 0x9b8   : > { %6316 = vrcp.f32 %v2561_v10 }
 0x9bf   : > { %v2088_v11 = vpop.permute.xlu0 %2087 }
 0x9c0   : > { %v2237_v12 = vadd.f32 %v6058_v53, %v2088_v11  ;;  %v3159_v53 = vmul.f32 0.35355338, %v3155_v39 }
 0x9c2   : > { %6078 = vmatpush3.xpose.msk.msra.mxu1 %vm2358_vm10, %v2237_v12  ;;  %v3160_v55 = vsel %vm6951_vm9, %v3159_v53, -1e+30  ;;  %v5677_v53 = vld [vmem:[%s6584_s4 + $0xa0] sm:$0xff] }
 0x9c3   : > { %6082 = vmatprep.subr.mxu1 %v6392_v57  ;;  %v2073_v22 = vpop.permute.xlu0 %2072  ;;  %v3161_v58 = vsel %vm2358_vm10, %v3160_v55, -inf }
 0x9c4   : > { %v2222_v24 = vadd.f32 %v6961_v51, %v2073_v22 }
 0x9c5   : > { %v6317_v13 = vpop.eup %6316 }
 0x9c6   : > { %v2563_v14 = vmul.f32 %v6317_v13, %v6315_v6 }
 0x9c8   : > { %6080 = vmatmul.mubr.msk.f32.vlgmr.msra.gmra.mxu1 %vm2358_vm10, %v2563_v14 }
 0x9c9   : > { %6083 = vmatpush3.msra.mxu1 %v1936_v15  ;;  %6084 = vmatprep.mubr.msk.f32.mxu1 %vm6393_vm4, %v6392_v57  ;;  %v5668_v15 = vld [vmem:[%s6603_s5] ss:$0 sm:$0xff] }
 0x9ca   : > { %6087 = vmatprep.subr.mxu1 %v6392_v57 }
 0x9e2   : > { %v2802_v25 = vpop.trf.xlu0 }
 0xa88   : > { %v2636_v21 = vpop.f32.mrf.mxu1 }
 0xa89   : > { %6085 = vmatmul.mubr.msk.f32.vlgmr.msra.gmra.mxu1 %vm2282_vm8, %v2636_v21  ;;  %v6348_v21 = vld [vmem:[#allocation2] sm:$0xff] }
 0xa8a   : > { %v6081_v23 = vpop.f32.mrf.mxu1  ;;  %6088 = vmatpush3.msra.mxu1 %v1935_v20  ;;  %6089 = vmatprep.mubr.msk.f32.mxu1 %vm6393_vm4, %v6392_v57 }
 0xa8b   : > { %6092 = vmatprep.subr.mxu1 %v6392_v57 }
 0xa8d   : > { %6090 = vmatmul.mubr.msk.f32.vlgmr.msra.gmra.mxu1 %vm2282_vm8, %v2442_v61 }
 0xa8e   : > { %6093 = vmatpush3.msra.mxu1 %v2222_v24  ;;  %6094 = vmatprep.mubr.msk.f32.mxu1 %vm6393_vm4, %v6392_v57  ;;  %v5681_v24 = vld [vmem:[%s7462_s10 + $0x60] sm:$0xff] }
 0xa8f   : > { %6097 = vmatprep.subr.mxu1 %v6392_v57 }
 0xa91   : > { %6095 = vmatmul.mubr.msk.f32.vlgmr.msra.gmra.mxu1 %vm2282_vm8, %v2802_v25  ;;  %v5685_v25 = vld [vmem:[%s7462_s10 + $0x80] sm:$0xff] }
 0xa92   : > { %6099 = vmatprep.mubr.msk.f32.mxu1 %vm6393_vm4, %v6392_v57 }
 0xb49   : > { %v2709_v26 = vpop.f32.mrf.mxu1 }
 0xb4b   : > { %v6086_v27 = vpop.f32.mrf.mxu1 }
 0xb4d   : > { %v2782_v28 = vpop.f32.mrf.mxu1 }
 0xb4e   : > { %v7009_v29 = vadd.f32 %v2782_v28, %v2709_v26 }
 0xb4f   : > { %v6091_v30 = vpop.f32.mrf.mxu1 }
 0xb51   : > { %v2887_v31 = vpop.f32.mrf.mxu1 }
 0xb52   : > { %v2891_v32 = vmul.f32 0.35355338, %v2887_v31  ;;  %v5669_v31 = vld [vmem:[%s6584_s4 + $0x60] sm:$0xff] }
 0xb53   : > { %v6096_v33 = vpop.f32.mrf.mxu1 }
 0xb54   : > { %v2892_v35 = vsel %vm6951_vm9, %v2891_v32, -1e+30 }
 0xb55   : > { %v2893_v36 = vsel %vm2358_vm10, %v2892_v35, -inf }
 0xb56   : > { %2894 = vmax.xlane.f32.xlu0 %v2893_v36  ;;  %v7047_v36 = vld [vmem:[%s6610_s28] sm:$0x3f] }
 0xb57   : > { %v3351_v39 = vrot.slane %v7047_v36, %v1294_v46  ;;  %v5672_v46 = vld [vmem:[%s6584_s4 + $0x78] sm:$0xff] }
 0xb6c   : > { %2092 = vperm.xlu0 %6307, %v1933_v38  }
 0xb70   : > { %2097 = vperm.xlu0 %6307, %v1934_v40  }
 0xbdf   : > { %v2895_v45 = vpop.xlane.xlu0 %2894 }
 0xbe0   : > { %v2896_v48 = vsub.f32 %v2892_v35, %v2895_v45  ;;  %v5671_v45 = vld [vmem:[%s6584_s4 + $0x70] sm:$0xff] }
 0xbe2   : > { %v2897_v49 = vmul.f32 1.442695, %v2896_v48  ;;  %v5673_v48 = vld [vmem:[%s6584_s4 + $0x80] sm:$0xff] }
 0xbe4   : > { %6318 = vpow2.f32 %v2897_v49  ;;  %v5674_v49 = vld [vmem:[%s6584_s4 + $0x88] sm:$0xff] }
 0xbe7   : > { %v2093_v51 = vpop.permute.xlu0 %2092 }
 0xbe8   : > { %v2242_v52 = vadd.f32 %v2241_v42, %v2093_v51  ;;  %v5675_v51 = vld [vmem:[%s6584_s4 + $0x90] sm:$0xff] }
 0xbea   : > { %6098 = vmatpush3.xpose.msk.msra.mxu1 %vm2358_vm10, %v2242_v52  ;;  %v5676_v52 = vld [vmem:[%s6584_s4 + $0x98] sm:$0xff] }
 0xbeb   : > { %6102 = vmatprep.subr.mxu1 %v6392_v57  ;;  %v2098_v3 = vpop.permute.xlu0 %2097 }
 0xbec   : > { %v2247_v5 = vadd.f32 %v6061_v37, %v2098_v3  ;;  %v3346_v37 = vrot.slane %v7047_v36, %v1289_v44  ;;  %v5670_v44 = vld [vmem:[%s6584_s4 + $0x68] sm:$0xff] }
 0xbf1   : > { %v6319_v54 = vpop.eup %6318 }
 0xbf2   : > { %v2899_v56 = vsel %vm2358_vm10, %v6319_v54, 0.0 }
 0xbf3   : > { %2900 = vadd.xlane.f32.xlu1 %v2899_v56 }
 0xbf7   : > { %3162 = vmax.xlane.f32.xlu1 %v3161_v58 }
 0xc7c   : > { %v2901_v59 = vpop.xlane.xlu1 %2900 }
 0xc7d   : > { %6320 = vrcp.f32 %v2901_v59 }
 0xc80   : > { %v3163_v60 = vpop.xlane.xlu1 %3162 }
 0xc81   : > { %v3164_v61 = vsub.f32 %v3160_v55, %v3163_v60 }
 0xc83   : > { %v3165_v62 = vmul.f32 1.442695, %v3164_v61 }
 0xc85   : > { %6322 = vpow2.f32 %v3165_v62 }
 0xc8a   : > { %v6321_v63 = vpop.eup %6320 }
 0xc8b   : > { %v2903_v0 = vmul.f32 %v6321_v63, %v6319_v54  ;;  %v5678_v54 = vld [vmem:[%s6584_s4 + $0xa8] sm:$0xff] }
 0xc8d   : > { %6100 = vmatmul.mubr.msk.f32.vlgmr.msra.gmra.mxu1 %vm2358_vm10, %v2903_v0 }
 0xc8e   : > { %6104 = vmatprep.mubr.msk.f32.mxu1 %vm6393_vm4, %v6392_v57  ;;  %6103 = vmatpush3.msra.mxu1 %v1937_v1 }
 0xc8f   : > { %6112 = vmatprep.subr.mxu1 %v6392_v57 }
 0xc92   : > { %v6323_v34 = vpop.eup %6322 }
 0xc93   : > { %v3167_v17 = vsel %vm2358_vm10, %v6323_v34, 0.0 }
 0xc94   : > { %3168 = vadd.xlane.f32.xlu1 %v3167_v17  ;;  %v5689_v17 = vld [vmem:[%s7462_s10 + $0xa0] sm:$0xff] }
 0xd1d   : > { %v3169_v2 = vpop.xlane.xlu1 %3168 }
 0xd1e   : > { %6324 = vrcp.f32 %v3169_v2 }
 0xd2b   : > { %v6325_v4 = vpop.eup %6324 }
 0xd2c   : > { %v3171_v8 = vmul.f32 %v6325_v4, %v6323_v34 }
 0xd4d   : > { %v2976_v6 = vpop.f32.mrf.mxu1 }
 0xd4e   : > { %6105 = vmatmul.mubr.msk.f32.vlgmr.msra.gmra.mxu1 %vm2282_vm8, %v2976_v6 }
 0xd4f   : > { %6113 = vmatpush3.xpose.msk.msra.mxu1 %vm2358_vm10, %v2247_v5  ;;  %v6101_v7 = vpop.f32.mrf.mxu1  ;;  %6114 = vmatprep.mubr.msk.f32.mxu1 %vm6393_vm4, %v6392_v57 }
 0xd52   : > { %6115 = vmatmul.mubr.msk.f32.vlgmr.msra.gmra.mxu1 %vm2358_vm10, %v3171_v8 }
 0xd53   : > { %6124 = vmatprep.mubr.msk.f32.mxu1 %vm1272_vm3, %v5669_v31 }
 0xe0e   : > { %v3049_v10 = vpop.f32.mrf.mxu1 }
 0xe0f   : > { %v3053_v11 = vadd.f32 %v3049_v10, %v7009_v29 }
 0xe10   : > { %v6106_v12 = vpop.f32.mrf.mxu1 }
 0xe11   : > { %v5682_v12 = vld [vmem:[%s7462_s10 + $0x68] sm:$0xff] }
 0xe12   : > { %v3244_v13 = vpop.f32.mrf.mxu1 }
 0xe13   : > { %6120 = vmatmul.mubr.msk.f32.vlgmr.msra.gmra.mxu0 %vm2282_vm8, %v3244_v13 }
 0xe14   : > { %v6116_v14 = vpop.f32.mrf.mxu1  ;;  %6144 = vmatprep.mubr.msk.f32.mxu0 %vm6393_vm4, %v6392_v57 }
 0xed3   : > { %v3317_v16 = vpop.f32.mrf.mxu0 }
 0xed4   : > { %v3321_v18 = vadd.f32 %v3317_v16, %v3053_v11 }
 0xed5   : > { %v6121_v19 = vpop.f32.mrf.mxu0 }
 0xed6   : > { %v3328_v20 = vadd.f32 %v5668_v15, %v3321_v18 }
 0xed8   : > { %v3329_v22 = vadd.f32 %v6348_v21, %v3328_v20  ;;  %v5686_v21 = vld [vmem:[%s7462_s10 + $0x88] sm:$0xff] }
 0xeda   : > { %v3330_v23 = vsel %vm1272_vm3, %v3329_v22, 0.0 }
 0xedb   : > { %3331 = vadd.xlane.f32.xlu1 %v3330_v23  ;;  %v5687_v23 = vld [vmem:[%s7462_s10 + $0x90] sm:$0xff] }
 0xeec   : > { %3388 = vperm.xlu1 %6306, %v5681_v24   ;;  %v5679_v24 = vld [vmem:[%s6584_s4 + $0xb0] sm:$0xff] }
 0xef0   : > { %3408 = vperm.xlu1 %6306, %v5685_v25   ;;  %v5680_v25 = vld [vmem:[%s6584_s4 + $0xb8] sm:$0xff] }
 0xf64   : > { %v3332_v26 = vpop.xlane.xlu1 %3331 }
 0xf65   : > { %v3333_v27 = vmul.f32 0.03125, %v3332_v26 }
 0xf67   : > { %v3334_v28 = vsub.f32 %v3329_v22, %v3333_v27  ;;  %v5683_v22 = vld [vmem:[%s7462_s10 + $0x70] sm:$0xff] }
 0xf68   : > { %v3389_v56 = vpop.permute.xlu1 %3388 }
 0xf69   : > { %v3335_v29 = vmul.f32 %v3334_v28, %v3334_v28 }
 0xf6b   : > { %v3336_v30 = vsel %vm1272_vm3, %v3335_v29, 0.0 }
 0xf6c   : > { %3337 = vadd.xlane.f32.xlu0 %v3336_v30  ;;  %v3409_v63 = vpop.permute.xlu1 %3408 }
 0xff5   : > { %v3338_v32 = vpop.xlane.xlu0 %3337 }
 0xff6   : > { %v3339_v33 = vmul.f32 0.03125, %v3338_v32 }
 0xff8   : > { %v3340_v35 = vadd.f32 1e-05, %v3339_v33 }
 0xffa   : > { %6326 = vrsqrt.f32 %v3340_v35 }
0x1007   : > { %v6327_v38 = vpop.eup %6326 }
0x1008   : > { %v3342_v42 = vmul.f32 %v6327_v38, %v3334_v28 }
0x100a   : > { %v3347_v40 = vmul.f32 %v3346_v37, %v3342_v42 }
0x100c   : > { %v7055_v41 = vadd.f32 %v3351_v39, %v3347_v40 }
0x100e   : > { %6122 = vmatprep.subr.msk.mxu1 %vm1272_vm3, %v7055_v41 }
0x100f   : > { %6123 = vmatpush3.xpose.msk.msra.mxu1 %vm1272_vm3, %v7055_v41 }
0x1010   : > { %6172 = vmatprep.subr.mxu1 %v6392_v57 }
0x1012   : > { %6125 = vmatmul.mubr.msk.f32.vlgmr.msra.gmra.mxu1 %vm1272_vm3, %v5670_v44 }
0x1013   : > { %6127 = vmatprep.mubr.msk.f32.mxu1 %vm1272_vm3, %v5671_v45 }
0x1016   : > { %6128 = vmatmul.mubr.msk.f32.gmra.mxu1 %vm1272_vm3, %v5672_v46 }
0x1017   : > { %6130 = vmatprep.mubr.msk.f32.mxu1 %vm1272_vm3, %v5673_v48  ;;  %v5690_v48 = vld [vmem:[%s7462_s10 + $0xa8] sm:$0xff] }
0x101a   : > { %6131 = vmatmul.mubr.msk.f32.gmra.mxu1 %vm1272_vm3, %v5674_v49 }
0x101b   : > { %6133 = vmatprep.mubr.msk.f32.mxu1 %vm1272_vm3, %v5675_v51 }
0x101e   : > { %6134 = vmatmul.mubr.msk.f32.gmra.mxu1 %vm1272_vm3, %v5676_v52 }
0x101f   : > { %6136 = vmatprep.mubr.msk.f32.mxu1 %vm1272_vm3, %v5677_v53 }
0x1022   : > { %6137 = vmatmul.mubr.msk.f32.gmra.mxu1 %vm1272_vm3, %v5678_v54 }
0x1023   : > { %6139 = vmatprep.mubr.msk.f32.mxu1 %vm1272_vm3, %v5679_v24 }
0x1026   : > { %6140 = vmatmul.mubr.msk.f32.gmra.mxu1 %vm1272_vm3, %v5680_v25  ;;  %v5695_v25 = vld [vmem:[%s6596_s27 + $0x30] sm:$0xff] }
0x1027   : > { %6174 = vmatprep.mubr.msk.f32.mxu1 %vm6393_vm4, %v6392_v57 }
0x10d2   : > { %v6126_v55 = vpop.f32.mrf.mxu1 }
0x10d4   : > { %v3551_v58 = vpop.f32.mrf.mxu1 }
0x10d5   : > { %v3552_v59 = vadd.f32 %v3551_v58, %v3389_v56  ;;  %v5691_v56 = vld [vmem:[%s7462_s10 + $0xb0] sm:$0xff] }
0x10d6   : > { %v7080_v60 = vpop.f32.mrf.mxu1 }
0x10d7   : > { %3610 = vxpose.xlu1.b32.start.end [1/1] (short) (narrow) %v3552_v59, 8  ;;  %v5688_v59 = vld [vmem:[%s7462_s10 + $0x98] sm:$0xff] }
0x10d8   : > { %v3561_v61 = vpop.f32.mrf.mxu1 }
0x10da   : > { %v6132_v62 = vpop.f32.mrf.mxu1 }
0x10dc   : > { %v3571_v0 = vpop.f32.mrf.mxu1 }
0x10dd   : > { %v3572_v34 = vadd.f32 %v3571_v0, %v3409_v63 }
0x10de   : > { %v7087_v2 = vpop.f32.mrf.mxu1 }
0x10df   : > { %6143 = vmatpush3.msra.mxu0 %v3572_v34 }
0x10e0   : > { %6147 = vmatprep.subr.mxu0 %v6392_v57  ;;  %v3581_v3 = vpop.f32.mrf.mxu1 }
0x10e2   : > { %v7089_v4 = vpop.f32.mrf.mxu1 }
0x10e4   : > { %v3591_v5 = vpop.f32.mrf.mxu1 }
0x10e6   : > { %v7120_v49 = vpop.f32.mrf.mxu1 }
0x10e8   : > { %v3601_v51 = vpop.f32.mrf.mxu1 }
0x10f5   : > { %3428 = vperm.xlu1 %6306, %v5689_v17  }
0x1153   : > { %v3626_v1 = vpop.trf.xlu1 }
0x1154   : > { %6145 = vmatmul.mubr.msk.f32.vlgmr.msra.gmra.mxu0 %vm2282_vm8, %v3626_v1  ;;  %v5684_v1 = vld [vmem:[%s7462_s10 + $0x78] sm:$0xff] }
0x1155   : > { %6149 = vmatprep.mubr.msk.f32.mxu0 %vm6393_vm4, %v6392_v57 }
0x1170   : > { %v3429_v6 = vpop.permute.xlu1 %3428 }
0x1171   : > { %v3592_v7 = vadd.f32 %v3591_v5, %v3429_v6 }
0x1173   : > { %6148 = vmatpush3.xpose.msk.msra.mxu0 %vm2282_vm8, %v3592_v7 }
0x1174   : > { %6152 = vmatprep.subr.mxu0 %v6392_v57 }
0x1214   : > { %v3711_v8 = vpop.f32.mrf.mxu0 }
0x1215   : > { %v3715_v9 = vmul.f32 0.35355338, %v3711_v8 }
0x1216   : > { %v6146_v10 = vpop.f32.mrf.mxu0 }
0x1217   : > { %v3716_v11 = vsel %vm2282_vm8, %v3715_v9, -inf }
0x1218   : > { %3717 = vmax.xlane.f32.xlu0 %v3716_v11  ;;  %v5694_v11 = vld [vmem:[%s6596_s27 + $0x28] sm:$0xff] }
0x122e   : > { %3393 = vperm.xlu0 %6307, %v5682_v12  }
0x12a1   : > { %v3718_v13 = vpop.xlane.xlu0 %3717 }
0x12a2   : > { %v3719_v14 = vsub.f32 %v3715_v9, %v3718_v13 }
0x12a4   : > { %v3720_v15 = vmul.f32 1.442695, %v3719_v14 }
0x12a6   : > { %6328 = vpow2.f32 %v3720_v15 }
0x12a9   : > { %v3394_v16 = vpop.permute.xlu0 %3393 }
0x12aa   : > { %v3557_v18 = vadd.f32 %v6126_v55, %v3394_v16  ;;  %v5693_v16 = vld [vmem:[%s6596_s27 + $0x20] sm:$0xff] }
0x12ac   : > { %3803 = vxpose.xlu1.b32.start.end [1/1] (short) (narrow) %v3557_v18, 8 }
0x12b3   : > { %v6329_v19 = vpop.eup %6328 }
0x12b4   : > { %v3722_v20 = vsel %vm2282_vm8, %v6329_v19, 0.0 }
0x12b5   : > { %3723 = vadd.xlane.f32.xlu0 %v3722_v20 }
0x12cb   : > { %3413 = vperm.xlu0 %6307, %v5686_v21  }
0x12cf   : > { %3398 = vperm.xlu0 %6307, %v5683_v22  }
0x12d3   : > { %3418 = vperm.xlu0 %6307, %v5687_v23  }
0x1328   : > { %v3819_v37 = vpop.trf.xlu1 }
0x133e   : > { %v3724_v26 = vpop.xlane.xlu0 %3723 }
0x133f   : > { %6330 = vrcp.f32 %v3724_v26 }
0x1346   : > { %v3414_v27 = vpop.permute.xlu0 %3413 }
0x1347   : > { %v3577_v32 = vadd.f32 %v6132_v62, %v3414_v27 }
0x134a   : > { %v3399_v28 = vpop.permute.xlu0 %3398 }
0x134b   : > { %v3562_v29 = vadd.f32 %v3561_v61, %v3399_v28 }
0x134c   : > { %v6331_v30 = vpop.eup %6330 }
0x134d   : > { %4142 = vxpose.xlu0.b32.start.end [1/1] (short) (narrow) %v3562_v29, 8  ;;  %v3726_v31 = vmul.f32 %v6331_v30, %v6329_v19 }
0x134e   : > { %v3419_v33 = vpop.permute.xlu0 %3418 }
0x134f   : > { %v3582_v35 = vadd.f32 %v3581_v3, %v3419_v33  ;;  %6150 = vmatmul.mubr.msk.f32.vlgmr.msra.gmra.mxu0 %vm2282_vm8, %v3726_v31 }
0x1350   : > { %6153 = vmatpush3.msra.mxu0 %v3577_v32  ;;  %6154 = vmatprep.mubr.msk.f32.mxu0 %vm6393_vm4, %v6392_v57 }
0x1351   : > { %6173 = vmatpush3.msra.mxu1 %v3582_v35  ;;  %6157 = vmatprep.subr.mxu0 %v6392_v57 }
0x1352   : > { %6182 = vmatprep.subr.mxu1 %v6392_v57 }
0x1353   : > { %6155 = vmatmul.mubr.msk.f32.vlgmr.msra.gmra.mxu0 %vm2282_vm8, %v3819_v37 }
0x1354   : > { %6159 = vmatprep.mubr.msk.f32.mxu0 %vm6393_vm4, %v6392_v57 }
0x13c9   : > { %v4158_v38 = vpop.trf.xlu0 }
0x13ca   : > { %6175 = vmatmul.mubr.msk.f32.vlgmr.msra.gmra.mxu1 %vm2282_vm8, %v4158_v38 }
0x13cb   : > { %6184 = vmatprep.mubr.msk.f32.mxu1 %vm6393_vm4, %v6392_v57  ;;  %6183 = vmatpush3.msra.mxu1 %v5695_v25 }
0x13cc   : > { %6192 = vmatprep.subr.mxu1 %v6392_v57 }
0x140f   : > { %v7116_v42 = vpop.f32.mrf.mxu0 }
0x1411   : > { %v6151_v39 = vpop.f32.mrf.mxu0 }
0x1413   : > { %v3904_v40 = vpop.f32.mrf.mxu0 }
0x1414   : > { %v3908_v44 = vmul.f32 0.35355338, %v3904_v40 }
0x1415   : > { %v6156_v45 = vpop.f32.mrf.mxu0 }
0x1416   : > { %v3909_v46 = vsel %vm2282_vm8, %v3908_v44, -inf  ;;  %v5692_v45 = vld [vmem:[%s7462_s10 + $0xb8] sm:$0xff]  ;;  %s7473_s10 = scalar_lea.vmem %s7403_s18, %s7504_s3 }
0x1417   : > { %3910 = vmax.xlane.f32.xlu1 %v3909_v46  ;;  %v5696_v46 = vld [vmem:[%s6596_s27 + $0x38] sm:$0xff] }
0x1428   : > { %3433 = vperm.xlu1 %6306, %v5690_v48  }
0x148a   : > { %v4243_v52 = vpop.f32.mrf.mxu1 }
0x148b   : > { %v4247_v53 = vmul.f32 0.35355338, %v4243_v52 }
0x148c   : > { %v6176_v54 = vpop.f32.mrf.mxu1 }
0x148d   : > { %v4248_v55 = vsel %vm2282_vm8, %v4247_v53, -inf }
0x148e   : > { %4249 = vmax.xlane.f32.xlu1 %v4248_v55 }
0x149f   : > { %3438 = vperm.xlu1 %6306, %v5691_v56  }
0x14a0   : > { %v3911_v58 = vpop.xlane.xlu1 %3910 }
0x14a1   : > { %v3912_v61 = vsub.f32 %v3908_v44, %v3911_v58 }
0x14a3   : > { %v3913_v62 = vmul.f32 1.442695, %v3912_v61  ;;  %3423 = vperm.xlu1 %6306, %v5688_v59  }
0x14a4   : > { %v3434_v63 = vpop.permute.xlu1 %3433 }
0x14a5   : > { %6332 = vpow2.f32 %v3913_v62  ;;  %v3597_v0 = vadd.f32 %v7089_v4, %v3434_v63 }
0x14a7   : > { %6158 = vmatpush3.xpose.msk.msra.mxu0 %vm2282_vm8, %v3597_v0 }
0x14a8   : > { %6162 = vmatprep.subr.mxu0 %v6392_v57 }
0x14b2   : > { %v6333_v34 = vpop.eup %6332 }
0x14b3   : > { %v3915_v17 = vsel %vm2282_vm8, %v6333_v34, 0.0 }
0x14b4   : > { %3916 = vadd.xlane.f32.xlu0 %v3915_v17 }
0x14ca   : > { %3403 = vperm.xlu0 %6307, %v5684_v1  }
0x1517   : > { %v4250_v3 = vpop.xlane.xlu1 %4249 }
0x1518   : > { %v4251_v5 = vsub.f32 %v4247_v53, %v4250_v3 }
0x151a   : > { %v4252_v6 = vmul.f32 1.442695, %v4251_v5 }
0x151b   : > { %v3439_v15 = vpop.permute.xlu1 %3438 }
0x151c   : > { %6334 = vpow2.f32 %v4252_v6  ;;  %v3602_v21 = vadd.f32 %v3601_v51, %v3439_v15  ;;  %v4795_v15 = vld [vmem:[%s6627_s30 + $0x18] sm:$0xff] }
0x151f   : > { %v3424_v22 = vpop.permute.xlu1 %3423 }
0x1520   : > { %v3587_v23 = vadd.f32 %v7087_v2, %v3424_v22 }
0x1529   : > { %v6335_v7 = vpop.eup %6334 }
0x152a   : > { %v4254_v8 = vsel %vm2282_vm8, %v6335_v7, 0.0 }
0x152b   : > { %4255 = vadd.xlane.f32.xlu0 %v4254_v8 }
0x153d   : > { %v3917_v4 = vpop.xlane.xlu0 %3916 }
0x153e   : > { %6336 = vrcp.f32 %v3917_v4  ;;  %v4710_v4 = vld [vmem:[%s6616_s6 + $0x18] sm:$0xff] }
0x1545   : > { %v3404_v12 = vpop.permute.xlu0 %3403 }
0x1546   : > { %v3567_v13 = vadd.f32 %v7080_v60, %v3404_v12  ;;  %v4798_v12 = vld [vmem:[%s6627_s30 + $0x30] sm:$0xff] }
0x154b   : > { %v6337_v9 = vpop.eup %6336 }
0x154c   : > { %v3919_v10 = vmul.f32 %v6337_v9, %v6333_v34  ;;  %v4709_v9 = vld [vmem:[%s6616_s6 + $0x10] sm:$0xff] }
0x154e   : > { %6160 = vmatmul.mubr.msk.f32.vlgmr.msra.gmra.mxu0 %vm2282_vm8, %v3919_v10  ;;  %v4707_v10 = vld [vmem:[%s6616_s6] sm:$0xff] }
0x154f   : > { %6163 = vmatpush3.msra.mxu0 %v5694_v11  ;;  %6164 = vmatprep.mubr.msk.f32.mxu0 %vm6393_vm4, %v6392_v57  ;;  %v4799_v11 = vld [vmem:[%s6627_s30 + $0x38] sm:$0xff] }
0x1550   : > { %6167 = vmatprep.subr.mxu0 %v6392_v57 }
0x1558   : > { %4409 = vxpose.xlu0.b32.start.end [1/1] (short) (narrow) %v3567_v13, 8  ;;  %v4797_v13 = vld [vmem:[%s6627_s30 + $0x28] sm:$0xff] }
0x15b4   : > { %v4256_v14 = vpop.xlane.xlu0 %4255 }
0x15b5   : > { %6338 = vrcp.f32 %v4256_v14  ;;  %v4796_v14 = vld [vmem:[%s6627_s30 + $0x20] sm:$0xff] }
0x15c2   : > { %v6339_v20 = vpop.eup %6338 }
0x15c3   : > { %v4258_v60 = vmul.f32 %v6339_v20, %v6335_v7  ;;  %v4699_v20 = vsub.s32 2, %v6714_v43 }
0x15c5   : > { %v4700_v22 = vrot.slane %v7047_v36, %v4699_v20 }
0x15d4   : > { %v4425_v24 = vpop.trf.xlu0 }
0x160e   : > { %v3992_v18 = vpop.f32.mrf.mxu0 }
0x160f   : > { %6165 = vmatmul.mubr.msk.f32.vlgmr.msra.gmra.mxu0 %vm2282_vm8, %v3992_v18 }
0x1610   : > { %v6161_v19 = vpop.f32.mrf.mxu0  ;;  %6168 = vmatpush3.msra.mxu0 %v5693_v16  ;;  %6169 = vmatprep.mubr.msk.f32.mxu0 %vm6393_vm4, %v6392_v57 }
0x1611   : > { %6177 = vmatprep.subr.mxu0 %v6392_v57 }
0x1613   : > { %6170 = vmatmul.mubr.msk.f32.vlgmr.msra.gmra.mxu0 %vm2282_vm8, %v7116_v42 }
0x1614   : > { %6178 = vmatpush3.xpose.msk.msra.mxu0 %vm2282_vm8, %v3602_v21  ;;  %6179 = vmatprep.mubr.msk.f32.mxu0 %vm6393_vm4, %v6392_v57  ;;  %v4704_v21 = vsub.s32 3, %v6714_v43 }
0x1615   : > { %6187 = vmatprep.subr.mxu0 %v6392_v57 }
0x1617   : > { %6180 = vmatmul.mubr.msk.f32.vlgmr.msra.gmra.mxu0 %vm2282_vm8, %v4258_v60 }
0x1618   : > { %6188 = vmatpush3.msra.mxu0 %v3587_v23  ;;  %6189 = vmatprep.mubr.msk.f32.mxu0 %vm6393_vm4, %v6392_v57 }
0x1619   : > { %6197 = vmatprep.subr.mxu0 %v6392_v57 }
0x161b   : > { %6190 = vmatmul.mubr.msk.f32.vlgmr.msra.gmra.mxu0 %vm2282_vm8, %v4425_v24  ;;  %v4705_v24 = vrot.slane %v7047_v36, %v4704_v21 }
0x161c   : > { %6199 = vmatprep.mubr.msk.f32.mxu0 %vm6393_vm4, %v6392_v57  ;;  %6198 = vmatpush3.msra.mxu0 %v5696_v46 }
0x161d   : > { %6213 = vmatprep.subr.mxu0 %v6392_v57 }
0x16cf   : > { %v4065_v26 = vpop.f32.mrf.mxu0 }
0x16d1   : > { %v6166_v2 = vpop.f32.mrf.mxu0 }
0x16d2   : > { %v4794_v2 = vld [vmem:[%s6627_s30 + $0x10] sm:$0xff] }
0x16d3   : > { %v4138_v27 = vpop.f32.mrf.mxu0 }
0x16d4   : > { %v4139_v28 = vadd.f32 %v4138_v27, %v4065_v26  ;;  %v4793_v27 = vld [vmem:[%s6627_s30 + $0x8] sm:$0xff] }
0x16d5   : > { %v6171_v29 = vpop.f32.mrf.mxu0 }
0x16d7   : > { %v4331_v30 = vpop.f32.mrf.mxu0 }
0x16d8   : > { %6185 = vmatmul.mubr.msk.f32.vlgmr.msra.gmra.mxu1 %vm2282_vm8, %v4331_v30 }
0x16d9   : > { %v6181_v31 = vpop.f32.mrf.mxu0  ;;  %6194 = vmatprep.mubr.msk.f32.mxu1 %vm6393_vm4, %v6392_v57 }
0x16db   : > { %v4510_v32 = vpop.f32.mrf.mxu0 }
0x16dc   : > { %v4514_v33 = vmul.f32 0.35355338, %v4510_v32 }
0x16dd   : > { %v6191_v35 = vpop.f32.mrf.mxu0 }
0x16de   : > { %v4515_v37 = vsel %vm2282_vm8, %v4514_v33, -inf  ;;  %v5730_v35 = vld [vmem:[%s7473_s10] ss:$0 sm:$0xff] }
0x16df   : > { %4516 = vmax.xlane.f32.xlu1 %v4515_v37 }
0x1768   : > { %v4517_v38 = vpop.xlane.xlu1 %4516 }
0x1769   : > { %v4518_v42 = vsub.f32 %v4514_v33, %v4517_v38 }
0x176b   : > { %v4519_v39 = vmul.f32 1.442695, %v4518_v42 }
0x176d   : > { %6340 = vpow2.f32 %v4519_v39 }
0x177a   : > { %v6341_v40 = vpop.eup %6340 }
0x177b   : > { %v4521_v44 = vsel %vm2282_vm8, %v6341_v40, 0.0 }
0x177c   : > { %4522 = vadd.xlane.f32.xlu1 %v4521_v44 }
0x178d   : > { %3443 = vperm.xlu1 %6306, %v5692_v45  }
0x1798   : > { %v4404_v48 = vpop.f32.mrf.mxu1 }
0x1799   : > { %v4408_v51 = vadd.f32 %v4404_v48, %v4139_v28  ;;  %v4792_v28 = vld [vmem:[%s6627_s30] sm:$0xff] }
0x179a   : > { %v6186_v52 = vpop.f32.mrf.mxu1 }
0x1805   : > { %v4523_v53 = vpop.xlane.xlu1 %4522 }
0x1806   : > { %6342 = vrcp.f32 %v4523_v53 }
0x1809   : > { %v3444_v54 = vpop.permute.xlu1 %3443 }
0x180a   : > { %v3607_v55 = vadd.f32 %v7120_v49, %v3444_v54  ;;  %v5727_v49 = vld [vmem:[%s6603_s5 + $0x1] ss:$0 sm:$0xff]  ;;  %s7472_s5 = scalar_lea.vmem %s7401_s16, %s7500_s1  ;;  %v4896_v54 = vsub.s32 4, %v6714_v43 }
0x180b   : > { %v5728_v29 = vld [vmem:[%s7472_s5] ss:$0 sm:$0xff] }
0x180c   : > { %6193 = vmatpush3.xpose.msk.msra.mxu1 %vm2282_vm8, %v3607_v55  ;;  %v4901_v55 = vsub.s32 5, %v6714_v43 }
0x180d   : > { %6202 = vmatprep.subr.mxu1 %v6392_v57 }
0x1813   : > { %v6343_v56 = vpop.eup %6342 }
0x1814   : > { %v4525_v58 = vmul.f32 %v6343_v56, %v6341_v40  ;;  %v4897_v56 = vrot.slane %v7047_v36, %v4896_v54 }
0x1816   : > { %6195 = vmatmul.mubr.msk.f32.vlgmr.msra.gmra.mxu1 %vm2282_vm8, %v4525_v58 }
0x1817   : > { %6210 = vmatprep.mubr.msk.f32.mxu1 %vm6393_vm4, %v6392_v57  ;;  %6203 = vmatpush3.msra.mxu1 %v4710_v4 }
0x1818   : > { %6204 = vmatprep.subr.mxu1 %v6392_v57 }
0x1819   : > { %6205 = vmatpush3.msra.mxu1 %v4709_v9 }
0x181a   : > { %6206 = vmatprep.subr.mxu1 %v6392_v57 }
0x18d6   : > { %v4598_v59 = vpop.f32.mrf.mxu1 }
0x18d7   : > { %6200 = vmatmul.mubr.msk.f32.vlgmr.msra.gmra.mxu0 %vm2282_vm8, %v4598_v59  ;;  %v4902_v59 = vrot.slane %v7047_v36, %v4901_v55 }
0x18d8   : > { %v6196_v61 = vpop.f32.mrf.mxu1  ;;  %6229 = vmatprep.mubr.msk.f32.mxu0 %vm6393_vm4, %v6392_v57  ;;  %6214 = vmatpush3.msra.mxu0 %v4799_v11 }
0x18d9   : > { %6215 = vmatprep.subr.mxu0 %v6392_v57 }
0x18da   : > { %6216 = vmatpush3.msra.mxu0 %v4798_v12 }
0x18db   : > { %6217 = vmatprep.subr.mxu0 %v6392_v57 }
0x18dc   : > { %6218 = vmatpush3.msra.mxu0 %v4797_v13 }
0x18dd   : > { %6219 = vmatprep.subr.mxu0 %v6392_v57 }
0x18de   : > { %6220 = vmatpush3.msra.mxu0 %v4796_v14 }
0x18df   : > { %6221 = vmatprep.subr.mxu0 %v6392_v57 }
0x18e0   : > { %6222 = vmatpush3.msra.mxu0 %v4795_v15 }
0x18e1   : > { %6223 = vmatprep.subr.mxu0 %v6392_v57 }
0x18e2   : > { %6224 = vmatpush3.msra.mxu0 %v4794_v2 }
0x18e3   : > { %6225 = vmatprep.subr.mxu0 %v6392_v57 }
0x18e4   : > { %6226 = vmatpush3.msra.mxu0 %v4793_v27 }
0x18e5   : > { %6227 = vmatprep.subr.mxu0 %v6392_v57 }
0x18e6   : > { %6228 = vmatpush3.msra.mxu0 %v4792_v28 }
0x1997   : > { %v4671_v62 = vpop.f32.mrf.mxu0 }
0x1998   : > { %v4675_v63 = vadd.f32 %v4671_v62, %v4408_v51 }
0x1999   : > { %v6201_v0 = vpop.f32.mrf.mxu0 }
0x199a   : > { %v4682_v34 = vadd.f32 %v5727_v49, %v4675_v63 }
0x199c   : > { %v4683_v17 = vadd.f32 %v4682_v34, %v7055_v41  ;;  %v4708_v41 = vld [vmem:[%s6616_s6 + $0x8] sm:$0xff] }
0x199d   : > { %6207 = vmatpush3.msra.mxu1 %v4708_v41 }
0x199e   : > { %v4684_v1 = vsel %vm1272_vm3, %v4683_v17, 0.0  ;;  %6208 = vmatprep.subr.mxu1 %v6392_v57 }
0x199f   : > { %4685 = vadd.xlane.f32.xlu0 %v4684_v1  ;;  %6209 = vmatpush3.msra.mxu1 %v4707_v10 }
0x1a28   : > { %v4686_v3 = vpop.xlane.xlu0 %4685 }
0x1a29   : > { %v4687_v5 = vmul.f32 0.03125, %v4686_v3 }
0x1a2b   : > { %v4688_v6 = vsub.f32 %v4683_v17, %v4687_v5 }
0x1a2d   : > { %v4689_v7 = vmul.f32 %v4688_v6, %v4688_v6 }
0x1a2f   : > { %v4690_v8 = vsel %vm1272_vm3, %v4689_v7, 0.0 }
0x1a30   : > { %4691 = vadd.xlane.f32.xlu1 %v4690_v8 }
0x1ab9   : > { %v4692_v16 = vpop.xlane.xlu1 %4691 }
0x1aba   : > { %v4693_v18 = vmul.f32 0.03125, %v4692_v16 }
0x1abc   : > { %v4694_v19 = vadd.f32 1e-05, %v4693_v18 }
0x1abe   : > { %6344 = vrsqrt.f32 %v4694_v19 }
0x1acb   : > { %v6345_v60 = vpop.eup %6344 }
0x1acc   : > { %v4696_v23 = vmul.f32 %v6345_v60, %v4688_v6 }
0x1ace   : > { %v4701_v25 = vmul.f32 %v4700_v22, %v4696_v23 }
0x1ad0   : > { %v4706_v26 = vadd.f32 %v4705_v24, %v4701_v25 }
0x1ad2   : > { %6211 = vmatmul.mubr.msk.f32.vlgmr.msra.gmra.mxu1 %vm1272_vm3, %v4706_v26 }
0x1b92   : > { %v4787_v30 = vpop.f32.mrf.mxu1 }
0x1b93   : > { %v4788_v31 = vadd.f32 %v5728_v29, %v4787_v30 }
0x1b94   : > { %v6212_v32 = vpop.f32.mrf.mxu1 }
0x1b95   : > { %v4791_v33 = vmax.f32 %v4788_v31, 0.0 }
0x1b97   : > { %6230 = vmatmul.mubr.msk.f32.vlgmr.msra.gmra.mxu0 %vm1682_vm6, %v4791_v33 }
0x1c57   : > { %v4876_v37 = vpop.f32.mrf.mxu0 }
0x1c58   : > { %v4877_v38 = vadd.f32 %v5730_v35, %v4876_v37 }
0x1c59   : > { %v6231_v57 = vpop.f32.mrf.mxu0 }
0x1c5a   : > { %v4880_v42 = vadd.f32 %v4877_v38, %v4706_v26 }
0x1c5c   : > { %v4881_v39 = vsel %vm1272_vm3, %v4880_v42, 0.0 }
0x1c5d   : > { %4882 = vadd.xlane.f32.xlu0 %v4881_v39 }
0x1ce6   : > { %v4883_v40 = vpop.xlane.xlu0 %4882 }
0x1ce7   : > { %v4884_v44 = vmul.f32 0.03125, %v4883_v40 }
0x1ce9   : > { %v4885_v45 = vsub.f32 %v4880_v42, %v4884_v44 }
0x1ceb   : > { %v4886_v46 = vmul.f32 %v4885_v45, %v4885_v45 }
0x1ced   : > { %v4887_v48 = vsel %vm1272_vm3, %v4886_v46, 0.0 }
0x1cee   : > { %4888 = vadd.xlane.f32.xlu0 %v4887_v48 }
0x1d77   : > { %v4889_v51 = vpop.xlane.xlu0 %4888 }
0x1d78   : > { %v4890_v52 = vmul.f32 0.03125, %v4889_v51 }
0x1d7a   : > { %v4891_v53 = vadd.f32 1e-05, %v4890_v52 }
0x1d7c   : > { %6346 = vrsqrt.f32 %v4891_v53 }
0x1d89   : > { %v6347_v58 = vpop.eup %6346 }
0x1d8a   : > { %v4893_v61 = vmul.f32 %v6347_v58, %v4885_v45 }
0x1d8c   : > { %v4898_v49 = vmul.f32 %v4897_v56, %v4893_v61  ;;  %4908 = sbr.rel (%p5732_p12) target bundleno = 8417 (0x20e1), region = 124 }
0x1d8e   : > { %v4903_v62 = vadd.f32 %v4902_v59, %v4898_v49 }
0x1d90   : > { %4904 = vst.msk [vmem:[#allocation2] sm:$0xff] %vm1272_vm3, %v4903_v62 }
0x1d91   : > { %v4947_v63 = vsel %vm1272_vm3, %v4903_v62, 0.0  ;;  %v4909_v36 = vld [vmem:[%s7405_s20] sm:$0xff]  ;;  %v6394_v5 = vmov 0   ;;  %v4922_v6 = vld [vmem:[%s7406_s21 + $0x8] sm:$0xff]  ;;  %v4923_v7 = vld [vmem:[%s7406_s21 + $0x10] sm:$0xff]  ;;  %v6395_v31 = vmov 0.0  }
0x1d92   : > { %4948 = vadd.xlane.f32.xlu0 %v4947_v63  ;;  %6234 = vmatprep.mubr.msk.f32.mxu0 %vm1272_vm3, %v4909_v36  ;;  %v4921_v3 = vld [vmem:[%s7406_s21] sm:$0xff]  ;;  %v4924_v8 = vld [vmem:[%s7406_s21 + $0x18] sm:$0xff]  ;;  %v4926_v9 = vld [vmem:[%s7406_s21 + $0x28] sm:$0xff]  ;;  %vm6396_vm11 = vmmov 0  }
0x1d93   : > { %6349 = vset.pattern.permute.xlu1 %v6394_v5  ;;  %6350 = vset.pattern.permute.xlu0 %v6394_v5  ;;  %v4925_v4 = vld [vmem:[%s7406_s21 + $0x20] sm:$0xff]  ;;  %v4927_v41 = vld [vmem:[%s7406_s21 + $0x30] sm:$0xff]  ;;  %v4928_v10 = vld [vmem:[%s7406_s21 + $0x38] sm:$0xff] }
0x1d94   : > { %4964 = vperm.xlu1 %6349, %v4921_v3   ;;  %v4929_v11 = vld [vmem:[%s7406_s21 + $0x40] sm:$0xff]  ;;  %v4930_v12 = vld [vmem:[%s7406_s21 + $0x48] sm:$0xff]  ;;  %v4931_v13 = vld [vmem:[%s7406_s21 + $0x50] sm:$0xff]  ;;  %6252 = vmatprep.subr.mxu1 %v6395_v31 }
0x1d95   : > { %v4932_v14 = vld [vmem:[%s7406_s21 + $0x58] sm:$0xff]  ;;  %v4910_v60 = vld [vmem:[%s7405_s20 + $0x8] sm:$0xff]  ;;  %v4911_v23 = vld [vmem:[%s7405_s20 + $0x10] sm:$0xff]  ;;  %6260 = vmatprep.mubr.msk.f32.mxu1 %vm6396_vm11, %v6395_v31 }
0x1d96   : > { %v4914_v24 = vld [vmem:[%s7405_s20 + $0x28] sm:$0xff]  ;;  %v4915_v25 = vld [vmem:[%s7405_s20 + $0x30] sm:$0xff]  ;;  %v4916_v26 = vld [vmem:[%s7405_s20 + $0x38] sm:$0xff] }
0x1d97   : > { %v4917_v2 = vld [vmem:[%s7405_s20 + $0x40] sm:$0xff]  ;;  %v4918_v27 = vld [vmem:[%s7405_s20 + $0x48] sm:$0xff]  ;;  %v4919_v28 = vld [vmem:[%s7405_s20 + $0x50] sm:$0xff] }
0x1d98   : > { %4969 = vperm.xlu1 %6349, %v4922_v6   ;;  %v4920_v29 = vld [vmem:[%s7405_s20 + $0x58] sm:$0xff]  ;;  %v4935_v32 = vld [vmem:[%s7474_s22 + $0x10] sm:$0xff]  ;;  %v4934_v33 = vld [vmem:[%s7474_s22 + $0x8] sm:$0xff] }
0x1d99   : > { %v4936_v30 = vld [vmem:[%s7474_s22 + $0x18] sm:$0xff]  ;;  %v4933_v35 = vld [vmem:[%s7474_s22] sm:$0xff] }
0x1d9a   : > { %6253 = vmatpush3.msra.mxu1 %v4936_v30 }
0x1d9b   : > { %6254 = vmatprep.subr.mxu1 %v6395_v31 }
0x1d9c   : > { %4979 = vperm.xlu1 %6349, %v4924_v8   ;;  %6255 = vmatpush3.msra.mxu1 %v4935_v32 }
0x1d9d   : > { %6256 = vmatprep.subr.mxu1 %v6395_v31 }
0x1d9e   : > { %6257 = vmatpush3.msra.mxu1 %v4934_v33 }
0x1d9f   : > { %6258 = vmatprep.subr.mxu1 %v6395_v31 }
0x1da0   : > { %4984 = vperm.xlu1 %6349, %v4925_v4   ;;  %6259 = vmatpush3.msra.mxu1 %v4933_v35 }
0x1da1   : > { %6263 = vmatprep.subr.mxu1 %v6395_v31 }
0x1da4   : > { %4989 = vperm.xlu1 %6349, %v4926_v9  }
0x1da8   : > { %4994 = vperm.xlu1 %6349, %v4927_v41  }
0x1dac   : > { %4999 = vperm.xlu1 %6349, %v4928_v10  }
0x1db0   : > { %5004 = vperm.xlu1 %6349, %v4929_v11  }
0x1db4   : > { %5009 = vperm.xlu1 %6349, %v4930_v12  }
0x1db8   : > { %5014 = vperm.xlu1 %6349, %v4931_v13  }
0x1dbc   : > { %5019 = vperm.xlu1 %6349, %v4932_v14  }
0x1e0f   : > { %v4965_v37 = vpop.permute.xlu1 %4964 }
0x1e13   : > { %v4970_v38 = vpop.permute.xlu1 %4969 }
0x1e17   : > { %v4980_v57 = vpop.permute.xlu1 %4979 }
0x1e1b   : > { %v4949_v0 = vpop.xlane.xlu0 %4948  ;;  %v4985_v42 = vpop.permute.xlu1 %4984 }
0x1e1c   : > { %v4950_v34 = vmul.f32 0.03125, %v4949_v0 }
0x1e1e   : > { %v4951_v17 = vsub.f32 %v4903_v62, %v4950_v34 }
0x1e1f   : > { %v4990_v39 = vpop.permute.xlu1 %4989 }
0x1e20   : > { %v4952_v43 = vmul.f32 %v4951_v17, %v4951_v17 }
0x1e22   : > { %v4953_v1 = vsel %vm1272_vm3, %v4952_v43, 0.0 }
0x1e23   : > { %4954 = vadd.xlane.f32.xlu0 %v4953_v1  ;;  %v4995_v48 = vpop.permute.xlu1 %4994 }
0x1e27   : > { %v5000_v49 = vpop.permute.xlu1 %4999 }
0x1e2b   : > { %v5005_v5 = vpop.permute.xlu1 %5004 }
0x1e2f   : > { %v5010_v9 = vpop.permute.xlu1 %5009 }
0x1e33   : > { %v5015_v14 = vpop.permute.xlu1 %5014 }
0x1e39   : > { %4974 = vperm.xlu0 %6350, %v4923_v7  }
0x1eac   : > { %v4955_v15 = vpop.xlane.xlu0 %4954 }
0x1ead   : > { %v4956_v16 = vmul.f32 0.03125, %v4955_v15 }
0x1eaf   : > { %v4957_v18 = vadd.f32 1e-05, %v4956_v16 }
0x1eb1   : > { %6351 = vrsqrt.f32 %v4957_v18 }
0x1eb4   : > { %v4975_v54 = vpop.permute.xlu0 %4974 }
0x1ebe   : > { %v6352_v19 = vpop.eup %6351 }
0x1ebf   : > { %v4959_v20 = vmul.f32 %v6352_v19, %v4951_v17  ;;  %v5020_v19 = vpop.permute.xlu1 %5019 }
0x1ec1   : > { %v4960_v21 = vmul.f32 %v4959_v20, %v6723_v47  ;;  %v4912_v47 = vld [vmem:[%s7405_s20 + $0x18] sm:$0xff] }
0x1ec3   : > { %v4961_v22 = vadd.f32 %v4960_v21, %v6727_v50  ;;  %v4913_v50 = vld [vmem:[%s7405_s20 + $0x20] sm:$0xff] }
0x1ec5   : > { %6232 = vmatprep.subr.msk.mxu0 %vm1272_vm3, %v4961_v22 }
0x1ec6   : > { %6233 = vmatpush3.xpose.msk.msra.mxu0 %vm1272_vm3, %v4961_v22 }
0x1ec9   : > { %6235 = vmatmul.mubr.msk.f32.vlgmr.msra.gmra.mxu0 %vm1272_vm3, %v4910_v60  ;;  %v4945_v60 = vld [vmem:[%s7475_s0 + $0x38] sm:$0xff] }
0x1eca   : > { %6237 = vmatprep.mubr.msk.f32.mxu0 %vm1272_vm3, %v4911_v23 }
0x1ecd   : > { %6238 = vmatmul.mubr.msk.f32.gmra.mxu0 %vm1272_vm3, %v4912_v47  ;;  %v4944_v47 = vld [vmem:[%s7475_s0 + $0x30] sm:$0xff] }
0x1ece   : > { %6240 = vmatprep.mubr.msk.f32.mxu0 %vm1272_vm3, %v4913_v50  ;;  %v4943_v50 = vld [vmem:[%s7475_s0 + $0x28] sm:$0xff] }
0x1ed1   : > { %6241 = vmatmul.mubr.msk.f32.gmra.mxu0 %vm1272_vm3, %v4914_v24  ;;  %v4942_v24 = vld [vmem:[%s7475_s0 + $0x20] sm:$0xff] }
0x1ed2   : > { %6243 = vmatprep.mubr.msk.f32.mxu0 %vm1272_vm3, %v4915_v25  ;;  %v4941_v25 = vld [vmem:[%s7475_s0 + $0x18] sm:$0xff] }
0x1ed5   : > { %6244 = vmatmul.mubr.msk.f32.gmra.mxu0 %vm1272_vm3, %v4916_v26  ;;  %v4940_v26 = vld [vmem:[%s7475_s0 + $0x10] sm:$0xff] }
0x1ed6   : > { %6246 = vmatprep.mubr.msk.f32.mxu0 %vm1272_vm3, %v4917_v2  ;;  %v4939_v2 = vld [vmem:[%s7475_s0 + $0x8] sm:$0xff] }
0x1ed9   : > { %6247 = vmatmul.mubr.msk.f32.gmra.mxu0 %vm1272_vm3, %v4918_v27  ;;  %v4938_v27 = vld [vmem:[%s7475_s0] sm:$0xff]  ;;  %s7478_s0 = sld [smem:[#allocation26_spill]] }
0x1eda   : > { %6249 = vmatprep.mubr.msk.f32.mxu0 %vm1272_vm3, %v4919_v28 }
0x1edd   : > { %6250 = vmatmul.mubr.msk.f32.gmra.mxu0 %vm1272_vm3, %v4920_v29  ;;  %v5746_v29 = vld [vmem:[%s7476_s11] ss:$0 sm:$0xff] }
0x1edf   : > { %v5748_v35 = vld [vmem:[%s7478_s0] ss:$0 sm:$0xff] }
0x1f89   : > { %v6236_v40 = vpop.f32.mrf.mxu0 }
0x1f8a   : > { %v5133_v51 = vadd.f32 %v6236_v40, %v4970_v38 }
0x1f8b   : > { %v5127_v44 = vpop.f32.mrf.mxu0 }
0x1f8c   : > { %v5128_v45 = vadd.f32 %v5127_v44, %v4965_v37  ;;  %v5187_v56 = vmax.f32 %v5133_v51, 0.0 }
0x1f8d   : > { %v6239_v46 = vpop.f32.mrf.mxu0 }
0x1f8e   : > { %v5186_v52 = vmax.f32 %v5128_v45, 0.0  ;;  %v5143_v63 = vadd.f32 %v6239_v46, %v4980_v57 }
0x1f8f   : > { %v5137_v53 = vpop.f32.mrf.mxu0 }
0x1f90   : > { %5204 = vxpose.xlu1.b32.start [1/4] (short) (narrow) %v5186_v52, 8  ;;  %v5138_v58 = vadd.f32 %v5137_v53, %v4975_v54  ;;  %v5189_v1 = vmax.f32 %v5143_v63, 0.0 }
0x1f91   : > { %v6242_v55 = vpop.f32.mrf.mxu0 }
0x1f92   : > { %v5188_v0 = vmax.f32 %v5138_v58, 0.0  ;;  %v5153_v34 = vadd.f32 %v6242_v55, %v4990_v39 }
0x1f93   : > { %v5147_v59 = vpop.f32.mrf.mxu0 }
0x1f94   : > { %v5148_v61 = vadd.f32 %v5147_v59, %v4985_v42  ;;  %5205 = vxpose.xlu1.b32.cont [2/4] (short) (narrow) %v5187_v56, 8  ;;  %v5191_v36 = vmax.f32 %v5153_v34, 0.0 }
0x1f95   : > { %v6245_v62 = vpop.f32.mrf.mxu0 }
0x1f96   : > { %v5190_v17 = vmax.f32 %v5148_v61, 0.0  ;;  %v5163_v7 = vadd.f32 %v6245_v62, %v5000_v49 }
0x1f97   : > { %v5157_v43 = vpop.f32.mrf.mxu0 }
0x1f98   : > { %5315 = vxpose.xlu0.b32.start [1/8] (short) (narrow) %v5190_v17, 8  ;;  %5206 = vxpose.xlu1.b32.cont [3/4] (short) (narrow) %v5188_v0, 8  ;;  %v5158_v3 = vadd.f32 %v5157_v43, %v4995_v48  ;;  %v5193_v41 = vmax.f32 %v5163_v7, 0.0 }
0x1f99   : > { %v6248_v6 = vpop.f32.mrf.mxu0 }
0x1f9a   : > { %v5192_v8 = vmax.f32 %v5158_v3, 0.0  ;;  %v5173_v12 = vadd.f32 %v6248_v6, %v5010_v9 }
0x1f9b   : > { %v5167_v4 = vpop.f32.mrf.mxu0 }
0x1f9c   : > { %5316 = vxpose.xlu0.b32.cont [2/8] (short) (narrow) %v5191_v36, 8  ;;  %5207 = vxpose.xlu1.b32.end [4/4] (short) (narrow) %v5189_v1, 8  ;;  %v5168_v10 = vadd.f32 %v5167_v4, %v5005_v5  ;;  %v5195_v16 = vmax.f32 %v5173_v12, 0.0 }
0x1f9d   : > { %v6251_v11 = vpop.f32.mrf.mxu0 }
0x1f9e   : > { %v5194_v13 = vmax.f32 %v5168_v10, 0.0  ;;  %v5183_v20 = vadd.f32 %v6251_v11, %v5020_v19 }
0x1f9f   : > { %v5177_v15 = vpop.f32.mrf.mxu0 }
0x1fa0   : > { %5317 = vxpose.xlu0.b32.cont [3/8] (short) (narrow) %v5192_v8, 8  ;;  %v5178_v18 = vadd.f32 %v5177_v15, %v5015_v14  ;;  %v5197_v22 = vmax.f32 %v5183_v20, 0.0 }
0x1fa2   : > { %v5196_v21 = vmax.f32 %v5178_v18, 0.0 }
0x1fa4   : > { %5318 = vxpose.xlu0.b32.cont [4/8] (short) (narrow) %v5193_v41, 8 }
0x1fa8   : > { %5319 = vxpose.xlu0.b32.cont [5/8] (short) (narrow) %v5194_v13, 8 }
0x1fac   : > { %5320 = vxpose.xlu0.b32.cont [6/8] (short) (narrow) %v5195_v16, 8 }
0x1fb0   : > { %5321 = vxpose.xlu0.b32.cont [7/8] (short) (narrow) %v5196_v21, 8 }
0x1fb4   : > { %5322 = vxpose.xlu0.b32.end [8/8] (short) (narrow) %v5197_v22, 8 }
0x200c   : > { %v5220_v23 = vpop.trf.xlu1 }
0x200d   : > { %6261 = vmatmul.mubr.msk.f32.vlgmr.msra.gmra.mxu1 %vm1272_vm3, %v5220_v23 }
0x200e   : > { %6264 = vmatpush3.msra.mxu1 %v4945_v60  ;;  %6279 = vmatprep.mubr.msk.f32.mxu1 %vm6396_vm11, %v6395_v31 }
0x200f   : > { %6265 = vmatprep.subr.mxu1 %v6395_v31 }
0x2010   : > { %6266 = vmatpush3.msra.mxu1 %v4944_v47 }
0x2011   : > { %6267 = vmatprep.subr.mxu1 %v6395_v31 }
0x2012   : > { %6268 = vmatpush3.msra.mxu1 %v4943_v50 }
0x2013   : > { %6269 = vmatprep.subr.mxu1 %v6395_v31 }
0x2014   : > { %6270 = vmatpush3.msra.mxu1 %v4942_v24  ;;  %v5331_v28 = vpop.trf.xlu0 }
0x2015   : > { %6271 = vmatprep.subr.mxu1 %v6395_v31 }
0x2016   : > { %6272 = vmatpush3.msra.mxu1 %v4941_v25 }
0x2017   : > { %6273 = vmatprep.subr.mxu1 %v6395_v31 }
0x2018   : > { %6274 = vmatpush3.msra.mxu1 %v4940_v26 }
0x2019   : > { %6275 = vmatprep.subr.mxu1 %v6395_v31 }
0x201a   : > { %6276 = vmatpush3.msra.mxu1 %v4939_v2 }
0x201b   : > { %6277 = vmatprep.subr.mxu1 %v6395_v31 }
0x201c   : > { %6278 = vmatpush3.msra.mxu1 %v4938_v27 }
0x201d   : > { %6280 = vmatmul.mubr.msk.f32.vlgmr.msra.gmra.mxu1 %vm1682_vm6, %v5331_v28 }
0x20cd   : > { %v5305_v30 = vpop.f32.mrf.mxu1 }
0x20ce   : > { %v5306_v32 = vadd.f32 %v5746_v29, %v5305_v30 }
0x20cf   : > { %v6262_v33 = vpop.f32.mrf.mxu1 }
0x20d0   : > { %5750 = vst.msk [vmem:[%s7477_s29 + $0x10] sm:$0xff] %vm1272_vm3, %v5306_v32 }
0x20dd   : > { %v5416_v31 = vpop.f32.mrf.mxu1 }
0x20de   : > { %v5417_v37 = vadd.f32 %v5748_v35, %v5416_v31 }
0x20df   : > { %v6281_v38 = vpop.f32.mrf.mxu1 }
0x20e0   : > { %5751 = vst.msk [vmem:[%s7479_s2 + $0x10] sm:$0xff] %vm1760_vm7, %v5417_v37 }
0x20e1 PF: > { %s7480_s4 = sld [smem:[#allocation7_spill]] }
0x20e7   : > { %s48_s1 = sadd.s32 1, %s7480_s4  }
0x20e8   : > { %p45_p13 = scmp.ge.s32.totalorder %s48_s1, 4  }
0x20ea   :  { %47 = sbr.rel (!%p45_p13) target bundleno = 51 (0x33), region = 199 }

</bundles_post_ra>
